<compile_context>
chip_gen: v6e
topology: v6e:2x2x1
jax: 0.10.0
libtpu: 0.0.40
codegen_flags: <defaults>
</compile_context>

<pallas_src>
import functools
import numpy as np
import jax
import jax.numpy as jnp
from jax.experimental import pallas as pl
from jax.experimental.pallas import tpu as pltpu  # noqa: F401  (not needed: defaults suffice)

# ----------------------------- configuration (module-consistent small shapes) -----------
DIM = 32                       # c
NUM_HEADS = 4
HEAD_DIM = DIM // NUM_HEADS    # 8
WINDOW_SIZE = 8                # window_size[0]
PWS = WINDOW_SIZE // 2         # permuted window size (4)
H = W = 16                     # input_resolution
B = 2
L = H * W
WINDOW_SHIFT = True
SHIFT = WINDOW_SIZE // 2 if WINDOW_SHIFT else 0
N = WINDOW_SIZE * WINDOW_SIZE  # tokens per window (64)
N4 = N // 4                    # pooled kv tokens per window (16)
NW = (H // WINDOW_SIZE) * (W // WINDOW_SIZE)   # windows per image (4)
SCALE = HEAD_DIM ** (-0.5)
LN_EPS = 1e-5


# ----------------------------- fused Pallas kernel ---------------------------------------
def _pwb_packed_kernel(x_ref, bias_ref, pkv_ref, wq_ref, bq_ref, wk_ref, bk_ref,
                       wv_ref, bv_ref, rrep_ref, hmask_ref, wp_ref, bp_ref,
                       lnm_ref, gamma_ref, beta_ref, o_ref, *, inv_c, eps):
    """Lane-packed PWB.  Layout: rows = 64 window tokens, lanes = group*c + channel,
    group g = batch*NW + window.  Score columns = group*n + head*n4 + pooled_token."""
    f32, bf16 = jnp.float32, jnp.bfloat16

    x = x_ref[...]                                   # (n, G*c) f32, lane-dense (residual)
    x16 = x.astype(bf16)

    # PSA 2x2 kv token regroup (token -> (head, pooled) row order) as one one-hot matmul.
    xpi = jnp.dot(pkv_ref[...], x16, preferred_element_type=f32).astype(bf16)

    # q / k / v projections: bf16 operands, f32 accumulate; qk scale folded into wq/bq.
    q = jnp.dot(x16, wq_ref[...], preferred_element_type=f32) + bq_ref[...]
    xk = jnp.dot(xpi, wk_ref[...], preferred_element_type=f32) + bk_ref[...]
    xv = jnp.dot(xpi, wv_ref[...], preferred_element_type=f32) + bv_ref[...]

    # Block-diagonal (group, head) K / V: replicate the 64 token rows G times (one-hot
    # matmul) and mask to the row's own (group, head) channel block.
    hmask = hmask_ref[...]                           # (G*n, G*c) f32 {0,1}
    k_bd = (jnp.dot(rrep_ref[...], xk.astype(bf16), preferred_element_type=f32)
            * hmask).astype(bf16)                    # (G*n, G*c)
    v_bd = (jnp.dot(rrep_ref[...], xv.astype(bf16), preferred_element_type=f32)
            * hmask).astype(bf16)

    # Scores for every (batch, window, head) at once: contract lanes -> (n, G*n).
    s = jax.lax.dot_general(q.astype(bf16), k_bd, (((1,), (1,)), ((), ())),
                            preferred_element_type=f32)
    s = s + bias_ref[...]                            # fused rel-pos bias + shift mask (f32)

    # Segmented softmax over each (group, head) run of n4 columns.  The global row max is a
    # valid shift (it cancels within each segment); p stays f32 for the denominator matmul
    # so den cannot underflow to 0 (reviewer concern); only the numerator operand is bf16.
    m = jnp.max(s, axis=-1, keepdims=True)
    p = jnp.exp(s - m)                               # (n, G*n) f32
    num = jnp.dot(p.astype(bf16), v_bd, preferred_element_type=f32)    # (n, G*c)
    den = jnp.dot(p, hmask, preferred_element_type=f32)                # per-segment sums
    att = (num * pl.reciprocal(den, approx=True)).astype(bf16)         # token-major, head-concat

    # Output projection + per-group LayerNorm + residual (lane-dense store).
    y = jnp.dot(att, wp_ref[...], preferred_element_type=f32) + bp_ref[...]
    lnm = lnm_ref[...]                               # (G*c, G*c) f32 block-ones(32)
    mu = jnp.dot(y, lnm, preferred_element_type=f32) * inv_c
    yc = y - mu
    var = jnp.dot(yc * yc, lnm, preferred_element_type=f32) * inv_c
    y = yc * jax.lax.rsqrt(var + eps) * gamma_ref[...] + beta_ref[...]
    o_ref[...] = (x + y).astype(o_ref.dtype)


# ----------------------------- constant packing (built once, outside forward) -----------
def prepare_pwb_constants(params, attn_mask, batch):
    c, nh, hd, n4, n, nw = DIM, NUM_HEADS, HEAD_DIM, N4, N, NW
    G = batch * nw
    f32, bf16 = jnp.float32, jnp.bfloat16
    eye_g = jnp.eye(G, dtype=f32)

    # kv weight split (first c//4 channels = k, next c//4 = v), replicated per head block.
    wk_rep = jnp.tile(params["w_kv"][:, :hd], (1, nh))           # (c, c): [ch, h*hd+d] = Wk[ch, d]
    wv_rep = jnp.tile(params["w_kv"][:, hd:], (1, nh))

    # One-hot row permutation: row h*n4 + (pi*PWS+pj)  <-  window token (2pi+a, 2pj+b), h=2a+b.
    pkv = np.zeros((n, n), np.float32)
    for h in range(nh):
        a, bsub = divmod(h, 2)
        for pi in range(PWS):
            for pj in range(PWS):
                pkv[h * n4 + pi * PWS + pj,
                    (2 * pi + a) * WINDOW_SIZE + (2 * pj + bsub)] = 1.0

    rows = np.arange(G * n)
    cols = np.arange(G * c)
    # hmask[(g,h,p), (g',h',d)] = [g==g'][h==h']  (K/V head packing AND softmax segment sums)
    hmask = ((rows[:, None] // n == cols[None, :] // c) &
             ((rows[:, None] % n) // n4 == (cols[None, :] % c) // hd)).astype(np.float32)
    # lnm[(g,ch), (g',ch')] = [g==g']  (per-group LayerNorm segment sums)
    lnm = (cols[:, None] // c == cols[None, :] // c).astype(np.float32)
    # row replicator: (G*n, n) stacking identity G times.
    rrep = np.tile(np.eye(n, dtype=np.float32), (G, 1))

    # Relative-position bias + shift mask, packed to match score columns (g, h, p), g = b*nw+w.
    rel = params["rpb_table"][params["rel_index"].reshape(-1)].reshape(n, n4, nh)
    rel = jnp.transpose(rel, (2, 0, 1)).astype(f32)              # (h, t, p)
    if attn_mask is not None:
        bw = rel[None] + attn_mask.astype(f32)[:, None]          # (w, h, t, p)
    else:
        bw = jnp.broadcast_to(rel[None], (nw, nh, n, n4))
    bias = jnp.tile(jnp.transpose(bw, (2, 0, 1, 3)).reshape(n, nw * nh * n4), (1, batch))

    return {
        "bias": bias.astype(f32),                                        # (n, G*n)
        "pkv": jnp.asarray(pkv, bf16),                                   # (n, n)
        "rrep": jnp.asarray(rrep, bf16),                                 # (G*n, n)
        "hmask": jnp.asarray(hmask, f32),                                # (G*n, G*c)
        "lnm": jnp.asarray(lnm, f32),                                    # (G*c, G*c)
        "wq": jnp.kron(eye_g, params["w_q"] * SCALE).astype(bf16),       # scale folded in
        "bq": (jnp.tile(params["b_q"], (G,)) * SCALE).reshape(1, G * c).astype(f32),
        "wk": jnp.kron(eye_g, wk_rep).astype(bf16),
        "bk": jnp.tile(params["b_kv"][:hd], (G * nh,)).reshape(1, G * c).astype(f32),
        "wv": jnp.kron(eye_g, wv_rep).astype(bf16),
        "bv": jnp.tile(params["b_kv"][hd:], (G * nh,)).reshape(1, G * c).astype(f32),
        "wp": jnp.kron(eye_g, params["w_proj"]).astype(bf16),
        "bp": jnp.tile(params["b_proj"], (G,)).reshape(1, G * c).astype(f32),
        "gamma": jnp.tile(params["ln_gamma"], (G,)).reshape(1, G * c).astype(f32),
        "beta": jnp.tile(params["ln_beta"], (G,)).reshape(1, G * c).astype(f32),
    }


# ----------------------------- lane-packed forward (Pallas path) -------------------------
def _pack_tokens(x):
    Bb, Ll, Cc = x.shape
    img = x.reshape(Bb, H, W, Cc)
    if SHIFT > 0:
        img = jnp.roll(img, shift=(-SHIFT, -SHIFT), axis=(1, 2))
    t = img.reshape(Bb, H // WINDOW_SIZE, WINDOW_SIZE, W // WINDOW_SIZE, WINDOW_SIZE, Cc)
    t = jnp.transpose(t, (2, 4, 0, 1, 3, 5))        # (ws, ws, B, wh, ww, C)
    return t.reshape(N, Bb * NW * Cc)               # rows = window token, lanes = group*c + ch


def _unpack_tokens(packed, Bb, Cc):
    t = packed.reshape(WINDOW_SIZE, WINDOW_SIZE, Bb, H // WINDOW_SIZE, W // WINDOW_SIZE, Cc)
    t = jnp.transpose(t, (2, 3, 0, 4, 1, 5))        # (B, wh, ws, ww, ws, C)
    img = t.reshape(Bb, H, W, Cc)
    if SHIFT > 0:
        img = jnp.roll(img, shift=(SHIFT, SHIFT), axis=(1, 2))
    return img.reshape(Bb, H * W, Cc)


@jax.jit
def pwb_forward_pallas(x, consts):
    Bb, Ll, Cc = x.shape
    packed = _pack_tokens(x)                         # (64, B*NW*C) lane-dense
    kernel = functools.partial(_pwb_packed_kernel, inv_c=1.0 / Cc, eps=LN_EPS)
    out = pl.pallas_call(
        kernel,
        out_shape=jax.ShapeDtypeStruct(packed.shape, jnp.float32),
    )(packed, consts["bias"], consts["pkv"], consts["wq"], consts["bq"],
      consts["wk"], consts["bk"], consts["wv"], consts["bv"],
      consts["rrep"], consts["hmask"], consts["wp"], consts["bp"],
      consts["lnm"], consts["gamma"], consts["beta"])
    return _unpack_tokens(out, Bb, Cc)


# ----------------------------- pure-JAX reference (PyTorch-faithful) ---------------------
def window_partition(x, ws):
    Bb, Hh, Ww, Cc = x.shape
    x = x.reshape(Bb, Hh // ws, ws, Ww // ws, ws, Cc)
    x = jnp.transpose(x, (0, 1, 3, 2, 4, 5))
    return x.reshape(-1, ws, ws, Cc)


def window_reverse(windows, ws, Hh, Ww):
    Bb = windows.shape[0] // ((Hh // ws) * (Ww // ws))
    x = windows.reshape(Bb, Hh // ws, Ww // ws, ws, ws, -1)
    x = jnp.transpose(x, (0, 1, 3, 2, 4, 5))
    return x.reshape(Bb, Hh, Ww, -1)


def _window_partition_np(x, ws):
    Bb, Hh, Ww, Cc = x.shape
    x = x.reshape(Bb, Hh // ws, ws, Ww // ws, ws, Cc)
    x = np.transpose(x, (0, 1, 3, 2, 4, 5))
    return x.reshape(-1, ws, ws, Cc)


def make_aligned_relative_position_index(pws0, pws1):
    coords_h = np.arange(pws0)
    coords_w = np.arange(pws1)
    xx, yy = np.meshgrid(coords_h, coords_w, indexing="xy")   # torch meshgrid 'xy'
    coords = np.stack([xx, yy])
    coords_flatten = coords.reshape(2, -1)
    rel = coords_flatten[:, :, None] - coords_flatten[:, None, :]
    rel = rel.transpose(1, 2, 0).copy()
    rel[..., 0] += pws0 - 1
    rel[..., 1] += pws1 - 1
    rel[..., 0] *= 2 * pws1 - 1
    idx = rel.sum(-1)
    P = pws0 * pws1
    aligned = idx.reshape(pws0, pws1, 1, 1, P)
    aligned = np.tile(aligned, (1, 1, 2, 2, 1))
    aligned = aligned.transpose(0, 2, 1, 3, 4).reshape(4 * P, P)
    return aligned.astype(np.int32)


def calculate_mask_np(Hh, Ww, ws, shift):
    pws = ws // 2
    img_mask = np.zeros((1, Hh, Ww, 1), np.float32)
    slices = (slice(0, -ws), slice(-ws, -shift), slice(-shift, None))
    cnt = 0
    for hs in slices:
        for wsl in slices:
            img_mask[:, hs, wsl, :] = cnt
            cnt += 1
    mask_windows = _window_partition_np(img_mask, ws).reshape(-1, ws * ws)
    pm = np.zeros((1, Hh // 2, Ww // 2, 1), np.float32)
    pslices = (slice(0, -pws), slice(-pws, -shift // 2), slice(-shift // 2, None))
    cnt = 0
    for hs in pslices:
        for wsl in pslices:
            pm[:, hs, wsl, :] = cnt
            cnt += 1
    permuted_windows = _window_partition_np(pm, pws).reshape(-1, pws * pws)
    attn_mask = mask_windows[:, :, None] - permuted_windows[:, None, :]
    attn_mask = np.where(attn_mask != 0, -100.0, 0.0).astype(np.float32)
    return attn_mask                                            # (nw, n, n/4)


def psa_reference(xw, params, mask):
    b_, n, c = xw.shape
    nh, hd = NUM_HEADS, HEAD_DIM
    x_flat = xw.reshape(b_ * n, c)
    kv_lin = x_flat @ params["w_kv"] + params["b_kv"]
    q_lin = x_flat @ params["w_q"] + params["b_q"]
    kv = kv_lin.reshape(b_, PWS, 2, PWS, 2, 2, c // 4)
    kv = jnp.transpose(kv, (0, 1, 3, 5, 2, 4, 6)).reshape(b_, n // 4, 2, nh, hd)
    kv = jnp.transpose(kv, (2, 0, 3, 1, 4))
    k, v = kv[0], kv[1]                                           # (b_, nh, n/4, hd)
    q = jnp.transpose(q_lin.reshape(b_, n, nh, hd), (0, 2, 1, 3))  # (b_, nh, n, hd)
    rel_bias = params["rpb_table"][params["rel_index"].reshape(-1)]
    rel_bias = rel_bias.reshape(n, n // 4, nh)
    rel_bias = jnp.transpose(rel_bias, (2, 0, 1)).astype(jnp.float32)
    attn = jnp.einsum("bhnd,bhmd->bhnm", q * SCALE, k) + rel_bias[None]
    if mask is not None:
        nw = mask.shape[0]
        attn = attn.reshape(b_ // nw, nw, nh, n, n // 4) + mask[None, :, None].astype(jnp.float32)
        attn = attn.reshape(b_, nh, n, n // 4)
    attn = jax.nn.softmax(attn, axis=-1)
    out = jnp.einsum("bhnm,bhmd->bhnd", attn, v)
    out = jnp.transpose(out, (0, 2, 1, 3)).reshape(b_, n, c)
    y = out.reshape(b_ * n, c) @ params["w_proj"] + params["b_proj"]
    return y.reshape(b_, n, c)


def layernorm_ref(y, gamma, beta, eps=LN_EPS):
    mu = jnp.mean(y, axis=-1, keepdims=True)
    var = jnp.mean((y - mu) ** 2, axis=-1, keepdims=True)
    return (y - mu) * jax.lax.rsqrt(var + eps) * gamma + beta


@jax.jit
def pwb_forward_ref(x, params, attn_mask):
    Bb, Ll, Cc = x.shape
    img = x.reshape(Bb, H, W, Cc)
    if SHIFT > 0:
        img = jnp.roll(img, shift=(-SHIFT, -SHIFT), axis=(1, 2))
    xw = window_partition(img, WINDOW_SIZE).reshape(-1, N, Cc)
    yw = xw + layernorm_ref(psa_reference(xw, params, attn_mask),
                            params["ln_gamma"], params["ln_beta"])
    y = window_reverse(yw, WINDOW_SIZE, H, W)
    if SHIFT > 0:
        y = jnp.roll(y, shift=(SHIFT, SHIFT), axis=(1, 2))
    return y.reshape(Bb, Ll, Cc)


# ----------------------------- main -------------------------------------------------------
if __name__ == "__main__":
    key = jax.random.PRNGKey(0)
    ks = jax.random.split(key, 10)
    num_rel = (2 * PWS - 1) * (2 * PWS - 1)
    params = {
        # weights stored pre-transposed: y = x @ W + b   (W: (Cin, Cout))
        "w_q": jax.random.normal(ks[0], (DIM, DIM), jnp.float32) * 0.05,
        "b_q": jax.random.normal(ks[1], (DIM,), jnp.float32) * 0.02,
        "w_kv": jax.random.normal(ks[2], (DIM, DIM // 2), jnp.float32) * 0.05,
        "b_kv": jax.random.normal(ks[3], (DIM // 2,), jnp.float32) * 0.02,
        "w_proj": jax.random.normal(ks[4], (DIM, DIM), jnp.float32) * 0.05,
        "b_proj": jax.random.normal(ks[5], (DIM,), jnp.float32) * 0.02,
        "rpb_table": jax.random.normal(ks[6], (num_rel, NUM_HEADS), jnp.float32) * 0.02,
        "rel_index": jnp.asarray(make_aligned_relative_position_index(PWS, PWS)),
        "ln_gamma": 1.0 + jax.random.normal(ks[8], (DIM,), jnp.float32) * 0.02,
        "ln_beta": jax.random.normal(ks[9], (DIM,), jnp.float32) * 0.02,
    }
    x = jax.random.normal(ks[7], (B, L, DIM), jnp.float32)
    attn_mask = (jnp.asarray(calculate_mask_np(H, W, WINDOW_SIZE, SHIFT))
                 if SHIFT > 0 else None)

    # All packed/block-diag constants are built once, outside the per-token forward.
    consts = prepare_pwb_constants(params, attn_mask, B)

    out = jax.block_until_ready(pwb_forward_pallas(x, consts))
    ref = jax.block_until_ready(pwb_forward_ref(x, params, attn_mask))

    assert out.shape == (B, L, DIM), out.shape
    max_err = float(jnp.max(jnp.abs(out - ref)))
    assert max_err < 5e-2, f"mismatch vs reference: {max_err}"
    print("KERNEL_OK")
</pallas_src>

<mosaic_0001>
module attributes {stable_mosaic.version = 11 : i64} {
  func.func @_pwb_packed_kernel(%arg0: memref<64x256xf32, #tpu.memory_space<vmem>>, %arg1: memref<64x512xf32, #tpu.memory_space<vmem>>, %arg2: memref<64x64xbf16, #tpu.memory_space<vmem>>, %arg3: memref<256x256xbf16, #tpu.memory_space<vmem>>, %arg4: memref<1x256xf32, #tpu.memory_space<vmem>>, %arg5: memref<256x256xbf16, #tpu.memory_space<vmem>>, %arg6: memref<1x256xf32, #tpu.memory_space<vmem>>, %arg7: memref<256x256xbf16, #tpu.memory_space<vmem>>, %arg8: memref<1x256xf32, #tpu.memory_space<vmem>>, %arg9: memref<512x64xbf16, #tpu.memory_space<vmem>>, %arg10: memref<512x256xf32, #tpu.memory_space<vmem>>, %arg11: memref<256x256xbf16, #tpu.memory_space<vmem>>, %arg12: memref<1x256xf32, #tpu.memory_space<vmem>>, %arg13: memref<256x256xf32, #tpu.memory_space<vmem>>, %arg14: memref<1x256xf32, #tpu.memory_space<vmem>>, %arg15: memref<1x256xf32, #tpu.memory_space<vmem>>, %arg16: memref<64x256xf32, #tpu.memory_space<vmem>>) attributes {dimension_semantics = [], scalar_prefetch = 0 : i64, scratch_operands = 0 : i64, tpu.core_type = #tpu.core_type<tc>} {
    %c0 = arith.constant 0 : index
    %c0_0 = arith.constant 0 : index
    %0 = vector.load %arg0[%c0, %c0_0] : memref<64x256xf32, #tpu.memory_space<vmem>>, vector<64x256xf32>
    %1 = arith.truncf %0 : vector<64x256xf32> to vector<64x256xbf16>
    %c0_1 = arith.constant 0 : index
    %c0_2 = arith.constant 0 : index
    %2 = vector.load %arg2[%c0_1, %c0_2] : memref<64x64xbf16, #tpu.memory_space<vmem>>, vector<64x64xbf16>
    %cst = arith.constant dense<0.000000e+00> : vector<64x256xf32>
    %3 = tpu.matmul %2, %1, %cst {dimension_numbers = #tpu.dot_dimension_numbers<[1], [0], [0], [1], [0, 0, 1, 1], [], []>} : vector<64x64xbf16>, vector<64x256xbf16>, vector<64x256xf32> -> vector<64x256xf32>
    %4 = arith.truncf %3 : vector<64x256xf32> to vector<64x256xbf16>
    %c0_3 = arith.constant 0 : index
    %c0_4 = arith.constant 0 : index
    %5 = vector.load %arg3[%c0_3, %c0_4] : memref<256x256xbf16, #tpu.memory_space<vmem>>, vector<256x256xbf16>
    %cst_5 = arith.constant dense<0.000000e+00> : vector<64x256xf32>
    %6 = tpu.matmul %1, %5, %cst_5 {dimension_numbers = #tpu.dot_dimension_numbers<[1], [0], [0], [1], [0, 0, 1, 1], [], []>} : vector<64x256xbf16>, vector<256x256xbf16>, vector<64x256xf32> -> vector<64x256xf32>
    %c0_6 = arith.constant 0 : index
    %c0_7 = arith.constant 0 : index
    %7 = vector.load %arg4[%c0_6, %c0_7] : memref<1x256xf32, #tpu.memory_space<vmem>>, vector<1x256xf32>
    %8 = vector.broadcast %7 : vector<1x256xf32> to vector<64x256xf32>
    %9 = arith.addf %6, %8 : vector<64x256xf32>
    %c0_8 = arith.constant 0 : index
    %c0_9 = arith.constant 0 : index
    %10 = vector.load %arg5[%c0_8, %c0_9] : memref<256x256xbf16, #tpu.memory_space<vmem>>, vector<256x256xbf16>
    %cst_10 = arith.constant dense<0.000000e+00> : vector<64x256xf32>
    %11 = tpu.matmul %4, %10, %cst_10 {dimension_numbers = #tpu.dot_dimension_numbers<[1], [0], [0], [1], [0, 0, 1, 1], [], []>} : vector<64x256xbf16>, vector<256x256xbf16>, vector<64x256xf32> -> vector<64x256xf32>
    %c0_11 = arith.constant 0 : index
    %c0_12 = arith.constant 0 : index
    %12 = vector.load %arg6[%c0_11, %c0_12] : memref<1x256xf32, #tpu.memory_space<vmem>>, vector<1x256xf32>
    %13 = vector.broadcast %12 : vector<1x256xf32> to vector<64x256xf32>
    %14 = arith.addf %11, %13 : vector<64x256xf32>
    %c0_13 = arith.constant 0 : index
    %c0_14 = arith.constant 0 : index
    %15 = vector.load %arg7[%c0_13, %c0_14] : memref<256x256xbf16, #tpu.memory_space<vmem>>, vector<256x256xbf16>
    %cst_15 = arith.constant dense<0.000000e+00> : vector<64x256xf32>
    %16 = tpu.matmul %4, %15, %cst_15 {dimension_numbers = #tpu.dot_dimension_numbers<[1], [0], [0], [1], [0, 0, 1, 1], [], []>} : vector<64x256xbf16>, vector<256x256xbf16>, vector<64x256xf32> -> vector<64x256xf32>
    %c0_16 = arith.constant 0 : index
    %c0_17 = arith.constant 0 : index
    %17 = vector.load %arg8[%c0_16, %c0_17] : memref<1x256xf32, #tpu.memory_space<vmem>>, vector<1x256xf32>
    %18 = vector.broadcast %17 : vector<1x256xf32> to vector<64x256xf32>
    %19 = arith.addf %16, %18 : vector<64x256xf32>
    %c0_18 = arith.constant 0 : index
    %c0_19 = arith.constant 0 : index
    %20 = vector.load %arg10[%c0_18, %c0_19] : memref<512x256xf32, #tpu.memory_space<vmem>>, vector<512x256xf32>
    %c0_20 = arith.constant 0 : index
    %c0_21 = arith.constant 0 : index
    %21 = vector.load %arg9[%c0_20, %c0_21] : memref<512x64xbf16, #tpu.memory_space<vmem>>, vector<512x64xbf16>
    %22 = arith.truncf %14 : vector<64x256xf32> to vector<64x256xbf16>
    %cst_22 = arith.constant dense<0.000000e+00> : vector<512x256xf32>
    %23 = tpu.matmul %21, %22, %cst_22 {dimension_numbers = #tpu.dot_dimension_numbers<[1], [0], [0], [1], [0, 0, 1, 1], [], []>} : vector<512x64xbf16>, vector<64x256xbf16>, vector<512x256xf32> -> vector<512x256xf32>
    %24 = arith.mulf %23, %20 : vector<512x256xf32>
    %25 = arith.truncf %24 : vector<512x256xf32> to vector<512x256xbf16>
    %c0_23 = arith.constant 0 : index
    %c0_24 = arith.constant 0 : index
    %26 = vector.load %arg9[%c0_23, %c0_24] : memref<512x64xbf16, #tpu.memory_space<vmem>>, vector<512x64xbf16>
    %27 = arith.truncf %19 : vector<64x256xf32> to vector<64x256xbf16>
    %cst_25 = arith.constant dense<0.000000e+00> : vector<512x256xf32>
    %28 = tpu.matmul %26, %27, %cst_25 {dimension_numbers = #tpu.dot_dimension_numbers<[1], [0], [0], [1], [0, 0, 1, 1], [], []>} : vector<512x64xbf16>, vector<64x256xbf16>, vector<512x256xf32> -> vector<512x256xf32>
    %29 = arith.mulf %28, %20 : vector<512x256xf32>
    %30 = arith.truncf %29 : vector<512x256xf32> to vector<512x256xbf16>
    %31 = arith.truncf %9 : vector<64x256xf32> to vector<64x256xbf16>
    %cst_26 = arith.constant dense<0.000000e+00> : vector<64x512xf32>
    %32 = tpu.matmul %31, %25, %cst_26 {dimension_numbers = #tpu.dot_dimension_numbers<[1], [1], [0], [0], [0, 0, 1, 0], [], []>} : vector<64x256xbf16>, vector<512x256xbf16>, vector<64x512xf32> -> vector<64x512xf32>
    %c0_27 = arith.constant 0 : index
    %c0_28 = arith.constant 0 : index
    %33 = vector.load %arg1[%c0_27, %c0_28] : memref<64x512xf32, #tpu.memory_space<vmem>>, vector<64x512xf32>
    %34 = arith.addf %32, %33 : vector<64x512xf32>
    %cst_29 = arith.constant dense<0xFF800000> : vector<64xf32>
    %35 = vector.multi_reduction <maximumf>, %34, %cst_29 [1] : vector<64x512xf32> to vector<64xf32>
    %36 = vector.shape_cast %35 : vector<64xf32> to vector<64x1xf32>
    %37 = vector.broadcast %36 : vector<64x1xf32> to vector<64x512xf32>
    %38 = arith.subf %34, %37 : vector<64x512xf32>
    %39 = math.exp %38 : vector<64x512xf32>
    %40 = arith.truncf %39 : vector<64x512xf32> to vector<64x512xbf16>
    %cst_30 = arith.constant dense<0.000000e+00> : vector<64x256xf32>
    %41 = tpu.matmul %40, %30, %cst_30 {dimension_numbers = #tpu.dot_dimension_numbers<[1], [0], [0], [1], [0, 0, 1, 1], [], []>} : vector<64x512xbf16>, vector<512x256xbf16>, vector<64x256xf32> -> vector<64x256xf32>
    %cst_31 = arith.constant dense<0.000000e+00> : vector<64x256xf32>
    %42 = tpu.matmul %39, %20, %cst_31 {dimension_numbers = #tpu.dot_dimension_numbers<[1], [0], [0], [1], [0, 0, 1, 1], [], []>} : vector<64x512xf32>, vector<512x256xf32>, vector<64x256xf32> -> vector<64x256xf32>
    %43 = tpu.reciprocal %42 {approx = true} : vector<64x256xf32> -> vector<64x256xf32>
    %44 = arith.mulf %41, %43 : vector<64x256xf32>
    %45 = arith.truncf %44 : vector<64x256xf32> to vector<64x256xbf16>
    %c0_32 = arith.constant 0 : index
    %c0_33 = arith.constant 0 : index
    %46 = vector.load %arg11[%c0_32, %c0_33] : memref<256x256xbf16, #tpu.memory_space<vmem>>, vector<256x256xbf16>
    %cst_34 = arith.constant dense<0.000000e+00> : vector<64x256xf32>
    %47 = tpu.matmul %45, %46, %cst_34 {dimension_numbers = #tpu.dot_dimension_numbers<[1], [0], [0], [1], [0, 0, 1, 1], [], []>} : vector<64x256xbf16>, vector<256x256xbf16>, vector<64x256xf32> -> vector<64x256xf32>
    %c0_35 = arith.constant 0 : index
    %c0_36 = arith.constant 0 : index
    %48 = vector.load %arg12[%c0_35, %c0_36] : memref<1x256xf32, #tpu.memory_space<vmem>>, vector<1x256xf32>
    %49 = vector.broadcast %48 : vector<1x256xf32> to vector<64x256xf32>
    %50 = arith.addf %47, %49 : vector<64x256xf32>
    %c0_37 = arith.constant 0 : index
    %c0_38 = arith.constant 0 : index
    %51 = vector.load %arg13[%c0_37, %c0_38] : memref<256x256xf32, #tpu.memory_space<vmem>>, vector<256x256xf32>
    %cst_39 = arith.constant dense<0.000000e+00> : vector<64x256xf32>
    %52 = tpu.matmul %50, %51, %cst_39 {dimension_numbers = #tpu.dot_dimension_numbers<[1], [0], [0], [1], [0, 0, 1, 1], [], []>} : vector<64x256xf32>, vector<256x256xf32>, vector<64x256xf32> -> vector<64x256xf32>
    %cst_40 = arith.constant 3.125000e-02 : f32
    %53 = vector.broadcast %cst_40 : f32 to vector<64x256xf32>
    %54 = arith.mulf %52, %53 : vector<64x256xf32>
    %55 = arith.subf %50, %54 : vector<64x256xf32>
    %56 = arith.mulf %55, %55 : vector<64x256xf32>
    %cst_41 = arith.constant dense<0.000000e+00> : vector<64x256xf32>
    %57 = tpu.matmul %56, %51, %cst_41 {dimension_numbers = #tpu.dot_dimension_numbers<[1], [0], [0], [1], [0, 0, 1, 1], [], []>} : vector<64x256xf32>, vector<256x256xf32>, vector<64x256xf32> -> vector<64x256xf32>
    %cst_42 = arith.constant 3.125000e-02 : f32
    %58 = vector.broadcast %cst_42 : f32 to vector<64x256xf32>
    %59 = arith.mulf %57, %58 : vector<64x256xf32>
    %cst_43 = arith.constant 9.99999974E-6 : f32
    %60 = vector.broadcast %cst_43 : f32 to vector<64x256xf32>
    %61 = arith.addf %59, %60 : vector<64x256xf32>
    %62 = math.rsqrt %61 : vector<64x256xf32>
    %63 = arith.mulf %55, %62 : vector<64x256xf32>
    %c0_44 = arith.constant 0 : index
    %c0_45 = arith.constant 0 : index
    %64 = vector.load %arg14[%c0_44, %c0_45] : memref<1x256xf32, #tpu.memory_space<vmem>>, vector<1x256xf32>
    %65 = vector.broadcast %64 : vector<1x256xf32> to vector<64x256xf32>
    %66 = arith.mulf %63, %65 : vector<64x256xf32>
    %c0_46 = arith.constant 0 : index
    %c0_47 = arith.constant 0 : index
    %67 = vector.load %arg15[%c0_46, %c0_47] : memref<1x256xf32, #tpu.memory_space<vmem>>, vector<1x256xf32>
    %68 = vector.broadcast %67 : vector<1x256xf32> to vector<64x256xf32>
    %69 = arith.addf %66, %68 : vector<64x256xf32>
    %70 = arith.addf %0, %69 : vector<64x256xf32>
    %c0_48 = arith.constant 0 : index
    %c0_49 = arith.constant 0 : index
    %71 = vector.load %arg16[%c0_48, %c0_49] : memref<64x256xf32, #tpu.memory_space<vmem>>, vector<64x256xf32>
    tpu.vector_store %arg16[%c0_48, %c0_49], %70 {strides = array<i32>} : memref<64x256xf32, #tpu.memory_space<vmem>>, vector<64x256xf32>,
    return
  }
}

</mosaic_0001>

<bundles_post_ra>
// kernel: pwb_forward_pallas.1
= control target key start
LH: loop header
LB: loop body
LE: loop exit
PB: predicated region body
PF: predicated region fallthrough
CT: control target
= control target key end

     0   :  { %v8921_v3 = vmov 0   ;;  %vm106_vm0 = vcmask 523264   ;;  %s8903_s0 = inlined_call_operand.vmem [shape: f32[64,256], index: 0, kind: input, shape index: {}]   ;;  %s8904_s2 = inlined_call_operand.vmem [shape: bf16[64,64], index: 2, kind: input, shape index: {}]   ;;  %s8905_s3 = inlined_call_operand.vmem [shape: bf16[256,256], index: 3, kind: input, shape index: {}]   ;;  %s8906_s5 = inlined_call_operand.vmem [shape: bf16[256,256], index: 5, kind: input, shape index: {}]   ;;  %s8907_s7 = inlined_call_operand.vmem [shape: bf16[256,256], index: 7, kind: input, shape index: {}]   ;;  %s8908_s4 = inlined_call_operand.vmem [shape: f32[1,256], index: 4, kind: input, shape index: {}]   ;;  %s8909_s9 = inlined_call_operand.vmem [shape: bf16[512,64], index: 9, kind: input, shape index: {}]   ;;  %s8910_s6 = inlined_call_operand.vmem [shape: f32[1,256], index: 6, kind: input, shape index: {}]   ;;  %s8911_s8 = inlined_call_operand.vmem [shape: f32[1,256], index: 8, kind: input, shape index: {}]   ;;  %s8912_s10 = inlined_call_operand.vmem [shape: f32[512,256], index: 10, kind: input, shape index: {}]   ;;  %s8913_s1 = inlined_call_operand.vmem [shape: f32[64,512], index: 1, kind: input, shape index: {}]   ;;  %s8914_s11 = inlined_call_operand.vmem [shape: bf16[256,256], index: 11, kind: input, shape index: {}]   ;;  %s8915_s13 = inlined_call_operand.vmem [shape: f32[256,256], index: 13, kind: input, shape index: {}]   ;;  %s8916_s12 = inlined_call_operand.vmem [shape: f32[1,256], index: 12, kind: input, shape index: {}]   ;;  %s8917_s14 = inlined_call_operand.vmem [shape: f32[1,256], index: 14, kind: input, shape index: {}]   ;;  %s8918_s15 = inlined_call_operand.vmem [shape: f32[1,256], index: 15, kind: input, shape index: {}]   ;;  %s8919_s16 = inlined_call_operand.vmem [shape: f32[64,256], index: 16, kind: output, shape index: {}]  }
   0x1   :  { %9073 = sst [smem:[#allocation124_spill]] %s8903_s0  ;;  %151 = vmatprep.mubr.bf16.mxu0 %v8921_v3  ;;  %v4343_v24 = vld [vmem:[%s8905_s3 + $0x74] ss:$8 sps:$4 sm:$0xff]   ;;  %v4345_v25 = vld [vmem:[%s8905_s3 + $0x70] ss:$8 sps:$4 sm:$0xff]   ;;  %v4339_v30 = vld [vmem:[%s8904_s2] sm:$0xff]  }
   0x2   :  { %s9074_s23 = sld [smem:[#allocation124_spill]]  ;;  %v4346_v26 = vld [vmem:[%s8905_s3 + $0x64] ss:$8 sps:$4 sm:$0xff]   ;;  %404 = vmatprep.subr.bf16.mxu1 %v4343_v24  ;;  %v4348_v28 = vld [vmem:[%s8905_s3 + $0x60] ss:$8 sps:$4 sm:$0xff]   ;;  %v4341_v39 = vld [vmem:[%s8904_s2 + $0x10] sm:$0xff]  }
   0x3   :  { %405 = vmatpush1.bf16.msra.mxu1 %v4345_v25  ;;  %v4349_v29 = vld [vmem:[%s8905_s3 + $0x54] ss:$8 sps:$4 sm:$0xff]   ;;  %v4351_v31 = vld [vmem:[%s8905_s3 + $0x50] ss:$8 sps:$4 sm:$0xff]   ;;  %v4352_v32 = vld [vmem:[%s8905_s3 + $0x44] ss:$8 sps:$4 sm:$0xff]  }
   0x4   :  { %406 = vmatprep.subr.bf16.mxu1 %v4346_v26  ;;  %v4354_v33 = vld [vmem:[%s8905_s3 + $0x40] ss:$8 sps:$4 sm:$0xff]   ;;  %v4355_v34 = vld [vmem:[%s8905_s3 + $0x34] ss:$8 sps:$4 sm:$0xff]   ;;  %v4357_v36 = vld [vmem:[%s8905_s3 + $0x30] ss:$8 sps:$4 sm:$0xff]  }
   0x5   :  { %v4340_v35 = vld [vmem:[%s8904_s2 + $0x8] sm:$0xff]   ;;  %v4361_v40 = vld [vmem:[%s8905_s3 + $0x14] ss:$8 sps:$4 sm:$0xff]   ;;  %v4391_v41 = vld [vmem:[%s8906_s5 + $0x70] ss:$8 sps:$4 sm:$0xff]  }
   0x6   :  { %v4358_v37 = vld [vmem:[%s8905_s3 + $0x24] ss:$8 sps:$4 sm:$0xff]   ;;  %v4360_v38 = vld [vmem:[%s8905_s3 + $0x20] ss:$8 sps:$4 sm:$0xff]   ;;  %v4393_v42 = vld [vmem:[%s8906_s5 + $0x74] ss:$8 sps:$4 sm:$0xff]  }
   0x7   :  { %407 = vmatpush1.bf16.msra.mxu1 %v4348_v28  ;;  %v4363_v43 = vld [vmem:[%s8905_s3 + $0x10] ss:$8 sps:$4 sm:$0xff]   ;;  %v4364_v44 = vld [vmem:[%s8905_s3 + $0x4] ss:$8 sps:$4 sm:$0xff]   ;;  %v4397_v45 = vld [vmem:[%s8906_s5 + $0x60] ss:$8 sps:$4 sm:$0xff]  }
   0x8   :  { %v67_v0 = vld [vmem:[%s9074_s23 + $0x68] sm:$0xff]  ;;  %v69_v1 = vld [vmem:[%s9074_s23 + $0x78] sm:$0xff]  ;;  %v66_v2 = vld [vmem:[%s9074_s23 + $0x60] sm:$0xff]  ;;  %408 = vmatprep.subr.bf16.mxu1 %v4349_v29 }
   0x9   :  { %v4938_v4 = vpack.c.bf16 %v69_v1, %v67_v0  ;;  %v68_v5 = vld [vmem:[%s9074_s23 + $0x70] sm:$0xff]  ;;  %v63_v6 = vld [vmem:[%s9074_s23 + $0x48] sm:$0xff]  ;;  %v65_v7 = vld [vmem:[%s9074_s23 + $0x58] sm:$0xff] }
   0xa   :  { %v4949_v8 = vpack.c.bf16 %v68_v5, %v66_v2  ;;  %v4951_v9 = vpack.c.bf16 %v65_v7, %v63_v6  ;;  %v62_v10 = vld [vmem:[%s9074_s23 + $0x40] sm:$0xff]  ;;  %v64_v11 = vld [vmem:[%s9074_s23 + $0x50] sm:$0xff]  ;;  %v59_v12 = vld [vmem:[%s9074_s23 + $0x28] sm:$0xff] }
   0xb   :  { %127 = vmatprep.subr.bf16.mxu0 %v4938_v4  ;;  %v61_v13 = vld [vmem:[%s9074_s23 + $0x38] sm:$0xff]  ;;  %v4967_v14 = vpack.c.bf16 %v64_v11, %v62_v10  ;;  %v58_v15 = vld [vmem:[%s9074_s23 + $0x20] sm:$0xff]  ;;  %v55_v16 = vld [vmem:[%s9074_s23 + $0x8] sm:$0xff]  ;;  %409 = vmatpush1.bf16.msra.mxu1 %v4351_v31 }
   0xc   :  { %128 = vmatpush1.bf16.msra.mxu0 %v4949_v8  ;;  %v57_v17 = vld [vmem:[%s9074_s23 + $0x18] sm:$0xff]  ;;  %v4979_v18 = vpack.c.bf16 %v61_v13, %v59_v12  ;;  %v60_v19 = vld [vmem:[%s9074_s23 + $0x30] sm:$0xff]  ;;  %v54_v22 = vld [vmem:[%s9074_s23] sm:$0xff]  ;;  %410 = vmatprep.subr.bf16.mxu1 %v4352_v32 }
   0xd   :  { %129 = vmatprep.subr.bf16.mxu0 %v4951_v9  ;;  %v71_v20 = vpack.c.bf16 %v57_v17, %v55_v16  ;;  %v4985_v21 = vpack.c.bf16 %v60_v19, %v58_v15  ;;  %v56_v23 = vld [vmem:[%s9074_s23 + $0x10] sm:$0xff]  ;;  %v4399_v46 = vld [vmem:[%s8906_s5 + $0x64] ss:$8 sps:$4 sm:$0xff]   ;;  %v4366_v47 = vld [vmem:[%s8905_s3] ss:$8 sps:$4 sm:$0xff]  }
   0xe   :  { %v5004_v27 = vpack.c.bf16 %v56_v23, %v54_v22  ;;  %v4405_v48 = vld [vmem:[%s8906_s5 + $0x54] ss:$8 sps:$4 sm:$0xff]   ;;  %v4403_v50 = vld [vmem:[%s8906_s5 + $0x50] ss:$8 sps:$4 sm:$0xff]   ;;  %v4411_v52 = vld [vmem:[%s8906_s5 + $0x44] ss:$8 sps:$4 sm:$0xff]  }
   0xf   :  { %436 = vmatprep.mubr.bf16.mxu1 %v71_v20  ;;  %411 = vmatpush1.bf16.msra.mxu1 %v4354_v33  ;;  %v4367_v49 = vld [vmem:[%s8905_s3 + $0xf4] ss:$8 sps:$4 sm:$0xff]   ;;  %v4369_v53 = vld [vmem:[%s8905_s3 + $0xf0] ss:$8 sps:$4 sm:$0xff]   ;;  %v4370_v54 = vld [vmem:[%s8905_s3 + $0xe4] ss:$8 sps:$4 sm:$0xff]  }
  0x10   :  { %130 = vmatpush1.bf16.msra.mxu0 %v4967_v14  ;;  %412 = vmatprep.subr.bf16.mxu1 %v4355_v34  ;;  %v4342_v51 = vld [vmem:[%s8904_s2 + $0x18] sm:$0xff]   ;;  %v4409_v55 = vld [vmem:[%s8906_s5 + $0x40] ss:$8 sps:$4 sm:$0xff]   ;;  %v4423_v60 = vld [vmem:[%s8906_s5 + $0x24] ss:$8 sps:$4 sm:$0xff]  }
  0x11   :  { %131 = vmatprep.subr.bf16.mxu0 %v4979_v18  ;;  %v4417_v56 = vld [vmem:[%s8906_s5 + $0x34] ss:$8 sps:$4 sm:$0xff]   ;;  %v4372_v57 = vld [vmem:[%s8905_s3 + $0xe0] ss:$8 sps:$4 sm:$0xff]   ;;  %v4415_v59 = vld [vmem:[%s8906_s5 + $0x30] ss:$8 sps:$4 sm:$0xff]  }
  0x12   :  { %v4373_v58 = vld [vmem:[%s8905_s3 + $0xd4] ss:$8 sps:$4 sm:$0xff]   ;;  %v4375_v61 = vld [vmem:[%s8905_s3 + $0xd0] ss:$8 sps:$4 sm:$0xff]   ;;  %v4376_v62 = vld [vmem:[%s8905_s3 + $0xc4] ss:$8 sps:$4 sm:$0xff]  }
  0x13   :  { %413 = vmatpush1.bf16.msra.mxu1 %v4357_v36  ;;  %v4421_v63 = vld [vmem:[%s8906_s5 + $0x20] ss:$8 sps:$4 sm:$0xff]   ;;  %v4429_v0 = vld [vmem:[%s8906_s5 + $0x14] ss:$8 sps:$4 sm:$0xff]   ;;  %v4427_v5 = vld [vmem:[%s8906_s5 + $0x10] ss:$8 sps:$4 sm:$0xff]  }
  0x14   :  { %132 = vmatpush1.bf16.msra.mxu0 %v4985_v21  ;;  %414 = vmatprep.subr.bf16.mxu1 %v4358_v37  ;;  %v4378_v1 = vld [vmem:[%s8905_s3 + $0xc0] ss:$8 sps:$4 sm:$0xff]   ;;  %v4379_v2 = vld [vmem:[%s8905_s3 + $0xb4] ss:$8 sps:$4 sm:$0xff]   ;;  %v4435_v6 = vld [vmem:[%s8906_s5 + $0x4] ss:$8 sps:$4 sm:$0xff]  }
  0x15   :  { %133 = vmatprep.subr.bf16.mxu0 %v71_v20  ;;  %v4381_v7 = vld [vmem:[%s8905_s3 + $0xb0] ss:$8 sps:$4 sm:$0xff]   ;;  %v4382_v10 = vld [vmem:[%s8905_s3 + $0xa4] ss:$8 sps:$4 sm:$0xff]   ;;  %v4433_v11 = vld [vmem:[%s8906_s5] ss:$8 sps:$4 sm:$0xff]  }
  0x16   :  { %v4441_v12 = vld [vmem:[%s8906_s5 + $0xf4] ss:$8 sps:$4 sm:$0xff]   ;;  %v4384_v13 = vld [vmem:[%s8905_s3 + $0xa0] ss:$8 sps:$4 sm:$0xff]   ;;  %v4439_v16 = vld [vmem:[%s8906_s5 + $0xf0] ss:$8 sps:$4 sm:$0xff]  }
  0x17   :  { %415 = vmatpush1.bf16.msra.mxu1 %v4360_v38  ;;  %v4385_v15 = vld [vmem:[%s8905_s3 + $0x94] ss:$8 sps:$4 sm:$0xff]   ;;  %v4447_v17 = vld [vmem:[%s8906_s5 + $0xe4] ss:$8 sps:$4 sm:$0xff]   ;;  %v4387_v19 = vld [vmem:[%s8905_s3 + $0x90] ss:$8 sps:$4 sm:$0xff]  }
  0x18   :  { %134 = vmatpush1.bf16.msra.mxu0 %v5004_v27  ;;  %416 = vmatprep.subr.bf16.mxu1 %v4361_v40  ;;  %v4388_v20 = vld [vmem:[%s8905_s3 + $0x84] ss:$8 sps:$4 sm:$0xff]   ;;  %v4445_v22 = vld [vmem:[%s8906_s5 + $0xe0] ss:$8 sps:$4 sm:$0xff]   ;;  %v4453_v24 = vld [vmem:[%s8906_s5 + $0xd4] ss:$8 sps:$4 sm:$0xff]  }
  0x19   :  { %681 = vmatprep.subr.bf16.mxu0 %v4393_v42  ;;  %v4390_v23 = vld [vmem:[%s8905_s3 + $0x80] ss:$8 sps:$4 sm:$0xff]   ;;  %v4396_v25 = vld [vmem:[%s8907_s7 + $0x74] ss:$8 sps:$4 sm:$0xff]   ;;  %v4451_v26 = vld [vmem:[%s8906_s5 + $0xd0] ss:$8 sps:$4 sm:$0xff]  }
  0x1a   :  { %v4459_v28 = vld [vmem:[%s8906_s5 + $0xc4] ss:$8 sps:$4 sm:$0xff]   ;;  %v4394_v29 = vld [vmem:[%s8907_s7 + $0x70] ss:$8 sps:$4 sm:$0xff]   ;;  %v4457_v31 = vld [vmem:[%s8906_s5 + $0xc0] ss:$8 sps:$4 sm:$0xff]  }
  0x1b   :  { %4110 = vmatmul.mubr.msk.bf16.vlgmr.msra.gmra.mxu0 %vm106_vm0, %v4339_v30  ;;  %417 = vmatpush1.bf16.msra.mxu1 %v4363_v43  ;;  %v4402_v30 = vld [vmem:[%s8907_s7 + $0x64] ss:$8 sps:$4 sm:$0xff]   ;;  %v4465_v32 = vld [vmem:[%s8906_s5 + $0xb4] ss:$8 sps:$4 sm:$0xff]   ;;  %v4400_v33 = vld [vmem:[%s8907_s7 + $0x60] ss:$8 sps:$4 sm:$0xff]  }
  0x1c   :  { %161 = vmatprep.mubr.bf16.mxu0 %v8921_v3  ;;  %682 = vmatpush1.bf16.msra.mxu0 %v4391_v41  ;;  %v4408_v34 = vld [vmem:[%s8907_s7 + $0x54] ss:$8 sps:$4 sm:$0xff]   ;;  %v4414_v36 = vld [vmem:[%s8907_s7 + $0x44] ss:$8 sps:$4 sm:$0xff]   ;;  %v4469_v37 = vld [vmem:[%s8906_s5 + $0xa0] ss:$8 sps:$4 sm:$0xff]  }
  0x1d   :  { %683 = vmatprep.subr.bf16.mxu0 %v4399_v46  ;;  %418 = vmatprep.subr.bf16.mxu1 %v4364_v44  ;;  %v4477_v38 = vld [vmem:[%s8906_s5 + $0x94] ss:$8 sps:$4 sm:$0xff]   ;;  %v4475_v41 = vld [vmem:[%s8906_s5 + $0x90] ss:$8 sps:$4 sm:$0xff]   ;;  %v4426_v42 = vld [vmem:[%s8907_s7 + $0x24] ss:$8 sps:$4 sm:$0xff]  }
  0x1e   :  { %v4420_v40 = vld [vmem:[%s8907_s7 + $0x34] ss:$8 sps:$4 sm:$0xff]   ;;  %v4481_v43 = vld [vmem:[%s8906_s5 + $0x80] ss:$8 sps:$4 sm:$0xff]   ;;  %v4430_v46 = vld [vmem:[%s8907_s7 + $0x10] ss:$8 sps:$4 sm:$0xff]  }
  0x1f   :  { %419 = vmatpush1.bf16.msra.mxu1 %v4366_v47  ;;  %v4424_v44 = vld [vmem:[%s8907_s7 + $0x20] ss:$8 sps:$4 sm:$0xff]   ;;  %v4444_v47 = vld [vmem:[%s8907_s7 + $0xf4] ss:$8 sps:$4 sm:$0xff]  }
  0x20   :  { %684 = vmatpush1.bf16.msra.mxu0 %v4397_v45  ;;  %420 = vmatprep.subr.bf16.mxu1 %v4367_v49  ;;  %v4432_v45 = vld [vmem:[%s8907_s7 + $0x14] ss:$8 sps:$4 sm:$0xff]   ;;  %v4448_v49 = vld [vmem:[%s8907_s7 + $0xe0] ss:$8 sps:$4 sm:$0xff]  }
  0x21   :  { %685 = vmatprep.subr.bf16.mxu0 %v4405_v48  ;;  %v4442_v48 = vld [vmem:[%s8907_s7 + $0xf0] ss:$8 sps:$4 sm:$0xff]  }
  0x23   :  { %4111 = vmatmul.mubr.msk.bf16.gmra.mxu0 %vm106_vm0, %v4340_v35  ;;  %421 = vmatpush2.bf16.msra.mxu1 %v4369_v53  ;;  %v4463_v35 = vld [vmem:[%s8906_s5 + $0xb0] ss:$8 sps:$4 sm:$0xff]   ;;  %v4460_v53 = vld [vmem:[%s8907_s7 + $0xc0] ss:$8 sps:$4 sm:$0xff]  }
  0x24   :  { %171 = vmatprep.mubr.bf16.mxu0 %v8921_v3  ;;  %686 = vmatpush1.bf16.msra.mxu0 %v4403_v50  ;;  %v4456_v50 = vld [vmem:[%s8907_s7 + $0xd4] ss:$8 sps:$4 sm:$0xff]  }
  0x25   :  { %687 = vmatprep.subr.bf16.mxu0 %v4411_v52  ;;  %422 = vmatprep.subr.bf16.mxu1 %v4370_v54  ;;  %v4462_v52 = vld [vmem:[%s8907_s7 + $0xc4] ss:$8 sps:$4 sm:$0xff]   ;;  %v4468_v54 = vld [vmem:[%s8907_s7 + $0xb4] ss:$8 sps:$4 sm:$0xff]  }
  0x27   :  { %423 = vmatpush2.bf16.msra.mxu1 %v4372_v57  ;;  %v4472_v57 = vld [vmem:[%s8907_s7 + $0xa0] ss:$8 sps:$4 sm:$0xff]  }
  0x28   :  { %688 = vmatpush1.bf16.msra.mxu0 %v4409_v55  ;;  %424 = vmatprep.subr.bf16.mxu1 %v4373_v58  ;;  %v4466_v55 = vld [vmem:[%s8907_s7 + $0xb0] ss:$8 sps:$4 sm:$0xff]   ;;  %v4480_v58 = vld [vmem:[%s8907_s7 + $0x94] ss:$8 sps:$4 sm:$0xff]  }
  0x29   :  { %689 = vmatprep.subr.bf16.mxu0 %v4417_v56  ;;  %v4474_v56 = vld [vmem:[%s8907_s7 + $0xa4] ss:$8 sps:$4 sm:$0xff]  }
  0x2b   :  { %4112 = vmatmul.mubr.msk.bf16.gmra.mxu0 %vm106_vm0, %v4341_v39  ;;  %425 = vmatpush2.bf16.msra.mxu1 %v4375_v61  ;;  %v4412_v39 = vld [vmem:[%s8907_s7 + $0x40] ss:$8 sps:$4 sm:$0xff]  }
  0x2c   :  { %181 = vmatprep.mubr.bf16.mxu0 %v8921_v3  ;;  %690 = vmatpush1.bf16.msra.mxu0 %v4415_v59  ;;  %v4478_v59 = vld [vmem:[%s8907_s7 + $0x90] ss:$8 sps:$4 sm:$0xff]   ;;  %v4484_v61 = vld [vmem:[%s8907_s7 + $0x80] ss:$8 sps:$4 sm:$0xff]  }
  0x2d   :  { %691 = vmatprep.subr.bf16.mxu0 %v4423_v60  ;;  %426 = vmatprep.subr.bf16.mxu1 %v4376_v62  ;;  %v4486_v60 = vld [vmem:[%s8907_s7 + $0x84] ss:$8 sps:$4 sm:$0xff]  }
  0x2f   :  { %427 = vmatpush2.bf16.msra.mxu1 %v4378_v1 }
  0x30   :  { %692 = vmatpush1.bf16.msra.mxu0 %v4421_v63  ;;  %428 = vmatprep.subr.bf16.mxu1 %v4379_v2 }
  0x31   :  { %693 = vmatprep.subr.bf16.mxu0 %v4429_v0 }
  0x33   :  { %4113 = vmatmul.mubr.msk.bf16.gmra.mxu0 %vm106_vm0, %v4342_v51  ;;  %429 = vmatpush2.bf16.msra.mxu1 %v4381_v7  ;;  %v4454_v51 = vld [vmem:[%s8907_s7 + $0xd0] ss:$8 sps:$4 sm:$0xff]  }
  0x34   :  { %694 = vmatpush1.bf16.msra.mxu0 %v4427_v5  ;;  %430 = vmatprep.subr.bf16.mxu1 %v4382_v10 }
  0x35   :  { %695 = vmatprep.subr.bf16.mxu0 %v4435_v6 }
  0x37   :  { %431 = vmatpush2.bf16.msra.mxu1 %v4384_v13 }
  0x38   :  { %696 = vmatpush1.bf16.msra.mxu0 %v4433_v11  ;;  %432 = vmatprep.subr.bf16.mxu1 %v4385_v15 }
  0x39   :  { %697 = vmatprep.subr.bf16.mxu0 %v4441_v12 }
  0x3b   :  { %433 = vmatpush2.bf16.msra.mxu1 %v4387_v19 }
  0x3c   :  { %698 = vmatpush2.bf16.msra.mxu0 %v4439_v16  ;;  %434 = vmatprep.subr.bf16.mxu1 %v4388_v20 }
  0x3d   :  { %699 = vmatprep.subr.bf16.mxu0 %v4447_v17 }
  0x3f   :  { %435 = vmatpush2.bf16.msra.mxu1 %v4390_v23 }
  0x40   :  { %700 = vmatpush2.bf16.msra.mxu0 %v4445_v22  ;;  %958 = vmatprep.subr.bf16.mxu1 %v4396_v25 }
  0x41   :  { %701 = vmatprep.subr.bf16.mxu0 %v4453_v24 }
  0x42   :  { %437 = vmatmul.mubr.bf16.vlgmr.msra.gmra.mxu1 %v5004_v27  ;;  %v4471_v27 = vld [vmem:[%s8906_s5 + $0xa4] ss:$8 sps:$4 sm:$0xff]  }
  0x43   :  { %959 = vmatpush1.bf16.msra.mxu1 %v4394_v29  ;;  %446 = vmatprep.mubr.bf16.mxu1 %v4979_v18  ;;  %v4406_v18 = vld [vmem:[%s8907_s7 + $0x50] ss:$8 sps:$4 sm:$0xff]  }
  0x44   :  { %702 = vmatpush2.bf16.msra.mxu0 %v4451_v26  ;;  %960 = vmatprep.subr.bf16.mxu1 %v4402_v30  ;;  %v234_v30 = vlaneseq }
  0x45   :  { %703 = vmatprep.subr.bf16.mxu0 %v4459_v28 }
  0x47   :  { %961 = vmatpush1.bf16.msra.mxu1 %v4400_v33 }
  0x48   :  { %704 = vmatpush2.bf16.msra.mxu0 %v4457_v31  ;;  %962 = vmatprep.subr.bf16.mxu1 %v4408_v34  ;;  %v235_v31 = vshrl.u32 %v234_v30, 7 }
  0x49   :  { %705 = vmatprep.subr.bf16.mxu0 %v4465_v32  ;;  %v232_v32 = vld [vmem:[%s8908_s4] sm:$0x3] }
  0x4a   :  { %447 = vmatmul.mubr.bf16.gmra.mxu1 %v4985_v21  ;;  %v4483_v21 = vld [vmem:[%s8906_s5 + $0x84] ss:$8 sps:$4 sm:$0xff]   ;;  %v5317_v33 = vsub.s32 0, %v235_v31 }
  0x4b   :  { %963 = vmatpush1.bf16.msra.mxu1 %v4406_v18  ;;  %456 = vmatprep.mubr.bf16.mxu1 %v4951_v9  ;;  %v4418_v9 = vld [vmem:[%s8907_s7 + $0x30] ss:$8 sps:$4 sm:$0xff]  }
  0x4c   :  { %706 = vmatpush2.bf16.msra.mxu0 %v4463_v35  ;;  %964 = vmatprep.subr.bf16.mxu1 %v4414_v36  ;;  %9075 = vst [vmem:[#allocation2_spill] sm:$0xff] %v5317_v33  ;;  %v237_v34 = vrot.slane %v232_v32, %v5317_v33 }
  0x4d   :  { %707 = vmatprep.subr.bf16.mxu0 %v4471_v27 }
  0x4f   :  { %965 = vmatpush1.bf16.msra.mxu1 %v4412_v39  ;;  %v5324_v39 = vsub.s32 1, %v235_v31 }
  0x50   :  { %708 = vmatpush2.bf16.msra.mxu0 %v4469_v37  ;;  %966 = vmatprep.subr.bf16.mxu1 %v4420_v40 }
  0x51   :  { %709 = vmatprep.subr.bf16.mxu0 %v4477_v38  ;;  %9076 = vst [vmem:[#allocation3_spill] sm:$0xff] %v5324_v39 }
  0x52   :  { %457 = vmatmul.mubr.bf16.gmra.mxu1 %v4967_v14  ;;  %v4438_v14 = vld [vmem:[%s8907_s7 + $0x4] ss:$8 sps:$4 sm:$0xff]  }
  0x53   :  { %967 = vmatpush1.bf16.msra.mxu1 %v4418_v9  ;;  %466 = vmatprep.mubr.bf16.mxu1 %v4938_v4  ;;  %v4436_v4 = vld [vmem:[%s8907_s7] ss:$8 sps:$4 sm:$0xff]  }
  0x54   :  { %710 = vmatpush2.bf16.msra.mxu0 %v4475_v41  ;;  %968 = vmatprep.subr.bf16.mxu1 %v4426_v42 }
  0x55   :  { %711 = vmatprep.subr.bf16.mxu0 %v4483_v21  ;;  %v5329_v21 = vrot.slane %v232_v32, %v5324_v39 }
  0x57   :  { %969 = vmatpush1.bf16.msra.mxu1 %v4424_v44 }
  0x58   :  { %712 = vmatpush2.bf16.msra.mxu0 %v4481_v43  ;;  %970 = vmatprep.subr.bf16.mxu1 %v4432_v45 }
  0x5a   :  { %467 = vmatmul.mubr.bf16.gmra.mxu1 %v4949_v8  ;;  %v4450_v8 = vld [vmem:[%s8907_s7 + $0xe4] ss:$8 sps:$4 sm:$0xff]  }
  0x5b   :  { %971 = vmatpush1.bf16.msra.mxu1 %v4430_v46 }
  0x5c   :  { %972 = vmatprep.subr.bf16.mxu1 %v4438_v14 }
  0x5f   :  { %973 = vmatpush1.bf16.msra.mxu1 %v4436_v4 }
  0x60   :  { %974 = vmatprep.subr.bf16.mxu1 %v4444_v47 }
  0x63   :  { %975 = vmatpush2.bf16.msra.mxu1 %v4442_v48 }
  0x64   :  { %976 = vmatprep.subr.bf16.mxu1 %v4450_v8 }
  0x67   :  { %977 = vmatpush2.bf16.msra.mxu1 %v4448_v49 }
  0x68   :  { %978 = vmatprep.subr.bf16.mxu1 %v4456_v50 }
  0x6b   :  { %979 = vmatpush2.bf16.msra.mxu1 %v4454_v51 }
  0x6c   :  { %980 = vmatprep.subr.bf16.mxu1 %v4462_v52 }
  0x6f   :  { %981 = vmatpush2.bf16.msra.mxu1 %v4460_v53 }
  0x70   :  { %982 = vmatprep.subr.bf16.mxu1 %v4468_v54 }
  0x73   :  { %983 = vmatpush2.bf16.msra.mxu1 %v4466_v55 }
  0x74   :  { %984 = vmatprep.subr.bf16.mxu1 %v4474_v56 }
  0x77   :  { %985 = vmatpush2.bf16.msra.mxu1 %v4472_v57 }
  0x78   :  { %986 = vmatprep.subr.bf16.mxu1 %v4480_v58 }
  0x7b   :  { %987 = vmatpush2.bf16.msra.mxu1 %v4478_v59 }
  0x7c   :  { %988 = vmatprep.subr.bf16.mxu1 %v4486_v60 }
  0x7f   :  { %989 = vmatpush2.bf16.msra.mxu1 %v4484_v61 }
  0xdb   :  { %v153_v62 = vpop.f32.mrf.mxu0 }
  0xdd   :  { %v155_v63 = vpop.f32.mrf.mxu0 }
  0xdf   :  { %v157_v0 = vpop.f32.mrf.mxu0 }
  0xe0   :  { %v192_v5 = vpack.c.bf16 %v157_v0, %v153_v62 }
  0xe1   :  { %v159_v1 = vpop.f32.mrf.mxu0 }
  0xe2   :  { %v193_v2 = vpack.c.bf16 %v159_v1, %v155_v63 }
  0xe3   :  { %v163_v6 = vpop.f32.mrf.mxu0 }
  0xe4   :  { %713 = vmatprep.mubr.bf16.mxu0 %v193_v2  ;;  %990 = vmatprep.mubr.bf16.mxu1 %v193_v2 }
  0xe5   :  { %v165_v7 = vpop.f32.mrf.mxu0  ;;  %714 = vmatmul.mubr.bf16.vlgmr.msra.gmra.mxu0 %v192_v5  ;;  %991 = vmatmul.mubr.bf16.vlgmr.msra.gmra.mxu1 %v192_v5 }
  0xe7   :  { %v167_v10 = vpop.f32.mrf.mxu0 }
  0xe8   :  { %v194_v13 = vpack.c.bf16 %v167_v10, %v163_v6 }
  0xe9   :  { %v169_v11 = vpop.f32.mrf.mxu0 }
  0xea   :  { %v195_v12 = vpack.c.bf16 %v169_v11, %v165_v7 }
  0xeb   :  { %v173_v15 = vpop.f32.mrf.mxu0 }
  0xec   :  { %723 = vmatprep.mubr.bf16.mxu0 %v195_v12  ;;  %1000 = vmatprep.mubr.bf16.mxu1 %v195_v12 }
  0xed   :  { %v175_v16 = vpop.f32.mrf.mxu0  ;;  %724 = vmatmul.mubr.bf16.gmra.mxu0 %v194_v13  ;;  %1001 = vmatmul.mubr.bf16.gmra.mxu1 %v194_v13 }
  0xef   :  { %v177_v17 = vpop.f32.mrf.mxu0 }
  0xf0   :  { %v196_v22 = vpack.c.bf16 %v177_v17, %v173_v15 }
  0xf1   :  { %v179_v19 = vpop.f32.mrf.mxu0 }
  0xf2   :  { %v197_v20 = vpack.c.bf16 %v179_v19, %v175_v16 }
  0xf3   :  { %v183_v23 = vpop.f32.mrf.mxu0 }
  0xf4   :  { %733 = vmatprep.mubr.bf16.mxu0 %v197_v20  ;;  %1010 = vmatprep.mubr.bf16.mxu1 %v197_v20 }
  0xf5   :  { %v185_v24 = vpop.f32.mrf.mxu0  ;;  %734 = vmatmul.mubr.bf16.gmra.mxu0 %v196_v22  ;;  %1011 = vmatmul.mubr.bf16.gmra.mxu1 %v196_v22 }
  0xf7   :  { %v187_v25 = vpop.f32.mrf.mxu0 }
  0xf8   :  { %v198_v29 = vpack.c.bf16 %v187_v25, %v183_v23 }
  0xf9   :  { %v189_v26 = vpop.f32.mrf.mxu0 }
  0xfa   :  { %v199_v28 = vpack.c.bf16 %v189_v26, %v185_v24 }
  0xfc   :  { %743 = vmatprep.mubr.bf16.mxu0 %v199_v28  ;;  %1020 = vmatprep.mubr.bf16.mxu1 %v199_v28 }
  0xfd   :  { %744 = vmatmul.mubr.bf16.gmra.mxu0 %v198_v29  ;;  %1021 = vmatmul.mubr.bf16.gmra.mxu1 %v198_v29 }
  0xfe   :  { %1519 = vmatprep.mubr.bf16.mxu0 %v8921_v3  ;;  %2072 = vmatprep.mubr.bf16.mxu1 %v8921_v3 }
 0x102   :  { %v438_v35 = vpop.f32.mrf.mxu1 }
 0x103   :  { %v439_v27 = vadd.f32 %v438_v35, %v237_v34 }
 0x104   :  { %v5320_v18 = vpop.f32.mrf.mxu1 }
 0x106   :  { %v442_v36 = vpop.f32.mrf.mxu1 }
 0x107   :  { %v443_v37 = vadd.f32 %v442_v36, %v237_v34 }
 0x108   :  { %v5322_v38 = vpop.f32.mrf.mxu1 }
 0x109   :  { %v5326_v40 = vpack.c.bf16 %v443_v37, %v439_v27  ;;  %v509_v37 = vld [vmem:[%s8910_s6] sm:$0x3] }
 0x10a   :  { %v448_v41 = vpop.f32.mrf.mxu1 }
 0x10b   :  { %9077 = vst [vmem:[#allocation4_spill] sm:$0xff] %v5326_v40  ;;  %v449_v9 = vadd.f32 %v448_v41, %v237_v34  ;;  %v786_v41 = vld [vmem:[%s8911_s8] sm:$0x3] }
 0x10c   :  { %v450_v42 = vpop.f32.mrf.mxu1 }
 0x10d   :  { %v451_v43 = vadd.f32 %v450_v42, %v5329_v21 }
 0x10e   :  { %v452_v44 = vpop.f32.mrf.mxu1 }
 0x10f   :  { %v453_v45 = vadd.f32 %v452_v44, %v237_v34  ;;  %v791_v44 = vrot.slane %v786_v41, %v5317_v33 }
 0x110   :  { %v454_v46 = vpop.f32.mrf.mxu1 }
 0x111   :  { %v5332_v14 = vpack.c.bf16 %v453_v45, %v449_v9  ;;  %v455_v4 = vadd.f32 %v454_v46, %v5329_v21  ;;  %v518_v45 = vrot.slane %v509_v37, %v5324_v39  ;;  %v795_v46 = vrot.slane %v786_v41, %v5324_v39 }
 0x112   :  { %v458_v47 = vpop.f32.mrf.mxu1 }
 0x113   :  { %9078 = vst [vmem:[#allocation5_spill] sm:$0xff] %v5332_v14  ;;  %v5335_v48 = vpack.c.bf16 %v455_v4, %v451_v43  ;;  %v459_v8 = vadd.f32 %v458_v47, %v237_v34  ;;  %v514_v43 = vrot.slane %v509_v37, %v5317_v33 }
 0x114   :  { %v460_v49 = vpop.f32.mrf.mxu1 }
 0x115   :  { %9079 = vst [vmem:[#allocation6_spill] sm:$0xff] %v5335_v48  ;;  %v461_v50 = vadd.f32 %v460_v49, %v5329_v21 }
 0x116   :  { %v462_v51 = vpop.f32.mrf.mxu1 }
 0x117   :  { %v463_v52 = vadd.f32 %v462_v51, %v237_v34 }
 0x118   :  { %v464_v53 = vpop.f32.mrf.mxu1 }
 0x119   :  { %v5338_v54 = vpack.c.bf16 %v463_v52, %v459_v8  ;;  %v465_v55 = vadd.f32 %v464_v53, %v5329_v21 }
 0x11a   :  { %v468_v56 = vpop.f32.mrf.mxu1 }
 0x11b   :  { %9080 = vst [vmem:[#allocation7_spill] sm:$0xff] %v5338_v54  ;;  %v5341_v57 = vpack.c.bf16 %v465_v55, %v461_v50  ;;  %v469_v58 = vadd.f32 %v468_v56, %v237_v34  ;;  %v5908_v54 = vld [vmem:[%s8912_s10 + $0x140] sm:$0xff] }
 0x11c   :  { %v470_v59 = vpop.f32.mrf.mxu1  ;;  %9110 = vst [vmem:[#allocation36_spill] sm:$0xff] %v5908_v54 }
 0x11d   :  { %9081 = vst [vmem:[#allocation8_spill] sm:$0xff] %v5341_v57  ;;  %v471_v60 = vadd.f32 %v470_v59, %v5329_v21 }
 0x11e   :  { %v472_v61 = vpop.f32.mrf.mxu1 }
 0x11f   :  { %v473_v62 = vadd.f32 %v472_v61, %v237_v34 }
 0x120   :  { %v474_v63 = vpop.f32.mrf.mxu1 }
 0x121   :  { %v5344_v0 = vpack.c.bf16 %v473_v62, %v469_v58  ;;  %v475_v1 = vadd.f32 %v474_v63, %v5329_v21 }
 0x123   :  { %9082 = vst [vmem:[#allocation9_spill] sm:$0xff] %v5344_v0  ;;  %v5347_v2 = vpack.c.bf16 %v475_v1, %v471_v60 }
 0x125   :  { %9083 = vst [vmem:[#allocation10_spill] sm:$0xff] %v5347_v2 }
 0x1a5   :  { %v5349_v5 = vpop.f32.mrf.mxu0  ;;  %v5351_v6 = vpop.f32.mrf.mxu1 }
 0x1a7   :  { %v5353_v7 = vpop.f32.mrf.mxu0  ;;  %v5355_v10 = vpop.f32.mrf.mxu1 }
 0x1a9   :  { %v5357_v11 = vpop.f32.mrf.mxu0  ;;  %v5359_v12 = vpop.f32.mrf.mxu1 }
 0x1ab   :  { %v5361_v13 = vpop.f32.mrf.mxu0  ;;  %v5363_v15 = vpop.f32.mrf.mxu1 }
 0x1ad   :  { %v5365_v16 = vpop.f32.mrf.mxu0  ;;  %v5367_v17 = vpop.f32.mrf.mxu1 }
 0x1af   :  { %v727_v19 = vpop.f32.mrf.mxu0  ;;  %v1004_v20 = vpop.f32.mrf.mxu1 }
 0x1b1   :  { %v729_v22 = vpop.f32.mrf.mxu0  ;;  %v1006_v23 = vpop.f32.mrf.mxu1 }
 0x1b3   :  { %v731_v24 = vpop.f32.mrf.mxu0  ;;  %v1008_v25 = vpop.f32.mrf.mxu1 }
 0x1b4   :  { %v732_v60 = vadd.f32 %v731_v24, %v518_v45  ;;  %v728_v24 = vadd.f32 %v727_v19, %v518_v45  ;;  %v995_v19 = vadd.f32 %v5355_v10, %v795_v46 }
 0x1b5   :  { %v735_v26 = vpop.f32.mrf.mxu0  ;;  %v1012_v28 = vpop.f32.mrf.mxu1 }
 0x1b7   :  { %v737_v29 = vpop.f32.mrf.mxu0  ;;  %v1014_v30 = vpop.f32.mrf.mxu1 }
 0x1b8   :  { %v738_v63 = vadd.f32 %v737_v29, %v518_v45  ;;  %v1015_v1 = vadd.f32 %v1014_v30, %v795_v46  ;;  %v730_v29 = vadd.f32 %v729_v22, %v514_v43  ;;  %v1007_v30 = vadd.f32 %v1006_v23, %v791_v44 }
 0x1b9   :  { %v739_v31 = vpop.f32.mrf.mxu0  ;;  %v1016_v32 = vpop.f32.mrf.mxu1 }
 0x1ba   :  { %v740_v41 = vadd.f32 %v739_v31, %v514_v43  ;;  %v1017_v33 = vadd.f32 %v1016_v32, %v791_v44  ;;  %v722_v32 = vadd.f32 %v5361_v13, %v518_v45  ;;  %v997_v13 = vadd.f32 %v5359_v12, %v791_v44 }
 0x1bb   :  { %v741_v34 = vpop.f32.mrf.mxu0  ;;  %v1018_v35 = vpop.f32.mrf.mxu1  ;;  %v9084_v12 = vmov 0  }
 0x1bc   :  { %v742_v8 = vadd.f32 %v741_v34, %v518_v45  ;;  %v1019_v49 = vadd.f32 %v1018_v35, %v795_v46  ;;  %v1009_v35 = vadd.f32 %v1008_v25, %v795_v46  ;;  %v999_v25 = vadd.f32 %v5363_v15, %v795_v46 }
 0x1bd   :  { %v745_v27 = vpop.f32.mrf.mxu0  ;;  %v1022_v36 = vpop.f32.mrf.mxu1 }
 0x1be   :  { %v746_v61 = vadd.f32 %v745_v27, %v514_v43  ;;  %v1023_v62 = vadd.f32 %v1022_v36, %v791_v44  ;;  %v1005_v27 = vadd.f32 %v1004_v20, %v795_v46  ;;  %v2033_v23 = vpack.c.bf16 %v999_v25, %v995_v19 }
 0x1bf   :  { %v747_v9 = vpop.f32.mrf.mxu0  ;;  %v1024_v42 = vpop.f32.mrf.mxu1 }
 0x1c0   :  { %v748_v55 = vadd.f32 %v747_v9, %v518_v45  ;;  %v1025_v56 = vadd.f32 %v1024_v42, %v795_v46  ;;  %v736_v9 = vadd.f32 %v735_v26, %v514_v43  ;;  %v1013_v42 = vadd.f32 %v1012_v28, %v791_v44  ;;  %v4490_v28 = vld [vmem:[%s8909_s9 + $0x18] sm:$0xff]  }
 0x1c1   :  { %v749_v4 = vpop.f32.mrf.mxu0  ;;  %v1026_v47 = vpop.f32.mrf.mxu1  ;;  %v1003_v26 = vadd.f32 %v5367_v17, %v791_v44  ;;  %v993_v17 = vadd.f32 %v5351_v6, %v791_v44  ;;  %v4489_v6 = vld [vmem:[%s8909_s9 + $0x10] sm:$0xff]  }
 0x1c2   :  { %v750_v50 = vadd.f32 %v749_v4, %v514_v43  ;;  %v1027_v51 = vadd.f32 %v1026_v47, %v791_v44  ;;  %v1228_v4 = vpack.c.bf16 %v742_v8, %v738_v63  ;;  %v2037_v47 = vpack.c.bf16 %v1019_v49, %v1015_v1  ;;  %v4492_v44 = vld [vmem:[%s8909_s9 + $0x28] sm:$0xff]   ;;  %v4506_v63 = vld [vmem:[%s8909_s9 + $0x98] sm:$0xff]   ;;  %v4507_v1 = vld [vmem:[%s8909_s9 + $0xa0] sm:$0xff]  }
 0x1c3   :  { %v751_v52 = vpop.f32.mrf.mxu0  ;;  %v1028_v53 = vpop.f32.mrf.mxu1  ;;  %v1227_v36 = vpack.c.bf16 %v740_v41, %v736_v9  ;;  %v2036_v31 = vpack.c.bf16 %v1017_v33, %v1013_v42  ;;  %v1226_v8 = vpack.c.bf16 %v732_v60, %v728_v24  ;;  %v2035_v49 = vpack.c.bf16 %v1009_v35, %v1005_v27  ;;  %v4503_v60 = vld [vmem:[%s8909_s9 + $0x80] sm:$0xff]   ;;  %v4509_v41 = vld [vmem:[%s8909_s9 + $0xb0] sm:$0xff]  }
 0x1c4   :  { %v752_v58 = vadd.f32 %v751_v52, %v518_v45  ;;  %v1029_v59 = vadd.f32 %v1028_v53, %v795_v46  ;;  %v1229_v39 = vpack.c.bf16 %v750_v50, %v746_v61  ;;  %v2038_v34 = vpack.c.bf16 %v1027_v51, %v1023_v62  ;;  %v4494_v46 = vld [vmem:[%s8909_s9 + $0x38] sm:$0xff]   ;;  %v4495_v50 = vld [vmem:[%s8909_s9 + $0x40] sm:$0xff]   ;;  %v4496_v51 = vld [vmem:[%s8909_s9 + $0x48] sm:$0xff]  }
 0x1c5   :  { %v720_v33 = vadd.f32 %v5357_v11, %v514_v43  ;;  %v2034_v15 = vpack.c.bf16 %v1007_v30, %v1003_v26  ;;  %v2032_v10 = vpack.c.bf16 %v997_v13, %v993_v17  ;;  %v4487_v11 = vld [vmem:[%s8909_s9] sm:$0xff]   ;;  %v4497_v52 = vld [vmem:[%s8909_s9 + $0x50] sm:$0xff]   ;;  %v4498_v53 = vld [vmem:[%s8909_s9 + $0x58] sm:$0xff]   ;;  %v445_v13 = vadd.f32 %v5322_v38, %v5329_v21 }
 0x1c6   :  { %v1230_v37 = vpack.c.bf16 %v752_v58, %v748_v55  ;;  %v2039_v3 = vpack.c.bf16 %v1029_v59, %v1025_v56  ;;  %v4499_v55 = vld [vmem:[%s8909_s9 + $0x60] sm:$0xff]   ;;  %v4500_v56 = vld [vmem:[%s8909_s9 + $0x68] sm:$0xff]   ;;  %v4501_v58 = vld [vmem:[%s8909_s9 + $0x70] sm:$0xff]  }
 0x1c7   :  { %v4502_v59 = vld [vmem:[%s8909_s9 + $0x78] sm:$0xff]   ;;  %v4504_v61 = vld [vmem:[%s8909_s9 + $0x88] sm:$0xff]   ;;  %v4505_v62 = vld [vmem:[%s8909_s9 + $0x90] sm:$0xff]  }
 0x1c8   :  { %1495 = vmatprep.subr.bf16.mxu0 %v1230_v37  ;;  %2048 = vmatprep.subr.bf16.mxu1 %v2039_v3  ;;  %v726_v3 = vadd.f32 %v5365_v16, %v514_v43  ;;  %v716_v16 = vadd.f32 %v5349_v5, %v514_v43  ;;  %v4488_v5 = vld [vmem:[%s8909_s9 + $0x8] sm:$0xff]   ;;  %v4491_v43 = vld [vmem:[%s8909_s9 + $0x20] sm:$0xff]   ;;  %v1033_v24 = vld [vmem:[%s8912_s10 + $0x10] sm:$0xff] }
 0x1c9   :  { %1496 = vmatpush1.bf16.msra.mxu0 %v1229_v39  ;;  %2049 = vmatpush1.bf16.msra.mxu1 %v2038_v34  ;;  %v718_v39 = vadd.f32 %v5353_v7, %v518_v45  ;;  %v4493_v45 = vld [vmem:[%s8909_s9 + $0x30] sm:$0xff]   ;;  %v4508_v37 = vld [vmem:[%s8909_s9 + $0xa8] sm:$0xff]   ;;  %v4510_v34 = vld [vmem:[%s8909_s9 + $0xb8] sm:$0xff]  }
 0x1ca   :  { %1497 = vmatprep.subr.bf16.mxu0 %v1228_v4  ;;  %2050 = vmatprep.subr.bf16.mxu1 %v2037_v47  ;;  %v1225_v20 = vpack.c.bf16 %v730_v29, %v726_v3  ;;  %v1223_v7 = vpack.c.bf16 %v720_v33, %v716_v16  ;;  %v4511_v35 = vld [vmem:[%s8909_s9 + $0xc0] sm:$0xff]   ;;  %v1032_v29 = vld [vmem:[%s8912_s10 + $0x8] sm:$0xff]  ;;  %v5783_v38 = vld [vmem:[%s8912_s10 + $0xd8] sm:$0xff] }
 0x1cb   :  { %v1224_v22 = vpack.c.bf16 %v722_v32, %v718_v39  ;;  %v1031_v9 = vld [vmem:[%s8912_s10] sm:$0xff]  ;;  %v4512_v32 = vld [vmem:[%s8909_s9 + $0xc8] sm:$0xff]  }
 0x1cd   :  { %1498 = vmatpush1.bf16.msra.mxu0 %v1227_v36  ;;  %2051 = vmatpush1.bf16.msra.mxu1 %v2036_v31  ;;  %v1034_v31 = vld [vmem:[%s8912_s10 + $0x18] sm:$0xff] }
 0x1ce   :  { %1499 = vmatprep.subr.bf16.mxu0 %v1226_v8  ;;  %2052 = vmatprep.subr.bf16.mxu1 %v2035_v49 }
 0x1d1   :  { %1500 = vmatpush1.bf16.msra.mxu0 %v1225_v20  ;;  %2053 = vmatpush1.bf16.msra.mxu1 %v2034_v15 }
 0x1d2   :  { %1501 = vmatprep.subr.bf16.mxu0 %v1224_v22  ;;  %2054 = vmatprep.subr.bf16.mxu1 %v2033_v23 }
 0x1d5   :  { %1502 = vmatpush1.bf16.msra.mxu0 %v1223_v7  ;;  %2055 = vmatpush1.bf16.msra.mxu1 %v2032_v10  ;;  %v1035_v10 = vld [vmem:[%s8912_s10 + $0x20] sm:$0xff] }
 0x1d8   :  { %4242 = vmatmul.mubr.msk.bf16.vlgmr.msra.gmra.mxu0 %vm106_vm0, %v4487_v11  ;;  %4274 = vmatmul.mubr.msk.bf16.vlgmr.msra.gmra.mxu1 %vm106_vm0, %v4487_v11 }
 0x1d9   :  { %1529 = vmatprep.mubr.bf16.mxu0 %v9084_v12  ;;  %2082 = vmatprep.mubr.bf16.mxu1 %v9084_v12 }
 0x1e0   :  { %4243 = vmatmul.mubr.msk.bf16.gmra.mxu0 %vm106_vm0, %v4488_v5  ;;  %4275 = vmatmul.mubr.msk.bf16.gmra.mxu1 %vm106_vm0, %v4488_v5  ;;  %v1037_v5 = vld [vmem:[%s8912_s10 + $0x30] sm:$0xff] }
 0x1e1   :  { %1539 = vmatprep.mubr.bf16.mxu0 %v9084_v12  ;;  %2092 = vmatprep.mubr.bf16.mxu1 %v9084_v12 }
 0x1e8   :  { %4244 = vmatmul.mubr.msk.bf16.gmra.mxu0 %vm106_vm0, %v4489_v6  ;;  %4276 = vmatmul.mubr.msk.bf16.gmra.mxu1 %vm106_vm0, %v4489_v6 }
 0x1e9   :  { %1549 = vmatprep.mubr.bf16.mxu0 %v9084_v12  ;;  %2102 = vmatprep.mubr.bf16.mxu1 %v9084_v12 }
 0x1f0   :  { %4245 = vmatmul.mubr.msk.bf16.gmra.mxu0 %vm106_vm0, %v4490_v28  ;;  %4277 = vmatmul.mubr.msk.bf16.gmra.mxu1 %vm106_vm0, %v4490_v28  ;;  %v1036_v28 = vld [vmem:[%s8912_s10 + $0x28] sm:$0xff] }
 0x1f1   :  { %1559 = vmatprep.mubr.bf16.mxu0 %v9084_v12  ;;  %2112 = vmatprep.mubr.bf16.mxu1 %v9084_v12 }
 0x1f8   :  { %4246 = vmatmul.mubr.msk.bf16.gmra.mxu0 %vm106_vm0, %v4491_v43  ;;  %4278 = vmatmul.mubr.msk.bf16.gmra.mxu1 %vm106_vm0, %v4491_v43 }
 0x1f9   :  { %1569 = vmatprep.mubr.bf16.mxu0 %v9084_v12  ;;  %2122 = vmatprep.mubr.bf16.mxu1 %v9084_v12 }
 0x200   :  { %4247 = vmatmul.mubr.msk.bf16.gmra.mxu0 %vm106_vm0, %v4492_v44  ;;  %4279 = vmatmul.mubr.msk.bf16.gmra.mxu1 %vm106_vm0, %v4492_v44 }
 0x201   :  { %1579 = vmatprep.mubr.bf16.mxu0 %v9084_v12  ;;  %2132 = vmatprep.mubr.bf16.mxu1 %v9084_v12 }
 0x208   :  { %4248 = vmatmul.mubr.msk.bf16.gmra.mxu0 %vm106_vm0, %v4493_v45  ;;  %4280 = vmatmul.mubr.msk.bf16.gmra.mxu1 %vm106_vm0, %v4493_v45  ;;  %v1038_v45 = vld [vmem:[%s8912_s10 + $0x38] sm:$0xff] }
 0x209   :  { %1589 = vmatprep.mubr.bf16.mxu0 %v9084_v12  ;;  %2142 = vmatprep.mubr.bf16.mxu1 %v9084_v12 }
 0x210   :  { %4249 = vmatmul.mubr.msk.bf16.gmra.mxu0 %vm106_vm0, %v4494_v46  ;;  %4281 = vmatmul.mubr.msk.bf16.gmra.mxu1 %vm106_vm0, %v4494_v46  ;;  %v4513_v46 = vld [vmem:[%s8909_s9 + $0xd0] sm:$0xff]  }
 0x211   :  { %1599 = vmatprep.mubr.bf16.mxu0 %v9084_v12  ;;  %2152 = vmatprep.mubr.bf16.mxu1 %v9084_v12 }
 0x218   :  { %4250 = vmatmul.mubr.msk.bf16.gmra.mxu0 %vm106_vm0, %v4495_v50  ;;  %4282 = vmatmul.mubr.msk.bf16.gmra.mxu1 %vm106_vm0, %v4495_v50 }
 0x219   :  { %1609 = vmatprep.mubr.bf16.mxu0 %v9084_v12  ;;  %2162 = vmatprep.mubr.bf16.mxu1 %v9084_v12 }
 0x220   :  { %4251 = vmatmul.mubr.msk.bf16.gmra.mxu0 %vm106_vm0, %v4496_v51  ;;  %4283 = vmatmul.mubr.msk.bf16.gmra.mxu1 %vm106_vm0, %v4496_v51 }
 0x221   :  { %1619 = vmatprep.mubr.bf16.mxu0 %v9084_v12  ;;  %2172 = vmatprep.mubr.bf16.mxu1 %v9084_v12 }
 0x228   :  { %4252 = vmatmul.mubr.msk.bf16.gmra.mxu0 %vm106_vm0, %v4497_v52  ;;  %4284 = vmatmul.mubr.msk.bf16.gmra.mxu1 %vm106_vm0, %v4497_v52 }
 0x229   :  { %1629 = vmatprep.mubr.bf16.mxu0 %v9084_v12  ;;  %2182 = vmatprep.mubr.bf16.mxu1 %v9084_v12 }
 0x230   :  { %4253 = vmatmul.mubr.msk.bf16.gmra.mxu0 %vm106_vm0, %v4498_v53  ;;  %4285 = vmatmul.mubr.msk.bf16.gmra.mxu1 %vm106_vm0, %v4498_v53 }
 0x231   :  { %1639 = vmatprep.mubr.bf16.mxu0 %v9084_v12  ;;  %2192 = vmatprep.mubr.bf16.mxu1 %v9084_v12 }
 0x238   :  { %4254 = vmatmul.mubr.msk.bf16.gmra.mxu0 %vm106_vm0, %v4499_v55  ;;  %4286 = vmatmul.mubr.msk.bf16.gmra.mxu1 %vm106_vm0, %v4499_v55 }
 0x239   :  { %1649 = vmatprep.mubr.bf16.mxu0 %v9084_v12  ;;  %2202 = vmatprep.mubr.bf16.mxu1 %v9084_v12 }
 0x240   :  { %4255 = vmatmul.mubr.msk.bf16.gmra.mxu0 %vm106_vm0, %v4500_v56  ;;  %4287 = vmatmul.mubr.msk.bf16.gmra.mxu1 %vm106_vm0, %v4500_v56 }
 0x241   :  { %1659 = vmatprep.mubr.bf16.mxu0 %v9084_v12  ;;  %2212 = vmatprep.mubr.bf16.mxu1 %v9084_v12 }
 0x248   :  { %4256 = vmatmul.mubr.msk.bf16.gmra.mxu0 %vm106_vm0, %v4501_v58  ;;  %4288 = vmatmul.mubr.msk.bf16.gmra.mxu1 %vm106_vm0, %v4501_v58 }
 0x249   :  { %1669 = vmatprep.mubr.bf16.mxu0 %v9084_v12  ;;  %2222 = vmatprep.mubr.bf16.mxu1 %v9084_v12 }
 0x250   :  { %4257 = vmatmul.mubr.msk.bf16.gmra.mxu0 %vm106_vm0, %v4502_v59  ;;  %4289 = vmatmul.mubr.msk.bf16.gmra.mxu1 %vm106_vm0, %v4502_v59 }
 0x251   :  { %1679 = vmatprep.mubr.bf16.mxu0 %v9084_v12  ;;  %2232 = vmatprep.mubr.bf16.mxu1 %v9084_v12 }
 0x258   :  { %4258 = vmatmul.mubr.msk.bf16.gmra.mxu0 %vm106_vm0, %v4503_v60  ;;  %4290 = vmatmul.mubr.msk.bf16.gmra.mxu1 %vm106_vm0, %v4503_v60  ;;  %v4518_v60 = vld [vmem:[%s8909_s9 + $0xf8] sm:$0xff]  }
 0x259   :  { %1689 = vmatprep.mubr.bf16.mxu0 %v9084_v12  ;;  %2242 = vmatprep.mubr.bf16.mxu1 %v9084_v12 }
 0x260   :  { %4259 = vmatmul.mubr.msk.bf16.gmra.mxu0 %vm106_vm0, %v4504_v61  ;;  %4291 = vmatmul.mubr.msk.bf16.gmra.mxu1 %vm106_vm0, %v4504_v61 }
 0x261   :  { %1699 = vmatprep.mubr.bf16.mxu0 %v9084_v12  ;;  %2252 = vmatprep.mubr.bf16.mxu1 %v9084_v12 }
 0x268   :  { %4260 = vmatmul.mubr.msk.bf16.gmra.mxu0 %vm106_vm0, %v4505_v62  ;;  %4292 = vmatmul.mubr.msk.bf16.gmra.mxu1 %vm106_vm0, %v4505_v62 }
 0x269   :  { %1709 = vmatprep.mubr.bf16.mxu0 %v9084_v12  ;;  %2262 = vmatprep.mubr.bf16.mxu1 %v9084_v12 }
 0x270   :  { %4261 = vmatmul.mubr.msk.bf16.gmra.mxu0 %vm106_vm0, %v4506_v63  ;;  %4293 = vmatmul.mubr.msk.bf16.gmra.mxu1 %vm106_vm0, %v4506_v63 }
 0x271   :  { %1719 = vmatprep.mubr.bf16.mxu0 %v9084_v12  ;;  %2272 = vmatprep.mubr.bf16.mxu1 %v9084_v12 }
 0x278   :  { %4262 = vmatmul.mubr.msk.bf16.gmra.mxu0 %vm106_vm0, %v4507_v1  ;;  %4294 = vmatmul.mubr.msk.bf16.gmra.mxu1 %vm106_vm0, %v4507_v1 }
 0x279   :  { %1729 = vmatprep.mubr.bf16.mxu0 %v9084_v12  ;;  %2282 = vmatprep.mubr.bf16.mxu1 %v9084_v12 }
 0x280   :  { %4263 = vmatmul.mubr.msk.bf16.gmra.mxu0 %vm106_vm0, %v4508_v37  ;;  %4295 = vmatmul.mubr.msk.bf16.gmra.mxu1 %vm106_vm0, %v4508_v37 }
 0x281   :  { %1739 = vmatprep.mubr.bf16.mxu0 %v9084_v12  ;;  %2292 = vmatprep.mubr.bf16.mxu1 %v9084_v12 }
 0x288   :  { %4264 = vmatmul.mubr.msk.bf16.gmra.mxu0 %vm106_vm0, %v4509_v41  ;;  %4296 = vmatmul.mubr.msk.bf16.gmra.mxu1 %vm106_vm0, %v4509_v41 }
 0x289   :  { %1749 = vmatprep.mubr.bf16.mxu0 %v9084_v12  ;;  %2302 = vmatprep.mubr.bf16.mxu1 %v9084_v12 }
 0x290   :  { %4265 = vmatmul.mubr.msk.bf16.gmra.mxu0 %vm106_vm0, %v4510_v34  ;;  %4297 = vmatmul.mubr.msk.bf16.gmra.mxu1 %vm106_vm0, %v4510_v34 }
 0x291   :  { %1759 = vmatprep.mubr.bf16.mxu0 %v9084_v12  ;;  %2312 = vmatprep.mubr.bf16.mxu1 %v9084_v12 }
 0x298   :  { %v1521_v4 = vpop.f32.mrf.mxu0  ;;  %4266 = vmatmul.mubr.msk.bf16.gmra.mxu0 %vm106_vm0, %v4511_v35  ;;  %4298 = vmatmul.mubr.msk.bf16.gmra.mxu1 %vm106_vm0, %v4511_v35  ;;  %v2074_v47 = vpop.f32.mrf.mxu1  ;;  %v1039_v35 = vld [vmem:[%s8912_s10 + $0x40] sm:$0xff] }
 0x299   :  { %1769 = vmatprep.mubr.bf16.mxu0 %v9084_v12  ;;  %2322 = vmatprep.mubr.bf16.mxu1 %v9084_v12  ;;  %v5573_v30 = vmul.f32 %v2074_v47, %v1031_v9  ;;  %v5581_v8 = vmul.f32 %v1521_v4, %v1031_v9  ;;  %v1041_v47 = vld [vmem:[%s8912_s10 + $0x50] sm:$0xff] }
 0x29a   :  { %v1523_v42 = vpop.f32.mrf.mxu0  ;;  %v2076_v27 = vpop.f32.mrf.mxu1 }
 0x29b   :  { %9085 = vst [vmem:[#allocation11_spill] sm:$0xff] %v5573_v30  ;;  %v5585_v3 = vmul.f32 %v2076_v27, %v1032_v29  ;;  %v5589_v39 = vmul.f32 %v1523_v42, %v1032_v29  ;;  %v1040_v42 = vld [vmem:[%s8912_s10 + $0x48] sm:$0xff]  ;;  %v1042_v29 = vld [vmem:[%s8912_s10 + $0x58] sm:$0xff] }
 0x29c   :  { %v1525_v36 = vpop.f32.mrf.mxu0  ;;  %v2078_v25 = vpop.f32.mrf.mxu1 }
 0x29d   :  { %v5583_v49 = vmul.f32 %v1525_v36, %v1033_v24  ;;  %9086 = vst [vmem:[#allocation12_spill] sm:$0xff] %v5585_v3  ;;  %v5587_v26 = vmul.f32 %v2078_v25, %v1033_v24  ;;  %v4514_v36 = vld [vmem:[%s8909_s9 + $0xd8] sm:$0xff]  }
 0x29e   :  { %v1527_v19 = vpop.f32.mrf.mxu0  ;;  %v2080_v33 = vpop.f32.mrf.mxu1 }
 0x29f   :  { %9087 = vst [vmem:[#allocation13_spill] sm:$0xff] %v5587_v26  ;;  %v5593_v20 = vmul.f32 %v1527_v19, %v1034_v31  ;;  %v5597_v22 = vmul.f32 %v2080_v33, %v1034_v31 }
 0x2a0   :  { %v1531_v23 = vpop.f32.mrf.mxu0  ;;  %4267 = vmatmul.mubr.msk.bf16.gmra.mxu0 %vm106_vm0, %v4512_v32  ;;  %4299 = vmatmul.mubr.msk.bf16.gmra.mxu1 %vm106_vm0, %v4512_v32  ;;  %v2084_v16 = vpop.f32.mrf.mxu1 }
 0x2a1   :  { %9088 = vst [vmem:[#allocation14_spill] sm:$0xff] %v5597_v22  ;;  %1779 = vmatprep.mubr.bf16.mxu0 %v9084_v12  ;;  %2332 = vmatprep.mubr.bf16.mxu1 %v9084_v12  ;;  %v5616_v43 = vmul.f32 %v2084_v16, %v1035_v10  ;;  %v5624_v51 = vmul.f32 %v1531_v23, %v1035_v10 }
 0x2a2   :  { %v1533_v11 = vpop.f32.mrf.mxu0  ;;  %v2086_v6 = vpop.f32.mrf.mxu1 }
 0x2a3   :  { %9089 = vst [vmem:[#allocation15_spill] sm:$0xff] %v5616_v43  ;;  %v5628_v53 = vmul.f32 %v2086_v6, %v1036_v28  ;;  %v5632_v56 = vmul.f32 %v1533_v11, %v1036_v28  ;;  %v4517_v6 = vld [vmem:[%s8909_s9 + $0xf0] sm:$0xff]  }
 0x2a4   :  { %v1535_v44 = vpop.f32.mrf.mxu0  ;;  %v2088_v50 = vpop.f32.mrf.mxu1 }
 0x2a5   :  { %v5626_v52 = vmul.f32 %v1535_v44, %v1037_v5  ;;  %9090 = vst [vmem:[#allocation16_spill] sm:$0xff] %v5628_v53  ;;  %v5630_v55 = vmul.f32 %v2088_v50, %v1037_v5 }
 0x2a6   :  { %v1537_v58 = vpop.f32.mrf.mxu0  ;;  %v2090_v59 = vpop.f32.mrf.mxu1 }
 0x2a7   :  { %9091 = vst [vmem:[#allocation17_spill] sm:$0xff] %v5630_v55  ;;  %v5636_v61 = vmul.f32 %v1537_v58, %v1038_v45  ;;  %v5640_v63 = vmul.f32 %v2090_v59, %v1038_v45  ;;  %v1043_v58 = vld [vmem:[%s8912_s10 + $0x60] sm:$0xff] }
 0x2a8   :  { %v1541_v1 = vpop.f32.mrf.mxu0  ;;  %4268 = vmatmul.mubr.msk.bf16.gmra.mxu0 %vm106_vm0, %v4513_v46  ;;  %4300 = vmatmul.mubr.msk.bf16.gmra.mxu1 %vm106_vm0, %v4513_v46  ;;  %v2094_v37 = vpop.f32.mrf.mxu1 }
 0x2a9   :  { %9092 = vst [vmem:[#allocation18_spill] sm:$0xff] %v5640_v63  ;;  %1789 = vmatprep.mubr.bf16.mxu0 %v9084_v12  ;;  %2342 = vmatprep.mubr.bf16.mxu1 %v9084_v12  ;;  %v5659_v24 = vmul.f32 %v2094_v37, %v1039_v35  ;;  %v5667_v32 = vmul.f32 %v1541_v1, %v1039_v35  ;;  %v1045_v1 = vld [vmem:[%s8912_s10 + $0x70] sm:$0xff]  ;;  %v1063_v63 = vld [vmem:[%s8912_s10 + $0x100] sm:$0xff] }
 0x2aa   :  { %v1543_v4 = vpop.f32.mrf.mxu0  ;;  %v2096_v9 = vpop.f32.mrf.mxu1 }
 0x2ab   :  { %9093 = vst [vmem:[#allocation19_spill] sm:$0xff] %v5659_v24  ;;  %v5671_v19 = vmul.f32 %v2096_v9, %v1040_v42  ;;  %v5675_v23 = vmul.f32 %v1543_v4, %v1040_v42  ;;  %v5706_v4 = vld [vmem:[%s8912_s10 + $0x68] sm:$0xff]  ;;  %v4515_v9 = vld [vmem:[%s8909_s9 + $0xe0] sm:$0xff]  }
 0x2ac   :  { %v1545_v27 = vpop.f32.mrf.mxu0  ;;  %v2098_v31 = vpop.f32.mrf.mxu1 }
 0x2ad   :  { %v5669_v25 = vmul.f32 %v1545_v27, %v1041_v47  ;;  %9094 = vst [vmem:[#allocation20_spill] sm:$0xff] %v5671_v19  ;;  %v5673_v33 = vmul.f32 %v2098_v31, %v1041_v47  ;;  %v5878_v19 = vld [vmem:[%s8912_s10 + $0xa0] sm:$0xff] }
 0x2ae   :  { %v1547_v16 = vpop.f32.mrf.mxu0  ;;  %v2100_v10 = vpop.f32.mrf.mxu1  ;;  %9106 = vst [vmem:[#allocation32_spill] sm:$0xff] %v5878_v19 }
 0x2af   :  { %9095 = vst [vmem:[#allocation21_spill] sm:$0xff] %v5673_v33  ;;  %v5679_v5 = vmul.f32 %v1547_v16, %v1042_v29  ;;  %v5683_v28 = vmul.f32 %v2100_v10, %v1042_v29  ;;  %v5723_v16 = vld [vmem:[%s8912_s10 + $0x78] sm:$0xff] }
 0x2b0   :  { %v1551_v44 = vpop.f32.mrf.mxu0  ;;  %4269 = vmatmul.mubr.msk.bf16.gmra.mxu0 %vm106_vm0, %v4514_v36  ;;  %4301 = vmatmul.mubr.msk.bf16.gmra.mxu1 %vm106_vm0, %v4514_v36  ;;  %v2104_v45 = vpop.f32.mrf.mxu1 }
 0x2b1   :  { %9096 = vst [vmem:[#allocation22_spill] sm:$0xff] %v5683_v28  ;;  %1799 = vmatprep.mubr.bf16.mxu0 %v9084_v12  ;;  %2352 = vmatprep.mubr.bf16.mxu1 %v9084_v12  ;;  %v5701_v35 = vmul.f32 %v2104_v45, %v1043_v58  ;;  %v5711_v27 = vmul.f32 %v1551_v44, %v1043_v58 }
 0x2b2   :  { %v5696_v59 = vpop.f32.mrf.mxu0  ;;  %v2106_v37 = vpop.f32.mrf.mxu1 }
 0x2b3   :  { %9097 = vst [vmem:[#allocation23_spill] sm:$0xff] %v5701_v35  ;;  %v5716_v36 = vmul.f32 %v2106_v37, %v5706_v4 }
 0x2b4   :  { %v1555_v47 = vpop.f32.mrf.mxu0  ;;  %v2108_v42 = vpop.f32.mrf.mxu1 }
 0x2b5   :  { %v5713_v29 = vmul.f32 %v1555_v47, %v1045_v1  ;;  %9098 = vst [vmem:[#allocation24_spill] sm:$0xff] %v5716_v36  ;;  %v5718_v31 = vmul.f32 %v2108_v42, %v1045_v1  ;;  %v441_v1 = vadd.f32 %v5320_v18, %v5329_v21  ;;  %v5778_v18 = vld [vmem:[%s8912_s10 + $0xf0] sm:$0xff]  ;;  %v5788_v21 = vld [vmem:[%s8912_s10 + $0xe8] sm:$0xff] }
 0x2b6   :  { %v5725_v10 = vpop.f32.mrf.mxu0  ;;  %v2110_v45 = vpop.f32.mrf.mxu1 }
 0x2b7   :  { %9099 = vst [vmem:[#allocation25_spill] sm:$0xff] %v5718_v31  ;;  %v5732_v58 = vmul.f32 %v2110_v45, %v5723_v16  ;;  %v4516_v45 = vld [vmem:[%s8909_s9 + $0xe8] sm:$0xff]   ;;  %v2586_v11 = vpack.c.bf16 %v445_v13, %v441_v1 }
 0x2b8   :  { %v5734_v37 = vpop.f32.mrf.mxu0  ;;  %4270 = vmatmul.mubr.msk.bf16.gmra.mxu0 %vm106_vm0, %v4515_v9  ;;  %4302 = vmatmul.mubr.msk.bf16.gmra.mxu1 %vm106_vm0, %v4515_v9 }
 0x2b9   :  { %9100 = vst [vmem:[#allocation26_spill] sm:$0xff] %v5732_v58  ;;  %1809 = vmatprep.mubr.bf16.mxu0 %v9084_v12  ;;  %2362 = vmatprep.mubr.bf16.mxu1 %v9084_v12  ;;  %v1047_v58 = vld [vmem:[%s8912_s10 + $0x80] sm:$0xff] }
 0x2ba   :  { %v5742_v47 = vpop.f32.mrf.mxu0 }
 0x2bc   :  { %v5744_v42 = vpop.f32.mrf.mxu0 }
 0x2be   :  { %v5749_v7 = vpop.f32.mrf.mxu0 }
 0x2c0   :  { %v5751_v62 = vpop.f32.mrf.mxu0  ;;  %4271 = vmatmul.mubr.msk.bf16.gmra.mxu0 %vm106_vm0, %v4516_v45  ;;  %4303 = vmatmul.mubr.msk.bf16.gmra.mxu1 %vm106_vm0, %v4516_v45 }
 0x2c1   :  { %1819 = vmatprep.mubr.bf16.mxu0 %v9084_v12  ;;  %2372 = vmatprep.mubr.bf16.mxu1 %v9084_v12 }
 0x2c2   :  { %v1573_v9 = vpop.f32.mrf.mxu0 }
 0x2c4   :  { %v5757_v34 = vpop.f32.mrf.mxu0 }
 0x2c6   :  { %v1577_v50 = vpop.f32.mrf.mxu0 }
 0x2c8   :  { %v1581_v44 = vpop.f32.mrf.mxu0  ;;  %4272 = vmatmul.mubr.msk.bf16.gmra.mxu0 %vm106_vm0, %v4517_v6  ;;  %4304 = vmatmul.mubr.msk.bf16.gmra.mxu1 %vm106_vm0, %v4517_v6  ;;  %v5803_v6 = vld [vmem:[%s8912_s10 + $0xc8] sm:$0xff] }
 0x2c9   :  { %1829 = vmatprep.mubr.bf16.mxu0 %v9084_v12  ;;  %2382 = vmatprep.mubr.bf16.mxu1 %v9084_v12 }
 0x2ca   :  { %v1583_v45 = vpop.f32.mrf.mxu0 }
 0x2cb   :  { %v1865_v55 = vmul.f32 %v1583_v45, %v5803_v6 }
 0x2cc   :  { %v1585_v17 = vpop.f32.mrf.mxu0 }
 0x2ce   :  { %v1587_v41 = vpop.f32.mrf.mxu0 }
 0x2cf   :  { %v1867_v30 = vmul.f32 %v1587_v41, %v5783_v38  ;;  %v1065_v41 = vld [vmem:[%s8912_s10 + $0x110] sm:$0xff] }
 0x2d0   :  { %v1591_v46 = vpop.f32.mrf.mxu0  ;;  %4273 = vmatmul.mubr.msk.bf16.gmra.mxu0 %vm106_vm0, %v4518_v60  ;;  %4305 = vmatmul.mubr.msk.bf16.gmra.mxu1 %vm106_vm0, %v4518_v60  ;;  %v5793_v60 = vld [vmem:[%s8912_s10 + $0xf8] sm:$0xff] }
 0x2d1   :  { %2657 = vmatprep.mubr.bf16.mxu0 %v2586_v11  ;;  %2730 = vmatprep.mubr.bf16.mxu1 %v2586_v11  ;;  %v5798_v11 = vld [vmem:[%s8912_s10 + $0xe0] sm:$0xff] }
 0x2d2   :  { %v1593_v12 = vpop.f32.mrf.mxu0  ;;  %v1868_v22 = vmul.f32 %v1591_v46, %v5798_v11  ;;  %v1981_v46 = vpack.c.bf16 %v1867_v30, %v1865_v55 }
 0x2d3   :  { %v1869_v26 = vmul.f32 %v1593_v12, %v5788_v21 }
 0x2d4   :  { %v1595_v13 = vpop.f32.mrf.mxu0 }
 0x2d5   :  { %v1870_v1 = vmul.f32 %v1595_v13, %v5778_v18 }
 0x2d6   :  { %v1597_v15 = vpop.f32.mrf.mxu0 }
 0x2d7   :  { %v1871_v3 = vmul.f32 %v1597_v15, %v5793_v60  ;;  %v1982_v53 = vpack.c.bf16 %v1870_v1, %v1868_v22  ;;  %v5822_v15 = vld [vmem:[%s8912_s10 + $0xd0] sm:$0xff]  ;;  %v5832_v22 = vld [vmem:[%s8912_s10 + $0xc0] sm:$0xff]  ;;  %v5850_v1 = vpop.f32.mrf.mxu1 }
 0x2d8   :  { %v1601_v43 = vpop.f32.mrf.mxu0  ;;  %v1866_v30 = vmul.f32 %v1585_v17, %v5822_v15 }
 0x2d9   :  { %v1983_v0 = vpack.c.bf16 %v1871_v3, %v1869_v26  ;;  %v5827_v3 = vld [vmem:[%s8912_s10 + $0xb8] sm:$0xff]  ;;  %v5834_v45 = vmul.f32 %v1601_v43, %v1063_v63  ;;  %v1864_v43 = vmul.f32 %v1581_v44, %v5832_v22  ;;  %v5861_v33 = vpop.f32.mrf.mxu1  ;;  %v5866_v44 = vld [vmem:[%s8912_s10 + $0xb0] sm:$0xff] }
 0x2da   :  { %v5814_v24 = vpop.f32.mrf.mxu0  ;;  %9101 = vst [vmem:[#allocation27_spill] sm:$0xff] %v5827_v3  ;;  %9103 = vst [vmem:[#allocation29_spill] sm:$0xff] %v5861_v33  ;;  %v1856_v33 = vmul.f32 %v5734_v37, %v1047_v58 }
 0x2db   :  { %2625 = vmatprep.subr.bf16.mxu0 %v1983_v0  ;;  %v5841_v0 = vld [vmem:[%s8912_s10 + $0xa8] sm:$0xff]  ;;  %9104 = vst [vmem:[#allocation30_spill] sm:$0xff] %v5866_v44 }
 0x2dc   :  { %v1605_v26 = vpop.f32.mrf.mxu0  ;;  %2626 = vmatpush1.bf16.xpose.msra.mxu0 %v1982_v53  ;;  %9102 = vst [vmem:[#allocation28_spill] sm:$0xff] %v5841_v0  ;;  %v1863_v53 = vmul.f32 %v1577_v50, %v5827_v3  ;;  %v1069_v50 = vld [vmem:[%s8912_s10 + $0x130] sm:$0xff] }
 0x2dd   :  { %v5836_v12 = vmul.f32 %v1605_v26, %v1065_v41  ;;  %2627 = vmatprep.subr.bf16.mxu0 %v1981_v46  ;;  %v1861_v41 = vmul.f32 %v1573_v9, %v5841_v0  ;;  %v1980_v46 = vpack.c.bf16 %v1866_v30, %v1864_v43  ;;  %v1067_v26 = vld [vmem:[%s8912_s10 + $0x120] sm:$0xff]  ;;  %v5871_v9 = vld [vmem:[%s8912_s10 + $0x98] sm:$0xff]  ;;  %v5873_v43 = vpop.f32.mrf.mxu1 }
 0x2de   :  { %v5844_v55 = vpop.f32.mrf.mxu0  ;;  %9105 = vst [vmem:[#allocation31_spill] sm:$0xff] %v5871_v9  ;;  %v1859_v2 = vmul.f32 %v5749_v7, %v5871_v9  ;;  %v5915_v7 = vld [vmem:[%s8912_s10 + $0x150] sm:$0xff] }
 0x2df   :  { %v1979_v13 = vpack.c.bf16 %v1863_v53, %v1861_v41  ;;  %v5887_v53 = vld [vmem:[%s8912_s10 + $0x88] sm:$0xff]  ;;  %v1862_v41 = vmul.f32 %v5757_v34, %v5866_v44  ;;  %v5893_v31 = vpop.f32.mrf.mxu1  ;;  %9111 = vst [vmem:[#allocation37_spill] sm:$0xff] %v5915_v7 }
 0x2e0   :  { %v1611_v63 = vpop.f32.mrf.mxu0  ;;  %9107 = vst [vmem:[#allocation33_spill] sm:$0xff] %v5887_v53  ;;  %9108 = vst [vmem:[#allocation34_spill] sm:$0xff] %v5893_v31 }
 0x2e1   :  { %v5880_v28 = vmul.f32 %v1611_v63, %v1067_v26  ;;  %v1049_v63 = vld [vmem:[%s8912_s10 + $0x90] sm:$0xff] }
 0x2e2   :  { %v5856_v17 = vpop.f32.mrf.mxu0  ;;  %v1858_v31 = vmul.f32 %v5744_v42, %v1049_v63  ;;  %v5950_v42 = vld [vmem:[%s8912_s10 + $0x160] sm:$0xff] }
 0x2e3   :  { %9115 = vst [vmem:[#allocation41_spill] sm:$0xff] %v5950_v42 }
 0x2e4   :  { %v1615_v30 = vpop.f32.mrf.mxu0  ;;  %2628 = vmatpush1.bf16.xpose.msra.mxu0 %v1980_v46 }
 0x2e5   :  { %v5882_v35 = vmul.f32 %v1615_v30, %v1069_v50  ;;  %2629 = vmatprep.subr.bf16.mxu0 %v1979_v13  ;;  %v1860_v13 = vmul.f32 %v5751_v62, %v5878_v19  ;;  %v5901_v50 = vpop.f32.mrf.mxu1  ;;  %v1857_v30 = vmul.f32 %v5742_v47, %v5887_v53 }
 0x2e6   :  { %v5891_v46 = vpop.f32.mrf.mxu0  ;;  %9109 = vst [vmem:[#allocation35_spill] sm:$0xff] %v5901_v50 }
 0x2e7   :  { %v1978_v34 = vpack.c.bf16 %v1862_v41, %v1860_v13  ;;  %v5917_v62 = vpop.f32.mrf.mxu1  ;;  %v1977_v47 = vpack.c.bf16 %v1859_v2, %v1857_v30  ;;  %v1855_v30 = vmul.f32 %v5725_v10, %v5723_v16  ;;  %v5957_v16 = vld [vmem:[%s8912_s10 + $0x170] sm:$0xff] }
 0x2e8   :  { %v1621_v26 = vpop.f32.mrf.mxu0  ;;  %9112 = vst [vmem:[#allocation38_spill] sm:$0xff] %v5917_v62  ;;  %9116 = vst [vmem:[#allocation42_spill] sm:$0xff] %v5957_v16 }
 0x2e9   :  { %v5922_v13 = vpop.f32.mrf.mxu1  ;;  %v5928_v57 = vmul.f32 %v1621_v26, %v5908_v54 }
 0x2ea   :  { %v5910_v36 = vpop.f32.mrf.mxu0  ;;  %9113 = vst [vmem:[#allocation39_spill] sm:$0xff] %v5922_v13 }
 0x2eb   :  { %v5936_v2 = vpop.f32.mrf.mxu1 }
 0x2ec   :  { %v1625_v41 = vpop.f32.mrf.mxu0  ;;  %2630 = vmatpush1.bf16.xpose.msra.mxu0 %v1978_v34  ;;  %9114 = vst [vmem:[#allocation40_spill] sm:$0xff] %v5936_v2 }
 0x2ed   :  { %v5931_v14 = vmul.f32 %v1625_v41, %v5915_v7  ;;  %2631 = vmatprep.subr.bf16.mxu0 %v1977_v47  ;;  %v5943_v54 = vpop.f32.mrf.mxu1  ;;  %v1853_v47 = vmul.f32 %v5696_v59, %v5706_v4  ;;  %v1976_v41 = vpack.c.bf16 %v1858_v31, %v1856_v33 }
 0x2ee   :  { %v5934_v9 = vpop.f32.mrf.mxu0 }
 0x2ef   :  { %v5959_v10 = vpop.f32.mrf.mxu1  ;;  %v1975_v37 = vpack.c.bf16 %v1855_v30, %v1853_v47 }
 0x2f0   :  { %v1631_v26 = vpop.f32.mrf.mxu0 }
 0x2f1   :  { %v5961_v53 = vpop.f32.mrf.mxu1  ;;  %v5964_v33 = vmul.f32 %v1631_v26, %v5950_v42 }
 0x2f2   :  { %v5952_v7 = vpop.f32.mrf.mxu0  ;;  %9117 = vst [vmem:[#allocation43_spill] sm:$0xff] %v5961_v53 }
 0x2f3   :  { %v5971_v31 = vpop.f32.mrf.mxu1 }
 0x2f4   :  { %v1635_v34 = vpop.f32.mrf.mxu0  ;;  %2632 = vmatpush1.bf16.xpose.msra.mxu0 %v1976_v41 }
 0x2f5   :  { %v5967_v59 = vmul.f32 %v1635_v34, %v5957_v16  ;;  %2633 = vmatprep.subr.bf16.mxu0 %v1975_v37  ;;  %v5977_v30 = vpop.f32.mrf.mxu1  ;;  %v9118_v34 = vpack.c.bf16 %v5713_v29, %v5711_v27  ;;  %v9119_v16 = vpack.c.bf16 %v5679_v5, %v5675_v23  ;;  %v9122_v29 = vpack.c.bf16 %v5669_v25, %v5667_v32 }
 0x2f6   :  { %v5969_v4 = vpop.f32.mrf.mxu0  ;;  %v9124_v5 = vpack.c.bf16 %v5636_v61, %v5632_v56  ;;  %v9128_v32 = vpack.c.bf16 %v5626_v52, %v5624_v51  ;;  %v6025_v25 = vmul.f32 %v5850_v1, %v1047_v58  ;;  %v6028_v56 = vmul.f32 %v5873_v43, %v1049_v63  ;;  %v6046_v43 = vld [vmem:[%s8912_s10 + $0x1f0] sm:$0xff] }
 0x2f7   :  { %v5981_v41 = vpop.f32.mrf.mxu1 }
 0x2f8   :  { %v5975_v44 = vpop.f32.mrf.mxu0  ;;  %9129 = vst [vmem:[#allocation50_spill] sm:$0xff] %v6025_v25  ;;  %9130 = vst [vmem:[#allocation51_spill] sm:$0xff] %v6028_v56 }
 0x2f9   :  { %v5988_v37 = vpop.f32.mrf.mxu1 }
 0x2fa   :  { %v5979_v47 = vpop.f32.mrf.mxu0 }
 0x2fb   :  { %v5995_v42 = vpop.f32.mrf.mxu1 }
 0x2fc   :  { %v5983_v26 = vpop.f32.mrf.mxu0  ;;  %2634 = vmatpush1.bf16.xpose.msra.mxu0 %v9118_v34 }
 0x2fd   :  { %2635 = vmatprep.subr.bf16.mxu0 %v9119_v16  ;;  %v5999_v19 = vpop.f32.mrf.mxu1 }
 0x2fe   :  { %v5993_v13 = vpop.f32.mrf.mxu0  ;;  %9120 = vst [vmem:[#allocation44_spill] sm:$0xff] %v5999_v19 }
 0x2ff   :  { %v6003_v40 = vpop.f32.mrf.mxu1 }
 0x300   :  { %v5997_v50 = vpop.f32.mrf.mxu0  ;;  %9121 = vst [vmem:[#allocation45_spill] sm:$0xff] %v6003_v40 }
 0x301   :  { %v6010_v23 = vpop.f32.mrf.mxu1 }
 0x302   :  { %v6001_v48 = vpop.f32.mrf.mxu0  ;;  %9123 = vst [vmem:[#allocation46_spill] sm:$0xff] %v6010_v23 }
 0x303   :  { %v6015_v34 = vpop.f32.mrf.mxu1 }
 0x304   :  { %v6005_v27 = vpop.f32.mrf.mxu0  ;;  %2636 = vmatpush1.bf16.xpose.msra.mxu0 %v9122_v29  ;;  %9125 = vst [vmem:[#allocation47_spill] sm:$0xff] %v6015_v34  ;;  %v9132_v29 = vpack.c.bf16 %v5593_v20, %v5589_v39  ;;  %v6051_v39 = vld [vmem:[%s8912_s10 + $0x1d8] sm:$0xff]  ;;  %v6056_v20 = vld [vmem:[%s8912_s10 + $0x1e8] sm:$0xff] }
 0x305   :  { %2637 = vmatprep.subr.bf16.mxu0 %v9124_v5  ;;  %v6017_v2 = vpop.f32.mrf.mxu1 }
 0x306   :  { %v1657_v16 = vpop.f32.mrf.mxu0  ;;  %9126 = vst [vmem:[#allocation48_spill] sm:$0xff] %v6017_v2  ;;  %v6076_v2 = vld [vmem:[%s8912_s10 + $0x1c8] sm:$0xff] }
 0x307   :  { %v6019_v40 = vpop.f32.mrf.mxu1 }
 0x308   :  { %v1661_v19 = vpop.f32.mrf.mxu0  ;;  %9127 = vst [vmem:[#allocation49_spill] sm:$0xff] %v6019_v40 }
 0x309   :  { %v6030_v61 = vpop.f32.mrf.mxu1 }
 0x30a   :  { %v1663_v3 = vpop.f32.mrf.mxu0  ;;  %9131 = vst [vmem:[#allocation52_spill] sm:$0xff] %v6030_v61  ;;  %v6071_v61 = vld [vmem:[%s8912_s10 + $0x1e0] sm:$0xff] }
 0x30b   :  { %v6037_v34 = vpop.f32.mrf.mxu1  ;;  %v1897_v56 = vmul.f32 %v1663_v3, %v6076_v2 }
 0x30c   :  { %v1665_v62 = vpop.f32.mrf.mxu0  ;;  %2638 = vmatpush1.bf16.xpose.msra.mxu0 %v9128_v32  ;;  %9133 = vst [vmem:[#allocation53_spill] sm:$0xff] %v6037_v34  ;;  %v9136_v32 = vpack.c.bf16 %v5583_v49, %v5581_v8 }
 0x30d   :  { %2639 = vmatprep.subr.bf16.mxu0 %v9132_v29  ;;  %v6039_v52 = vpop.f32.mrf.mxu1  ;;  %v6064_v29 = vld [vmem:[%s8912_s10 + $0x1f8] sm:$0xff] }
 0x30e   :  { %v1667_v5 = vpop.f32.mrf.mxu0  ;;  %9134 = vst [vmem:[#allocation54_spill] sm:$0xff] %v6039_v52 }
 0x30f   :  { %v6041_v1 = vpop.f32.mrf.mxu1  ;;  %v1899_v34 = vmul.f32 %v1667_v5, %v6051_v39  ;;  %v1097_v5 = vld [vmem:[%s8912_s10 + $0x210] sm:$0xff] }
 0x310   :  { %v1671_v51 = vpop.f32.mrf.mxu0  ;;  %9135 = vst [vmem:[#allocation55_spill] sm:$0xff] %v6041_v1 }
 0x311   :  { %v6066_v23 = vpop.f32.mrf.mxu1  ;;  %v1900_v52 = vmul.f32 %v1671_v51, %v6071_v61  ;;  %v6101_v51 = vld [vmem:[%s8912_s10 + $0x1d0] sm:$0xff]  ;;  %v1997_v3 = vpack.c.bf16 %v1899_v34, %v1897_v56 }
 0x312   :  { %v1673_v58 = vpop.f32.mrf.mxu0  ;;  %9137 = vst [vmem:[#allocation56_spill] sm:$0xff] %v6066_v23  ;;  %v1898_v34 = vmul.f32 %v1665_v62, %v6101_v51  ;;  %v1099_v62 = vld [vmem:[%s8912_s10 + $0x220] sm:$0xff] }
 0x313   :  { %v1901_v40 = vmul.f32 %v1673_v58, %v6056_v20 }
 0x314   :  { %v1675_v63 = vpop.f32.mrf.mxu0  ;;  %2640 = vmatpush1.bf16.xpose.msra.mxu0 %v9136_v32  ;;  %v6079_v32 = vpop.f32.mrf.mxu1 }
 0x315   :  { %v1902_v8 = vmul.f32 %v1675_v63, %v6046_v43  ;;  %9138 = vst [vmem:[#allocation57_spill] sm:$0xff] %v6079_v32  ;;  %v1095_v63 = vld [vmem:[%s8912_s10 + $0x200] sm:$0xff] }
 0x316   :  { %v1677_v49 = vpop.f32.mrf.mxu0  ;;  %v6085_v25 = vpop.f32.mrf.mxu1 }
 0x317   :  { %v1903_v23 = vmul.f32 %v1677_v49, %v6064_v29  ;;  %9139 = vst [vmem:[#allocation58_spill] sm:$0xff] %v6085_v25  ;;  %v1998_v53 = vpack.c.bf16 %v1902_v8, %v1900_v52  ;;  %v6113_v8 = vld [vmem:[%s8912_s10 + $0x1c0] sm:$0xff] }
 0x318   :  { %v1681_v1 = vpop.f32.mrf.mxu0  ;;  %v6096_v58 = vpop.f32.mrf.mxu1 }
 0x319   :  { %v1999_v0 = vpack.c.bf16 %v1903_v23, %v1901_v40  ;;  %9141 = vst [vmem:[#allocation60_spill] sm:$0xff] %v6096_v58  ;;  %v6106_v40 = vld [vmem:[%s8912_s10 + $0x1b8] sm:$0xff]  ;;  %v6115_v49 = vmul.f32 %v1681_v1, %v1095_v63  ;;  %v1896_v63 = vmul.f32 %v1661_v19, %v6113_v8  ;;  %v6150_v19 = vld [vmem:[%s8912_s10 + $0x1b0] sm:$0xff] }
 0x31a   :  { %v6091_v32 = vpop.f32.mrf.mxu0  ;;  %9142 = vst [vmem:[#allocation61_spill] sm:$0xff] %v6106_v40  ;;  %v6108_v52 = vpop.f32.mrf.mxu1  ;;  %9151 = vst [vmem:[#allocation70_spill] sm:$0xff] %v6150_v19 }
 0x31b   :  { %9140 = vst [vmem:[#allocation59_spill] sm:$0xff] %v6091_v32  ;;  %2641 = vmatprep.subr.bf16.mxu0 %v1999_v0  ;;  %9143 = vst [vmem:[#allocation62_spill] sm:$0xff] %v6108_v52  ;;  %v6122_v0 = vld [vmem:[%s8912_s10 + $0x1a8] sm:$0xff]  ;;  %v1895_v52 = vmul.f32 %v1657_v16, %v6106_v40  ;;  %v1996_v25 = vpack.c.bf16 %v1898_v34, %v1896_v63  ;;  %v1101_v16 = vld [vmem:[%s8912_s10 + $0x230] sm:$0xff] }
 0x31c   :  { %v1685_v23 = vpop.f32.mrf.mxu0  ;;  %2642 = vmatpush2.bf16.xpose.msra.mxu0 %v1998_v53  ;;  %9144 = vst [vmem:[#allocation63_spill] sm:$0xff] %v6115_v49  ;;  %v6127_v56 = vpop.f32.mrf.mxu1 }
 0x31d   :  { %v6117_v32 = vmul.f32 %v1685_v23, %v1097_v5  ;;  %2643 = vmatprep.subr.bf16.mxu0 %v1997_v3  ;;  %9147 = vst [vmem:[#allocation66_spill] sm:$0xff] %v6127_v56  ;;  %v1893_v23 = vmul.f32 %v6001_v48, %v6122_v0  ;;  %v6155_v48 = vld [vmem:[%s8912_s10 + $0x198] sm:$0xff] }
 0x31e   :  { %v6125_v53 = vpop.f32.mrf.mxu0  ;;  %v6133_v3 = vpop.f32.mrf.mxu1  ;;  %9152 = vst [vmem:[#allocation71_spill] sm:$0xff] %v6155_v48 }
 0x31f   :  { %9145 = vst [vmem:[#allocation64_spill] sm:$0xff] %v6117_v32  ;;  %9146 = vst [vmem:[#allocation65_spill] sm:$0xff] %v6125_v53  ;;  %v1995_v49 = vpack.c.bf16 %v1895_v52, %v1893_v23  ;;  %v6162_v32 = vld [vmem:[%s8912_s10 + $0x1a0] sm:$0xff]  ;;  %v6171_v52 = vld [vmem:[%s8912_s10 + $0x188] sm:$0xff] }
 0x320   :  { %v1691_v5 = vpop.f32.mrf.mxu0  ;;  %9148 = vst [vmem:[#allocation67_spill] sm:$0xff] %v6133_v3  ;;  %v6145_v1 = vpop.f32.mrf.mxu1  ;;  %9154 = vst [vmem:[#allocation73_spill] sm:$0xff] %v6162_v32  ;;  %v1891_v3 = vmul.f32 %v5993_v13, %v6155_v48  ;;  %v1105_v13 = vld [vmem:[%s8912_s10 + $0x250] sm:$0xff] }
 0x321   :  { %9150 = vst [vmem:[#allocation69_spill] sm:$0xff] %v6145_v1  ;;  %v6164_v56 = vmul.f32 %v1691_v5, %v1099_v62  ;;  %9157 = vst [vmem:[#allocation76_spill] sm:$0xff] %v6171_v52 }
 0x322   :  { %v6140_v53 = vpop.f32.mrf.mxu0  ;;  %v6157_v63 = vpop.f32.mrf.mxu1 }
 0x323   :  { %9149 = vst [vmem:[#allocation68_spill] sm:$0xff] %v6140_v53  ;;  %9153 = vst [vmem:[#allocation72_spill] sm:$0xff] %v6157_v63  ;;  %v1103_v53 = vld [vmem:[%s8912_s10 + $0x240] sm:$0xff] }
 0x324   :  { %v1695_v34 = vpop.f32.mrf.mxu0  ;;  %2644 = vmatpush2.bf16.xpose.msra.mxu0 %v1996_v25  ;;  %9155 = vst [vmem:[#allocation74_spill] sm:$0xff] %v6164_v56  ;;  %v1894_v25 = vmul.f32 %v6005_v27, %v6150_v19  ;;  %v6177_v63 = vpop.f32.mrf.mxu1  ;;  %v6294_v19 = vld [vmem:[%s8912_s10 + $0x138] sm:$0xff] }
 0x325   :  { %v6166_v58 = vmul.f32 %v1695_v34, %v1101_v16  ;;  %2645 = vmatprep.subr.bf16.mxu0 %v1995_v49  ;;  %9159 = vst [vmem:[#allocation78_spill] sm:$0xff] %v6177_v63  ;;  %v1892_v49 = vmul.f32 %v5997_v50, %v6162_v32  ;;  %v1889_v34 = vmul.f32 %v5979_v47, %v6171_v52  ;;  %v6202_v50 = vld [vmem:[%s8912_s10 + $0x190] sm:$0xff]  ;;  %v6207_v47 = vld [vmem:[%s8912_s10 + $0x178] sm:$0xff]  ;;  %9175 = vst [vmem:[#allocation94_spill] sm:$0xff] %v6294_v19 }
 0x326   :  { %v6175_v23 = vpop.f32.mrf.mxu0  ;;  %v6185_v16 = vpop.f32.mrf.mxu1  ;;  %9161 = vst [vmem:[#allocation80_spill] sm:$0xff] %v6202_v50  ;;  %9162 = vst [vmem:[#allocation81_spill] sm:$0xff] %v6207_v47  ;;  %v1887_v52 = vmul.f32 %v5969_v4, %v6207_v47  ;;  %v6251_v4 = vld [vmem:[%s8912_s10 + $0x270] sm:$0xff] }
 0x327   :  { %9156 = vst [vmem:[#allocation75_spill] sm:$0xff] %v6166_v58  ;;  %9158 = vst [vmem:[#allocation77_spill] sm:$0xff] %v6175_v23  ;;  %v1994_v27 = vpack.c.bf16 %v1894_v25, %v1892_v49  ;;  %v1993_v56 = vpack.c.bf16 %v1891_v3, %v1889_v34  ;;  %v6214_v58 = vld [vmem:[%s8912_s10 + $0x180] sm:$0xff]  ;;  %v6223_v3 = vld [vmem:[%s8912_s10 + $0x168] sm:$0xff]  ;;  %v1890_v34 = vmul.f32 %v5983_v26, %v6202_v50 }
 0x328   :  { %v1701_v62 = vpop.f32.mrf.mxu0  ;;  %9160 = vst [vmem:[#allocation79_spill] sm:$0xff] %v6185_v16  ;;  %v6197_v5 = vpop.f32.mrf.mxu1  ;;  %9164 = vst [vmem:[#allocation83_spill] sm:$0xff] %v6214_v58  ;;  %v6244_v50 = vld [vmem:[%s8912_s10 + $0x260] sm:$0xff] }
 0x329   :  { %v6216_v63 = vmul.f32 %v1701_v62, %v1103_v53  ;;  %9167 = vst [vmem:[#allocation86_spill] sm:$0xff] %v6223_v3  ;;  %9169 = vst [vmem:[#allocation88_spill] sm:$0xff] %v6244_v50 }
 0x32a   :  { %v6192_v23 = vpop.f32.mrf.mxu0  ;;  %v6209_v49 = vpop.f32.mrf.mxu1  ;;  %9170 = vst [vmem:[#allocation89_spill] sm:$0xff] %v6251_v4 }
 0x32b   :  { %9163 = vst [vmem:[#allocation82_spill] sm:$0xff] %v6209_v49  ;;  %9165 = vst [vmem:[#allocation84_spill] sm:$0xff] %v6216_v63 }
 0x32c   :  { %v1705_v25 = vpop.f32.mrf.mxu0  ;;  %2646 = vmatpush2.bf16.xpose.msra.mxu0 %v1994_v27  ;;  %v6229_v1 = vpop.f32.mrf.mxu1 }
 0x32d   :  { %v6218_v48 = vmul.f32 %v1705_v25, %v1105_v13  ;;  %2647 = vmatprep.subr.bf16.mxu0 %v1993_v56  ;;  %9168 = vst [vmem:[#allocation87_spill] sm:$0xff] %v6229_v1  ;;  %v1888_v56 = vmul.f32 %v5975_v44, %v6214_v58  ;;  %v1885_v25 = vmul.f32 %v5952_v7, %v6223_v3  ;;  %v6258_v7 = vld [vmem:[%s8912_s10 + $0x158] sm:$0xff] }
 0x32e   :  { %v6227_v27 = vpop.f32.mrf.mxu0  ;;  %v6237_v13 = vpop.f32.mrf.mxu1  ;;  %9171 = vst [vmem:[#allocation90_spill] sm:$0xff] %v6258_v7  ;;  %v9187_v1 = vpack.c.bf16 %v5882_v35, %v5880_v28  ;;  %v6375_v28 = vld [vmem:[%s8912_s10 + $0x2f0] sm:$0xff]  ;;  %v6380_v35 = vld [vmem:[%s8912_s10 + $0x2d8] sm:$0xff] }
 0x32f   :  { %9166 = vst [vmem:[#allocation85_spill] sm:$0xff] %v6218_v48  ;;  %v1992_v26 = vpack.c.bf16 %v1890_v34, %v1888_v56  ;;  %v1991_v53 = vpack.c.bf16 %v1887_v52, %v1885_v25  ;;  %v6271_v52 = vld [vmem:[%s8912_s10 + $0x148] sm:$0xff]  ;;  %9192 = vst [vmem:[#allocation108_spill] sm:$0xff] %v6375_v28 }
 0x330   :  { %v1711_v62 = vpop.f32.mrf.mxu0  ;;  %v6253_v44 = vpop.f32.mrf.mxu1  ;;  %9174 = vst [vmem:[#allocation93_spill] sm:$0xff] %v6271_v52  ;;  %9193 = vst [vmem:[#allocation109_spill] sm:$0xff] %v6380_v35 }
 0x331   :  { %v6263_v63 = vmul.f32 %v1711_v62, %v6244_v50  ;;  %v9176_v62 = vpack.c.bf16 %v5967_v59, %v5964_v33 }
 0x332   :  { %v6246_v49 = vpop.f32.mrf.mxu0  ;;  %v6260_v56 = vpop.f32.mrf.mxu1 }
 0x333   :  { %9172 = vst [vmem:[#allocation91_spill] sm:$0xff] %v6263_v63  ;;  %v6327_v63 = vld [vmem:[%s8912_s10 + $0x118] sm:$0xff] }
 0x334   :  { %v1715_v34 = vpop.f32.mrf.mxu0  ;;  %2648 = vmatpush2.bf16.xpose.msra.mxu0 %v1992_v26  ;;  %v6275_v47 = vpop.f32.mrf.mxu1  ;;  %v1883_v26 = vmul.f32 %v5934_v9, %v6258_v7  ;;  %9180 = vst [vmem:[#allocation98_spill] sm:$0xff] %v6327_v63 }
 0x335   :  { %v6266_v48 = vmul.f32 %v1715_v34, %v6251_v4  ;;  %2649 = vmatprep.subr.bf16.mxu0 %v1991_v53  ;;  %v1881_v53 = vmul.f32 %v5910_v36, %v6271_v52  ;;  %v6306_v36 = vld [vmem:[%s8912_s10 + $0x128] sm:$0xff]  ;;  %v1879_v52 = vmul.f32 %v5891_v46, %v6294_v19  ;;  %v9181_v46 = vpack.c.bf16 %v5931_v14, %v5928_v57 }
 0x336   :  { %v6273_v25 = vpop.f32.mrf.mxu0  ;;  %v6283_v34 = vpop.f32.mrf.mxu1  ;;  %9177 = vst [vmem:[#allocation95_spill] sm:$0xff] %v6306_v36  ;;  %v1877_v33 = vmul.f32 %v5856_v17, %v6306_v36  ;;  %v6339_v17 = vld [vmem:[%s8912_s10 + $0x108] sm:$0xff] }
 0x337   :  { %9173 = vst [vmem:[#allocation92_spill] sm:$0xff] %v6266_v48  ;;  %v1989_v58 = vpack.c.bf16 %v1883_v26, %v1881_v53  ;;  %9183 = vst [vmem:[#allocation100_spill] sm:$0xff] %v6339_v17  ;;  %v1873_v14 = vmul.f32 %v5814_v24, %v6339_v17 }
 0x338   :  { %v6281_v50 = vpop.f32.mrf.mxu0  ;;  %v6289_v3 = vpop.f32.mrf.mxu1 }
 0x33a   :  { %v6287_v4 = vpop.f32.mrf.mxu0  ;;  %v6301_v7 = vpop.f32.mrf.mxu1 }
 0x33c   :  { %v6296_v9 = vpop.f32.mrf.mxu0  ;;  %2650 = vmatpush2.bf16.xpose.msra.mxu0 %v9176_v62  ;;  %v6310_v53 = vpop.f32.mrf.mxu1  ;;  %v1987_v62 = vpack.c.bf16 %v1879_v52, %v1877_v33 }
 0x33d   :  { %2651 = vmatprep.subr.bf16.mxu0 %v1989_v58 }
 0x33e   :  { %v6308_v26 = vpop.f32.mrf.mxu0  ;;  %v6316_v32 = vpop.f32.mrf.mxu1 }
 0x33f   :  { %9178 = vst [vmem:[#allocation96_spill] sm:$0xff] %v6316_v32 }
 0x340   :  { %v6314_v16 = vpop.f32.mrf.mxu0  ;;  %v6322_v58 = vpop.f32.mrf.mxu1 }
 0x341   :  { %9179 = vst [vmem:[#allocation97_spill] sm:$0xff] %v6322_v58  ;;  %v1875_v58 = vmul.f32 %v5844_v55, %v6327_v63  ;;  %v2422_v55 = vmul.f32 %v5981_v41, %v5788_v21  ;;  %v6385_v21 = vld [vmem:[%s8912_s10 + $0x2e8] sm:$0xff]  ;;  %v6393_v41 = vld [vmem:[%s8912_s10 + $0x2f8] sm:$0xff] }
 0x342   :  { %v6320_v59 = vpop.f32.mrf.mxu0  ;;  %v6334_v32 = vpop.f32.mrf.mxu1  ;;  %9194 = vst [vmem:[#allocation110_spill] sm:$0xff] %v6385_v21  ;;  %9196 = vst [vmem:[#allocation111_spill] sm:$0xff] %v6393_v41 }
 0x343   :  { %9182 = vst [vmem:[#allocation99_spill] sm:$0xff] %v6334_v32 }
 0x344   :  { %v6329_v48 = vpop.f32.mrf.mxu0  ;;  %2652 = vmatpush2.bf16.xpose.msra.mxu0 %v9181_v46  ;;  %v6343_v33 = vpop.f32.mrf.mxu1  ;;  %v1985_v46 = vpack.c.bf16 %v1875_v58, %v1873_v14 }
 0x345   :  { %2653 = vmatprep.subr.bf16.mxu0 %v1987_v62  ;;  %9184 = vst [vmem:[#allocation101_spill] sm:$0xff] %v6343_v33 }
 0x346   :  { %v6341_v52 = vpop.f32.mrf.mxu0  ;;  %v6349_v36 = vpop.f32.mrf.mxu1 }
 0x347   :  { %9185 = vst [vmem:[#allocation102_spill] sm:$0xff] %v6349_v36  ;;  %v2424_v36 = vmul.f32 %v5995_v42, %v5793_v60  ;;  %v9195_v42 = vpack.c.bf16 %v5836_v12, %v5834_v45  ;;  %v6409_v45 = vld [vmem:[%s8912_s10 + $0x2c8] sm:$0xff] }
 0x348   :  { %v6347_v19 = vpop.f32.mrf.mxu0  ;;  %v6353_v62 = vpop.f32.mrf.mxu1  ;;  %9199 = vst [vmem:[#allocation114_spill] sm:$0xff] %v6409_v45 }
 0x349   :  { %9186 = vst [vmem:[#allocation103_spill] sm:$0xff] %v6353_v62  ;;  %v2536_v14 = vpack.c.bf16 %v2424_v36, %v2422_v55  ;;  %v6400_v36 = vld [vmem:[%s8912_s10 + $0x2e0] sm:$0xff]  ;;  %v2423_v55 = vmul.f32 %v5988_v37, %v5778_v18 }
 0x34a   :  { %v1743_v57 = vpop.f32.mrf.mxu0  ;;  %v6360_v33 = vpop.f32.mrf.mxu1  ;;  %9198 = vst [vmem:[#allocation113_spill] sm:$0xff] %v6400_v36 }
 0x34b   :  { %9188 = vst [vmem:[#allocation104_spill] sm:$0xff] %v6360_v33  ;;  %v2418_v33 = vmul.f32 %v5959_v10, %v5803_v6 }
 0x34c   :  { %v6355_v32 = vpop.f32.mrf.mxu0  ;;  %2654 = vmatpush2.bf16.xpose.msra.mxu0 %v9187_v1  ;;  %v6366_v63 = vpop.f32.mrf.mxu1 }
 0x34d   :  { %2655 = vmatprep.subr.bf16.mxu0 %v1985_v46  ;;  %9189 = vst [vmem:[#allocation105_spill] sm:$0xff] %v6366_v63  ;;  %v2421_v46 = vmul.f32 %v5977_v30, %v5798_v11  ;;  %v2420_v63 = vmul.f32 %v5971_v31, %v5783_v38  ;;  %v1929_v38 = vmul.f32 %v1743_v57, %v6409_v45 }
 0x34e   :  { %v1747_v24 = vpop.f32.mrf.mxu0  ;;  %v6368_v58 = vpop.f32.mrf.mxu1 }
 0x34f   :  { %9190 = vst [vmem:[#allocation106_spill] sm:$0xff] %v6368_v58  ;;  %v1931_v11 = vmul.f32 %v1747_v24, %v6380_v35  ;;  %v9201_v58 = vld [vmem:[#allocation43_spill] sm:$0xff] }
 0x350   :  { %v1751_v62 = vpop.f32.mrf.mxu0  ;;  %v6370_v40 = vpop.f32.mrf.mxu1  ;;  %v2419_v6 = vmul.f32 %v9201_v58, %v5822_v15  ;;  %v9203_v15 = vld [vmem:[#allocation38_spill] sm:$0xff]  ;;  %v9217_v35 = vld [vmem:[#allocation39_spill] sm:$0xff] }
 0x351   :  { %9191 = vst [vmem:[#allocation107_spill] sm:$0xff] %v6370_v40  ;;  %v1932_v37 = vmul.f32 %v1751_v62, %v6400_v36  ;;  %v9205_v40 = vld [vmem:[#allocation40_spill] sm:$0xff]  ;;  %v9221_v36 = vld [vmem:[#allocation31_spill] sm:$0xff] }
 0x352   :  { %v1753_v17 = vpop.f32.mrf.mxu0  ;;  %v6395_v1 = vpop.f32.mrf.mxu1 }
 0x353   :  { %9197 = vst [vmem:[#allocation112_spill] sm:$0xff] %v6395_v1  ;;  %v1933_v18 = vmul.f32 %v1753_v17, %v6385_v21  ;;  %v6432_v17 = vld [vmem:[%s8912_s10 + $0x300] sm:$0xff] }
 0x354   :  { %v1755_v60 = vpop.f32.mrf.mxu0  ;;  %2656 = vmatpush2.bf16.xpose.msra.mxu0 %v9195_v42  ;;  %v6416_v1 = vpop.f32.mrf.mxu1 }
 0x355   :  { %2923 = vmatprep.subr.bf16.mxu0 %v2536_v14  ;;  %v1934_v12 = vmul.f32 %v1755_v60, %v6375_v28  ;;  %9200 = vst [vmem:[#allocation115_spill] sm:$0xff] %v6416_v1  ;;  %v2417_v60 = vmul.f32 %v5943_v54, %v5832_v22  ;;  %v2535_v1 = vpack.c.bf16 %v2423_v55, %v2421_v46  ;;  %v6437_v54 = vld [vmem:[%s8912_s10 + $0x310] sm:$0xff] }
 0x356   :  { %v1757_v42 = vpop.f32.mrf.mxu0  ;;  %v6426_v10 = vpop.f32.mrf.mxu1  ;;  %v9202_v22 = vld [vmem:[#allocation28_spill] sm:$0xff] }
 0x357   :  { %v1935_v30 = vmul.f32 %v1757_v42, %v6393_v41  ;;  %v2014_v24 = vpack.c.bf16 %v1934_v12, %v1932_v37  ;;  %v2414_v58 = vmul.f32 %v9203_v15, %v9202_v22  ;;  %v9204_v42 = vld [vmem:[#allocation27_spill] sm:$0xff]  ;;  %v6448_v55 = vld [vmem:[%s8912_s10 + $0x2d0] sm:$0xff]  ;;  %v2013_v12 = vpack.c.bf16 %v1931_v11, %v1929_v38  ;;  %v6454_v37 = vld [vmem:[%s8912_s10 + $0x2b8] sm:$0xff] }
 0x358   :  { %v1761_v14 = vpop.f32.mrf.mxu0  ;;  %v2416_v57 = vmul.f32 %v9205_v40, %v9204_v42  ;;  %v6443_v46 = vpop.f32.mrf.mxu1  ;;  %9207 = vst [vmem:[#allocation28_spill] sm:$0xff] %v6448_v55  ;;  %9209 = vst [vmem:[#allocation38_spill] sm:$0xff] %v6454_v37  ;;  %v6459_v40 = vld [vmem:[%s8912_s10 + $0x308] sm:$0xff]  ;;  %v6465_v11 = vld [vmem:[%s8912_s10 + $0x318] sm:$0xff]  ;;  %v2533_v15 = vpack.c.bf16 %v2419_v6, %v2417_v60  ;;  %v1930_v6 = vmul.f32 %v6355_v32, %v6448_v55 }
 0x359   :  { %v2015_v31 = vpack.c.bf16 %v1935_v30, %v1933_v18  ;;  %v2534_v18 = vpack.c.bf16 %v2420_v63, %v2418_v33  ;;  %9206 = vst [vmem:[#allocation43_spill] sm:$0xff] %v6443_v46  ;;  %v9208_v30 = vld [vmem:[#allocation4_spill] sm:$0xff]  ;;  %v9210_v33 = vld [vmem:[#allocation6_spill] sm:$0xff]  ;;  %v6487_v60 = vld [vmem:[%s8912_s10 + $0x2a8] sm:$0xff] }
 0x35a   :  { %v1763_v62 = vpop.f32.mrf.mxu0  ;;  %v9211_v38 = vld [vmem:[#allocation32_spill] sm:$0xff]  ;;  %v6469_v42 = vpop.f32.mrf.mxu1  ;;  %v6474_v46 = vld [vmem:[%s8912_s10 + $0x2c0] sm:$0xff] }
 0x35b   :  { %2658 = vmatmul.mubr.bf16.vlgmr.msra.gmra.mxu0 %v9208_v30  ;;  %2698 = vmatprep.subr.bf16.mxu1 %v2015_v31  ;;  %v9212_v31 = vld [vmem:[#allocation35_spill] sm:$0xff]  ;;  %9213 = vst [vmem:[#allocation27_spill] sm:$0xff] %v6474_v46  ;;  %v6477_v30 = vmul.f32 %v1761_v14, %v6432_v17  ;;  %v9220_v14 = vld [vmem:[#allocation29_spill] sm:$0xff] }
 0x35c   :  { %v1765_v63 = vpop.f32.mrf.mxu0  ;;  %2667 = vmatprep.mubr.bf16.mxu0 %v9210_v33  ;;  %2699 = vmatpush1.bf16.xpose.msra.mxu1 %v2014_v24  ;;  %v2413_v22 = vmul.f32 %v9212_v31, %v9211_v38  ;;  %v9216_v33 = vld [vmem:[#allocation30_spill] sm:$0xff]  ;;  %9218 = vst [vmem:[#allocation35_spill] sm:$0xff] %v6487_v60  ;;  %v9219_v31 = vld [vmem:[#allocation33_spill] sm:$0xff]  ;;  %v6495_v21 = vpop.f32.mrf.mxu1 }
 0x35d   :  { %9214 = vst [vmem:[#allocation40_spill] sm:$0xff] %v6477_v30  ;;  %v6480_v24 = vmul.f32 %v1765_v63, %v6437_v54  ;;  %2700 = vmatprep.subr.bf16.mxu1 %v2013_v12  ;;  %v2415_v45 = vmul.f32 %v9217_v35, %v9216_v33  ;;  %2924 = vmatpush1.bf16.msra.mxu0 %v2535_v1  ;;  %v9222_v63 = vld [vmem:[#allocation34_spill] sm:$0xff]  ;;  %9223 = vst [vmem:[#allocation30_spill] sm:$0xff] %v6495_v21 }
 0x35e   :  { %v1767_v38 = vpop.f32.mrf.mxu0  ;;  %v2410_v28 = vmul.f32 %v9220_v14, %v9219_v31  ;;  %v2412_v41 = vmul.f32 %v9222_v63, %v9221_v36  ;;  %v2532_v12 = vpack.c.bf16 %v2416_v57, %v2414_v58  ;;  %2925 = vmatprep.subr.bf16.mxu0 %v2534_v18  ;;  %v1927_v35 = vmul.f32 %v6341_v52, %v6454_v37  ;;  %v6509_v58 = vpop.f32.mrf.mxu1 }
 0x35f   :  { %9215 = vst [vmem:[#allocation32_spill] sm:$0xff] %v6480_v24  ;;  %v6500_v1 = vmul.f32 %v1763_v62, %v6459_v40  ;;  %v6505_v33 = vmul.f32 %v1767_v38, %v6465_v11  ;;  %v1928_v31 = vmul.f32 %v6347_v19, %v6474_v46  ;;  %v1925_v57 = vmul.f32 %v6320_v59, %v6487_v60  ;;  %v6518_v38 = vld [vmem:[%s8912_s10 + $0x320] sm:$0xff]  ;;  %v6523_v19 = vld [vmem:[%s8912_s10 + $0x330] sm:$0xff] }
 0x360   :  { %v1771_v36 = vpop.f32.mrf.mxu0  ;;  %v2531_v62 = vpack.c.bf16 %v2415_v45, %v2413_v22  ;;  %v2530_v63 = vpack.c.bf16 %v2412_v41, %v2410_v28  ;;  %v6525_v59 = vpop.f32.mrf.mxu1  ;;  %v6530_v45 = vld [vmem:[%s8912_s10 + $0x2b0] sm:$0xff]  ;;  %v6541_v28 = vld [vmem:[%s8912_s10 + $0x328] sm:$0xff]  ;;  %v9236_v60 = vld [vmem:[#allocation50_spill] sm:$0xff] }
 0x361   :  { %9224 = vst [vmem:[#allocation39_spill] sm:$0xff] %v6500_v1  ;;  %9225 = vst [vmem:[#allocation33_spill] sm:$0xff] %v6505_v33  ;;  %2926 = vmatpush1.bf16.msra.mxu0 %v2533_v15  ;;  %v2012_v18 = vpack.c.bf16 %v1930_v6, %v1928_v31  ;;  %v2011_v22 = vpack.c.bf16 %v1927_v35, %v1925_v57  ;;  %v9227_v15 = vld [vmem:[#allocation5_spill] sm:$0xff]  ;;  %v6554_v57 = vld [vmem:[%s8912_s10 + $0x2a0] sm:$0xff]  ;;  %v6557_v32 = vmul.f32 %v1771_v36, %v6518_v38 }
 0x362   :  { %v1773_v14 = vpop.f32.mrf.mxu0  ;;  %2927 = vmatprep.subr.bf16.mxu0 %v2532_v12  ;;  %9226 = vst [vmem:[#allocation29_spill] sm:$0xff] %v6530_v45  ;;  %v6536_v6 = vld [vmem:[%s8912_s10 + $0x298] sm:$0xff]  ;;  %v9228_v12 = vld [vmem:[#allocation8_spill] sm:$0xff]  ;;  %v6549_v31 = vpop.f32.mrf.mxu1  ;;  %9229 = vst [vmem:[#allocation31_spill] sm:$0xff] %v6554_v57  ;;  %v1924_v37 = vmul.f32 %v6314_v16, %v6554_v57 }
 0x363   :  { %2668 = vmatmul.mubr.bf16.gmra.mxu0 %v9227_v15  ;;  %v6547_v35 = vld [vmem:[%s8912_s10 + $0x338] sm:$0xff]  ;;  %9230 = vst [vmem:[#allocation34_spill] sm:$0xff] %v6557_v32  ;;  %v1923_v36 = vmul.f32 %v6308_v26, %v6536_v6  ;;  %v9240_v57 = vld [vmem:[#allocation24_spill] sm:$0xff]  ;;  %v9255_v33 = vld [vmem:[#allocation22_spill] sm:$0xff] }
 0x364   :  { %v1775_v41 = vpop.f32.mrf.mxu0  ;;  %2677 = vmatprep.mubr.bf16.mxu0 %v9228_v12  ;;  %2701 = vmatpush1.bf16.xpose.msra.mxu1 %v2012_v18  ;;  %v6565_v18 = vld [vmem:[%s8912_s10 + $0x288] sm:$0xff]  ;;  %v1926_v12 = vmul.f32 %v6329_v48, %v6530_v45  ;;  %v6569_v21 = vpop.f32.mrf.mxu1 }
 0x365   :  { %v6560_v52 = vmul.f32 %v1775_v41, %v6523_v19  ;;  %2702 = vmatprep.subr.bf16.mxu1 %v2011_v22  ;;  %2928 = vmatpush1.bf16.msra.mxu0 %v2531_v62  ;;  %v6574_v41 = vmul.f32 %v1773_v14, %v6541_v28  ;;  %v9235_v14 = vld [vmem:[#allocation51_spill] sm:$0xff] }
 0x366   :  { %v1777_v15 = vpop.f32.mrf.mxu0  ;;  %2929 = vmatprep.subr.bf16.mxu0 %v2530_v63  ;;  %v6583_v45 = vpop.f32.mrf.mxu1  ;;  %v1921_v63 = vmul.f32 %v6287_v4, %v6565_v18  ;;  %v9237_v55 = vpack.c.bf16 %v9235_v14, %v9236_v60  ;;  %v2010_v62 = vpack.c.bf16 %v1926_v12, %v1924_v37  ;;  %v9239_v4 = vld [vmem:[#allocation26_spill] sm:$0xff]  ;;  %v9243_v60 = vld [vmem:[#allocation7_spill] sm:$0xff]  ;;  %v6616_v12 = vld [vmem:[%s8912_s10 + $0x278] sm:$0xff] }
 0x367   :  { %9231 = vst [vmem:[#allocation116_spill] sm:$0xff] %v6560_v52  ;;  %9232 = vst [vmem:[#allocation117_spill] sm:$0xff] %v6574_v41  ;;  %v6579_v22 = vmul.f32 %v1777_v15, %v6547_v35  ;;  %v6595_v15 = vld [vmem:[%s8912_s10 + $0x340] sm:$0xff]  ;;  %v9241_v46 = vpack.c.bf16 %v9239_v4, %v9240_v57  ;;  %v6621_v57 = vld [vmem:[%s8912_s10 + $0x348] sm:$0xff] }
 0x368   :  { %v1781_v48 = vpop.f32.mrf.mxu0  ;;  %9234 = vst [vmem:[#allocation119_spill] sm:$0xff] %v6583_v45  ;;  %v6600_v45 = vld [vmem:[%s8912_s10 + $0x350] sm:$0xff]  ;;  %v6605_v26 = vpop.f32.mrf.mxu1  ;;  %v2009_v37 = vpack.c.bf16 %v1923_v36, %v1921_v63  ;;  %9244 = vst [vmem:[#allocation26_spill] sm:$0xff] %v6616_v12  ;;  %v9246_v14 = vld [vmem:[#allocation10_spill] sm:$0xff] }
 0x369   :  { %9233 = vst [vmem:[#allocation118_spill] sm:$0xff] %v6579_v22  ;;  %2930 = vmatpush1.bf16.msra.mxu0 %v9237_v55  ;;  %9238 = vst [vmem:[#allocation51_spill] sm:$0xff] %v6600_v45  ;;  %v6610_v55 = vld [vmem:[%s8912_s10 + $0x290] sm:$0xff]  ;;  %v6627_v36 = vld [vmem:[%s8912_s10 + $0x358] sm:$0xff] }
 0x36a   :  { %v1783_v16 = vpop.f32.mrf.mxu0  ;;  %2931 = vmatprep.subr.bf16.mxu0 %v9241_v46  ;;  %9242 = vst [vmem:[#allocation50_spill] sm:$0xff] %v6605_v26  ;;  %9245 = vst [vmem:[#allocation24_spill] sm:$0xff] %v6621_v57  ;;  %v6629_v63 = vpop.f32.mrf.mxu1  ;;  %v6634_v4 = vld [vmem:[%s8912_s10 + $0x280] sm:$0xff]  ;;  %v1922_v24 = vmul.f32 %v6296_v9, %v6610_v55  ;;  %v9329_v41 = vld [vmem:[#allocation56_spill] sm:$0xff] }
 0x36b   :  { %2678 = vmatmul.mubr.bf16.gmra.mxu0 %v9243_v60  ;;  %9247 = vst [vmem:[#allocation120_spill] sm:$0xff] %v6627_v36  ;;  %9248 = vst [vmem:[#allocation121_spill] sm:$0xff] %v6629_v63  ;;  %v6637_v60 = vmul.f32 %v1781_v48, %v6595_v15  ;;  %v6648_v63 = vld [vmem:[%s8912_s10 + $0x268] sm:$0xff]  ;;  %v9256_v48 = vld [vmem:[#allocation20_spill] sm:$0xff]  ;;  %v1920_v9 = vmul.f32 %v6281_v50, %v6634_v4 }
 0x36c   :  { %v1785_v46 = vpop.f32.mrf.mxu0  ;;  %2687 = vmatprep.mubr.bf16.mxu0 %v9246_v14  ;;  %2703 = vmatpush1.bf16.xpose.msra.mxu1 %v2010_v62  ;;  %v9251_v62 = vld [vmem:[#allocation25_spill] sm:$0xff]  ;;  %v9252_v14 = vld [vmem:[#allocation23_spill] sm:$0xff]  ;;  %v9257_v32 = vpack.c.bf16 %v9255_v33, %v9256_v48 }
 0x36d   :  { %9249 = vst [vmem:[#allocation122_spill] sm:$0xff] %v6637_v60  ;;  %v6640_v26 = vmul.f32 %v1785_v46, %v6600_v45  ;;  %2704 = vmatprep.subr.bf16.mxu1 %v2009_v37  ;;  %v9253_v30 = vpack.c.bf16 %v9251_v62, %v9252_v14  ;;  %9254 = vst [vmem:[#allocation25_spill] sm:$0xff] %v6648_v63  ;;  %v6655_v46 = vpop.f32.mrf.mxu1  ;;  %v1919_v37 = vmul.f32 %v6273_v25, %v6616_v12  ;;  %v9261_v48 = vld [vmem:[#allocation19_spill] sm:$0xff]  ;;  %v9269_v12 = vld [vmem:[#allocation9_spill] sm:$0xff] }
 0x36e   :  { %v1787_v1 = vpop.f32.mrf.mxu0  ;;  %9258 = vst [vmem:[#allocation23_spill] sm:$0xff] %v6655_v46  ;;  %v2008_v14 = vpack.c.bf16 %v1922_v24, %v1920_v9  ;;  %v9266_v24 = vld [vmem:[#allocation16_spill] sm:$0xff] }
 0x36f   :  { %9250 = vst [vmem:[#allocation123_spill] sm:$0xff] %v6640_v26  ;;  %2932 = vmatpush1.bf16.msra.mxu0 %v9253_v30  ;;  %v6660_v30 = vmul.f32 %v1783_v16, %v6621_v57  ;;  %v6665_v62 = vmul.f32 %v1787_v1, %v6627_v36  ;;  %v6669_v33 = vpop.f32.mrf.mxu1  ;;  %v9260_v16 = vld [vmem:[#allocation21_spill] sm:$0xff]  ;;  %v6681_v1 = vld [vmem:[%s8912_s10 + $0x360] sm:$0xff]  ;;  %v6688_v36 = vld [vmem:[%s8912_s10 + $0x370] sm:$0xff] }
 0x370   :  { %2933 = vmatprep.subr.bf16.mxu0 %v9257_v32  ;;  %v1791_v52 = vpop.f32.mrf.mxu0  ;;  %9259 = vst [vmem:[#allocation22_spill] sm:$0xff] %v6669_v33  ;;  %v1917_v32 = vmul.f32 %v6246_v49, %v6648_v63  ;;  %v9262_v57 = vpack.c.bf16 %v9260_v16, %v9261_v48  ;;  %9263 = vst [vmem:[#allocation20_spill] sm:$0xff] %v6681_v1  ;;  %v2454_v49 = vmul.f32 %v6289_v3, %v6056_v20  ;;  %v6703_v63 = vld [vmem:[%s8912_s10 + $0x258] sm:$0xff]  ;;  %v9307_v33 = vld [vmem:[#allocation72_spill] sm:$0xff] }
 0x371   :  { %9264 = vst [vmem:[#allocation21_spill] sm:$0xff] %v6688_v36  ;;  %v2456_v16 = vmul.f32 %v6310_v53, %v6064_v29  ;;  %v6697_v48 = vpop.f32.mrf.mxu1  ;;  %v2453_v20 = vmul.f32 %v6283_v34, %v6071_v61  ;;  %v6710_v3 = vmul.f32 %v1791_v52, %v6681_v1  ;;  %v6723_v61 = vld [vmem:[%s8912_s10 + $0x248] sm:$0xff]  ;;  %v2450_v52 = vmul.f32 %v6253_v44, %v6076_v2 }
 0x372   :  { %v6683_v50 = vpop.f32.mrf.mxu0  ;;  %9268 = vst [vmem:[#allocation19_spill] sm:$0xff] %v6697_v48  ;;  %v2007_v25 = vpack.c.bf16 %v1919_v37, %v1917_v32  ;;  %v2455_v37 = vmul.f32 %v6301_v7, %v6046_v43  ;;  %v9272_v32 = vld [vmem:[#allocation17_spill] sm:$0xff]  ;;  %v9277_v43 = vld [vmem:[#allocation12_spill] sm:$0xff]  ;;  %v1913_v2 = vmul.f32 %v6192_v23, %v6723_v61 }
 0x373   :  { %2934 = vmatpush1.bf16.msra.mxu0 %v9262_v57  ;;  %v9265_v57 = vld [vmem:[#allocation18_spill] sm:$0xff]  ;;  %v6707_v29 = vpop.f32.mrf.mxu1  ;;  %9275 = vst [vmem:[#allocation17_spill] sm:$0xff] %v6723_v61  ;;  %v9304_v61 = vld [vmem:[#allocation83_spill] sm:$0xff] }
 0x374   :  { %v9267_v9 = vpack.c.bf16 %v9265_v57, %v9266_v24  ;;  %2688 = vmatmul.mubr.bf16.gmra.mxu0 %v9269_v12  ;;  %9270 = vst [vmem:[#allocation18_spill] sm:$0xff] %v6703_v63  ;;  %v1795_v46 = vpop.f32.mrf.mxu0  ;;  %2705 = vmatpush1.bf16.xpose.msra.mxu1 %v2008_v14  ;;  %9271 = vst [vmem:[#allocation16_spill] sm:$0xff] %v6707_v29  ;;  %v9273_v57 = vld [vmem:[#allocation15_spill] sm:$0xff]  ;;  %v2552_v14 = vpack.c.bf16 %v2456_v16, %v2454_v49  ;;  %v9281_v49 = vld [vmem:[#allocation13_spill] sm:$0xff] }
 0x375   :  { %v6713_v53 = vmul.f32 %v1795_v46, %v6688_v36  ;;  %2706 = vmatprep.subr.bf16.mxu1 %v2007_v25  ;;  %v9274_v24 = vpack.c.bf16 %v9272_v32, %v9273_v57  ;;  %v2452_v46 = vmul.f32 %v6275_v47, %v6051_v39  ;;  %v9276_v25 = vld [vmem:[#allocation14_spill] sm:$0xff]  ;;  %v1915_v32 = vmul.f32 %v6227_v27, %v6703_v63  ;;  %v9282_v16 = vld [vmem:[#allocation11_spill] sm:$0xff] }
 0x376   :  { %2935 = vmatprep.subr.bf16.mxu0 %v9267_v9  ;;  %v6725_v34 = vpop.f32.mrf.mxu0  ;;  %v9278_v7 = vpack.c.bf16 %v9276_v25, %v9277_v43  ;;  %v6734_v9 = vpop.f32.mrf.mxu1  ;;  %v2449_v39 = vmul.f32 %v6237_v13, %v6113_v8  ;;  %v2451_v47 = vmul.f32 %v6260_v56, %v6101_v51  ;;  %v2551_v44 = vpack.c.bf16 %v2455_v37, %v2453_v20  ;;  %v9285_v57 = vld [vmem:[#allocation87_spill] sm:$0xff]  ;;  %v6764_v51 = vld [vmem:[%s8912_s10 + $0x238] sm:$0xff]  ;;  %v9288_v56 = vld [vmem:[#allocation92_spill] sm:$0xff] }
 0x377   :  { %2936 = vmatpush1.bf16.msra.mxu0 %v9274_v24  ;;  %9279 = vst [vmem:[#allocation15_spill] sm:$0xff] %v6734_v9  ;;  %v9283_v27 = vpack.c.bf16 %v9281_v49, %v9282_v16  ;;  %v2446_v43 = vmul.f32 %v6197_v5, %v6122_v0  ;;  %v2550_v23 = vpack.c.bf16 %v2452_v46, %v2450_v52  ;;  %9287 = vst [vmem:[#allocation13_spill] sm:$0xff] %v6764_v51  ;;  %v9289_v20 = vld [vmem:[#allocation91_spill] sm:$0xff]  ;;  %v9292_v5 = vld [vmem:[#allocation73_spill] sm:$0xff] }
 0x378   :  { %2937 = vmatprep.subr.bf16.mxu0 %v9278_v7  ;;  %v6740_v24 = vpop.f32.mrf.mxu0  ;;  %v6742_v36 = vpop.f32.mrf.mxu1  ;;  %v9284_v7 = vld [vmem:[#allocation61_spill] sm:$0xff]  ;;  %v2005_v8 = vpack.c.bf16 %v1915_v32, %v1913_v2  ;;  %v9290_v37 = vpack.c.bf16 %v9288_v56, %v9289_v20  ;;  %v9293_v52 = vld [vmem:[#allocation79_spill] sm:$0xff]  ;;  %v2549_v2 = vpack.c.bf16 %v2451_v47, %v2449_v39  ;;  %v9311_v9 = vld [vmem:[#allocation66_spill] sm:$0xff] }
 0x379   :  { %9280 = vst [vmem:[#allocation14_spill] sm:$0xff] %v6742_v36  ;;  %v2448_v1 = vmul.f32 %v9285_v57, %v9284_v7  ;;  %v2445_v46 = vmul.f32 %v9293_v52, %v9292_v5  ;;  %v9295_v57 = vld [vmem:[#allocation82_spill] sm:$0xff]  ;;  %v6780_v49 = vld [vmem:[%s8912_s10 + $0x228] sm:$0xff]  ;;  %v9298_v7 = vld [vmem:[#allocation69_spill] sm:$0xff] }
 0x37a   :  { %v6753_v25 = vpop.f32.mrf.mxu0  ;;  %v6759_v12 = vpop.f32.mrf.mxu1  ;;  %9296 = vst [vmem:[#allocation61_spill] sm:$0xff] %v6780_v49  ;;  %v9299_v20 = vld [vmem:[#allocation71_spill] sm:$0xff]  ;;  %v9302_v39 = vld [vmem:[#allocation77_spill] sm:$0xff] }
 0x37b   :  { %2938 = vmatpush1.bf16.msra.mxu0 %v9283_v27  ;;  %9286 = vst [vmem:[#allocation12_spill] sm:$0xff] %v6759_v12  ;;  %v9297_v27 = vld [vmem:[#allocation76_spill] sm:$0xff]  ;;  %v2548_v63 = vpack.c.bf16 %v2448_v1, %v2446_v43  ;;  %v1911_v47 = vmul.f32 %v9302_v39, %v6764_v51  ;;  %v9305_v29 = vld [vmem:[#allocation67_spill] sm:$0xff]  ;;  %v9310_v51 = vld [vmem:[#allocation81_spill] sm:$0xff] }
 0x37c   :  { %2939 = vmatprep.subr.bf16.mxu0 %v2552_v14  ;;  %v6766_v13 = vpop.f32.mrf.mxu0  ;;  %2707 = vmatpush1.bf16.xpose.msra.mxu1 %v9290_v37  ;;  %v6771_v0 = vpop.f32.mrf.mxu1  ;;  %v9294_v14 = vld [vmem:[#allocation70_spill] sm:$0xff]  ;;  %v2442_v56 = vmul.f32 %v9298_v7, %v9297_v27  ;;  %v2441_v27 = vmul.f32 %v9305_v29, %v9304_v61  ;;  %v9306_v7 = vld [vmem:[#allocation80_spill] sm:$0xff]  ;;  %v2440_v48 = vmul.f32 %v9311_v9, %v9310_v51  ;;  %v6813_v29 = vld [vmem:[%s8912_s10 + $0x218] sm:$0xff] }
 0x37d   :  { %9291 = vst [vmem:[#allocation11_spill] sm:$0xff] %v6771_v0  ;;  %2708 = vmatprep.subr.bf16.mxu1 %v2005_v8  ;;  %v2447_v32 = vmul.f32 %v9295_v57, %v9294_v14  ;;  %v9300_v8 = vld [vmem:[#allocation78_spill] sm:$0xff]  ;;  %v9303_v14 = vld [vmem:[#allocation68_spill] sm:$0xff]  ;;  %9312 = vst [vmem:[#allocation92_spill] sm:$0xff] %v6813_v29 }
 0x37e   :  { %v6782_v16 = vpop.f32.mrf.mxu0  ;;  %v2444_v37 = vmul.f32 %v9300_v8, %v9299_v20  ;;  %v6788_v5 = vpop.f32.mrf.mxu1  ;;  %v1909_v57 = vmul.f32 %v9303_v14, %v6780_v49  ;;  %v2443_v20 = vmul.f32 %v9307_v33, %v9306_v7  ;;  %v9309_v8 = vld [vmem:[#allocation60_spill] sm:$0xff]  ;;  %v9313_v61 = vld [vmem:[#allocation85_spill] sm:$0xff]  ;;  %v9317_v51 = vld [vmem:[#allocation58_spill] sm:$0xff] }
 0x37f   :  { %2940 = vmatpush2.bf16.msra.mxu0 %v2551_v44  ;;  %9301 = vst [vmem:[#allocation87_spill] sm:$0xff] %v6788_v5  ;;  %v2547_v1 = vpack.c.bf16 %v2447_v32, %v2445_v46  ;;  %v9314_v46 = vld [vmem:[#allocation84_spill] sm:$0xff]  ;;  %v9316_v9 = vld [vmem:[#allocation41_spill] sm:$0xff]  ;;  %v6829_v7 = vld [vmem:[%s8912_s10 + $0x208] sm:$0xff] }
 0x380   :  { %2941 = vmatprep.subr.bf16.mxu0 %v2550_v23  ;;  %v6792_v44 = vpop.f32.mrf.mxu0  ;;  %v6794_v52 = vpop.f32.mrf.mxu1  ;;  %v9308_v23 = vld [vmem:[#allocation86_spill] sm:$0xff]  ;;  %v2546_v0 = vpack.c.bf16 %v2444_v37, %v2442_v56  ;;  %v2003_v14 = vpack.c.bf16 %v1911_v47, %v1909_v57  ;;  %v9315_v32 = vpack.c.bf16 %v9313_v61, %v9314_v46  ;;  %v2545_v57 = vpack.c.bf16 %v2443_v20, %v2441_v27  ;;  %v9322_v61 = vld [vmem:[#allocation55_spill] sm:$0xff]  ;;  %v9325_v27 = vld [vmem:[#allocation65_spill] sm:$0xff] }
 0x381   :  { %v2438_v39 = vmul.f32 %v9309_v8, %v9308_v23  ;;  %v9318_v56 = vld [vmem:[#allocation42_spill] sm:$0xff]  ;;  %9320 = vst [vmem:[#allocation91_spill] sm:$0xff] %v6829_v7  ;;  %v9321_v8 = vld [vmem:[#allocation93_spill] sm:$0xff]  ;;  %v1907_v20 = vmul.f32 %v9325_v27, %v6813_v29 }
 0x382   :  { %v6802_v43 = vpop.f32.mrf.mxu0  ;;  %v6808_v36 = vpop.f32.mrf.mxu1  ;;  %v9319_v37 = vld [vmem:[#allocation62_spill] sm:$0xff]  ;;  %v2434_v46 = vmul.f32 %v9322_v61, %v9321_v8  ;;  %v9328_v12 = vld [vmem:[#allocation37_spill] sm:$0xff]  ;;  %v9330_v8 = vld [vmem:[#allocation59_spill] sm:$0xff] }
 0x383   :  { %2942 = vmatpush2.bf16.msra.mxu0 %v2549_v2  ;;  %v2439_v47 = vmul.f32 %v9319_v37, %v9318_v56  ;;  %v2544_v5 = vpack.c.bf16 %v2440_v48, %v2438_v39  ;;  %v9327_v56 = vld [vmem:[#allocation54_spill] sm:$0xff]  ;;  %v2435_v22 = vmul.f32 %v9329_v41, %v9328_v12  ;;  %v1905_v61 = vmul.f32 %v9330_v8, %v6829_v7  ;;  %v9331_v39 = vld [vmem:[#allocation95_spill] sm:$0xff]  ;;  %v9334_v29 = vld [vmem:[#allocation53_spill] sm:$0xff] }
 0x384   :  { %2943 = vmatprep.subr.bf16.mxu0 %v2548_v63  ;;  %v6815_v33 = vpop.f32.mrf.mxu0  ;;  %2709 = vmatpush1.bf16.xpose.msra.mxu1 %v9315_v32  ;;  %v6820_v2 = vpop.f32.mrf.mxu1  ;;  %v2437_v63 = vmul.f32 %v9317_v51, %v9316_v9  ;;  %v9323_v32 = vld [vmem:[#allocation90_spill] sm:$0xff]  ;;  %v9326_v51 = vld [vmem:[#allocation36_spill] sm:$0xff]  ;;  %v6859_v41 = vmul.f32 %v6525_v59, %v6565_v18  ;;  %v6863_v12 = vmul.f32 %v6569_v21, %v6536_v6 }
 0x385   :  { %2710 = vmatprep.subr.bf16.mxu1 %v2003_v14  ;;  %v9324_v14 = vld [vmem:[#allocation57_spill] sm:$0xff]  ;;  %v2433_v37 = vmul.f32 %v9327_v56, %v9326_v51  ;;  %v9333_v27 = vld [vmem:[#allocation94_spill] sm:$0xff]  ;;  %v2001_v56 = vpack.c.bf16 %v1907_v20, %v1905_v61  ;;  %v9338_v6 = vld [vmem:[#allocation48_spill] sm:$0xff] }
 0x386   :  { %v6831_v23 = vpop.f32.mrf.mxu0  ;;  %v2436_v49 = vmul.f32 %v9324_v14, %v9323_v32  ;;  %v6837_v9 = vpop.f32.mrf.mxu1  ;;  %v2543_v48 = vpack.c.bf16 %v2439_v47, %v2437_v63  ;;  %v9332_v32 = vld [vmem:[#allocation49_spill] sm:$0xff]  ;;  %v2432_v26 = vmul.f32 %v9334_v29, %v9333_v27  ;;  %v9335_v47 = vld [vmem:[#allocation75_spill] sm:$0xff]  ;;  %v4695_v21 = vld [vmem:[%s8912_s10 + $0x120] sm:$0xff] }
 0x387   :  { %2944 = vmatpush2.bf16.msra.mxu0 %v2547_v1  ;;  %v2430_v14 = vmul.f32 %v9332_v32, %v9331_v39  ;;  %v2541_v29 = vpack.c.bf16 %v2435_v22, %v2433_v37  ;;  %v2429_v18 = vmul.f32 %v4695_v21, %v9338_v6  ;;  %v4696_v22 = vld [vmem:[%s8912_s10 + $0x130] sm:$0xff]  ;;  %v9341_v20 = vld [vmem:[#allocation45_spill] sm:$0xff]  ;;  %v9342_v61 = vld [vmem:[#allocation98_spill] sm:$0xff] }
 0x388   :  { %2945 = vmatprep.subr.bf16.mxu0 %v2546_v0  ;;  %v6841_v1 = vpop.f32.mrf.mxu0  ;;  %v6847_v60 = vpop.f32.mrf.mxu1  ;;  %v2542_v45 = vpack.c.bf16 %v2436_v49, %v2434_v46  ;;  %v6872_v49 = vmul.f32 %v6509_v58, %v6634_v4  ;;  %v9339_v46 = vld [vmem:[#allocation52_spill] sm:$0xff]  ;;  %v9343_v39 = vld [vmem:[#allocation47_spill] sm:$0xff] }
 0x389   :  { %v2431_v58 = vmul.f32 %v4696_v22, %v9339_v46  ;;  %v2428_v32 = vmul.f32 %v9343_v39, %v9342_v61  ;;  %v2540_v27 = vpack.c.bf16 %v2432_v26, %v2430_v14  ;;  %v4697_v22 = vld [vmem:[%s8912_s10 + $0x100] sm:$0xff]  ;;  %v9346_v26 = vld [vmem:[#allocation44_spill] sm:$0xff] }
 0x38a   :  { %v1823_v0 = vpop.f32.mrf.mxu0  ;;  %v6855_v51 = vpop.f32.mrf.mxu1  ;;  %v2425_v14 = vmul.f32 %v4697_v22, %v9346_v26  ;;  %v9347_v46 = vld [vmem:[#allocation46_spill] sm:$0xff] }
 0x38b   :  { %2946 = vmatpush2.bf16.msra.mxu0 %v2545_v57  ;;  %v9336_v57 = vld [vmem:[#allocation74_spill] sm:$0xff] }
 0x38c   :  { %2947 = vmatprep.subr.bf16.mxu0 %v2544_v5  ;;  %v6865_v63 = vpop.f32.mrf.mxu0  ;;  %v9337_v8 = vpack.c.bf16 %v9335_v47, %v9336_v57  ;;  %v6876_v5 = vmul.f32 %v6549_v31, %v6610_v55  ;;  %v6878_v59 = vpop.f32.mrf.mxu1  ;;  %v9340_v55 = vld [vmem:[#allocation100_spill] sm:$0xff]  ;;  %v6944_v22 = vld [vmem:[%s8912_s10 + $0x3e0] sm:$0xff] }
 0x38d   :  { %v2426_v37 = vmul.f32 %v9341_v20, %v9340_v55  ;;  %v2539_v20 = vpack.c.bf16 %v2431_v58, %v2429_v18  ;;  %v9348_v58 = vld [vmem:[#allocation64_spill] sm:$0xff] }
 0x38e   :  { %2711 = vmatpush1.bf16.xpose.msra.mxu1 %v9337_v8  ;;  %v1827_v31 = vpop.f32.mrf.mxu0  ;;  %v6896_v47 = vpop.f32.mrf.mxu1  ;;  %v9344_v8 = vld [vmem:[#allocation88_spill] sm:$0xff] }
 0x38f   :  { %2712 = vmatprep.subr.bf16.mxu1 %v2001_v56  ;;  %2948 = vmatpush2.bf16.msra.mxu0 %v2543_v48  ;;  %v6900_v21 = vmul.f32 %v6426_v10, %v9344_v8  ;;  %v9345_v48 = vld [vmem:[#allocation89_spill] sm:$0xff]  ;;  %v2538_v61 = vpack.c.bf16 %v2428_v32, %v2426_v37  ;;  %v6921_v8 = vld [vmem:[%s8912_s10 + $0x3f0] sm:$0xff]  ;;  %v9349_v37 = vld [vmem:[#allocation63_spill] sm:$0xff] }
 0x390   :  { %2949 = vmatprep.subr.bf16.mxu0 %v2542_v45  ;;  %v1831_v57 = vpop.f32.mrf.mxu0  ;;  %v6904_v6 = vmul.f32 %v6469_v42, %v9345_v48  ;;  %v4698_v45 = vld [vmem:[%s8912_s10 + $0x110] sm:$0xff]  ;;  %v6916_v39 = vpop.f32.mrf.mxu1  ;;  %v6926_v48 = vld [vmem:[%s8912_s10 + $0x3d8] sm:$0xff]  ;;  %v9350_v32 = vpack.c.bf16 %v9348_v58, %v9349_v37 }
 0x391   :  { %v2427_v55 = vmul.f32 %v4698_v45, %v9347_v46  ;;  %v6949_v45 = vld [vmem:[%s8912_s10 + $0x3c8] sm:$0xff] }
 0x392   :  { %v1833_v10 = vpop.f32.mrf.mxu0  ;;  %v6952_v37 = vpop.f32.mrf.mxu1 }
 0x393   :  { %2950 = vmatpush2.bf16.msra.mxu0 %v2541_v29  ;;  %v6931_v29 = vld [vmem:[%s8912_s10 + $0x3e8] sm:$0xff]  ;;  %v2537_v26 = vpack.c.bf16 %v2427_v55, %v2425_v14  ;;  %9351 = vst [vmem:[#allocation73_spill] sm:$0xff] %v6952_v37  ;;  %v1964_v14 = vmul.f32 %v1831_v57, %v6944_v22  ;;  %v1961_v55 = vmul.f32 %v1823_v0, %v6949_v45  ;;  %v6972_v0 = vld [vmem:[%s8912_s10 + $0x3b8] sm:$0xff] }
 0x394   :  { %2951 = vmatprep.subr.bf16.mxu0 %v2540_v27  ;;  %v1835_v18 = vpop.f32.mrf.mxu0  ;;  %v6939_v27 = vld [vmem:[%s8912_s10 + $0x3f8] sm:$0xff]  ;;  %v1965_v42 = vmul.f32 %v1833_v10, %v6931_v29  ;;  %v6959_v7 = vpop.f32.mrf.mxu1  ;;  %v6982_v57 = vld [vmem:[%s8912_s10 + $0x3a8] sm:$0xff]  ;;  %v9353_v37 = vpack.c.bf16 %v6713_v53, %v6710_v3  ;;  %v9358_v3 = vpack.c.bf16 %v6665_v62, %v6660_v30  ;;  %v9381_v30 = vld [vmem:[#allocation32_spill] sm:$0xff] }
 0x395   :  { %v1966_v46 = vmul.f32 %v1835_v18, %v6921_v8  ;;  %v9388_v53 = vld [vmem:[#allocation114_spill] sm:$0xff] }
 0x396   :  { %2713 = vmatpush1.bf16.xpose.msra.mxu1 %v9350_v32  ;;  %v1837_v58 = vpop.f32.mrf.mxu0  ;;  %v1963_v32 = vmul.f32 %v1827_v31, %v6926_v48  ;;  %v6967_v31 = vld [vmem:[%s8912_s10 + $0x3d0] sm:$0xff]  ;;  %v6986_v18 = vpop.f32.mrf.mxu1 }
 0x397   :  { %2952 = vmatpush2.bf16.msra.mxu0 %v2539_v20  ;;  %v1967_v56 = vmul.f32 %v1837_v58, %v6939_v27  ;;  %v2030_v4 = vpack.c.bf16 %v1966_v46, %v1964_v14  ;;  %9352 = vst [vmem:[#allocation79_spill] sm:$0xff] %v6986_v18  ;;  %v1957_v46 = vmul.f32 %v6802_v43, %v6982_v57  ;;  %v6999_v14 = vld [vmem:[%s8912_s10 + $0x3b0] sm:$0xff]  ;;  %v7014_v43 = vld [vmem:[%s8912_s10 + $0x388] sm:$0xff] }
 0x398   :  { %2953 = vmatprep.subr.bf16.mxu0 %v2538_v61  ;;  %v4699_v61 = vld [vmem:[%s8912_s10 + $0xf8] sm:$0xff]  ;;  %v2029_v10 = vpack.c.bf16 %v1963_v32, %v1961_v55  ;;  %v6994_v32 = vpop.f32.mrf.mxu1 }
 0x399   :  { %v2031_v20 = vpack.c.bf16 %v1967_v56, %v1965_v42  ;;  %v6977_v56 = vld [vmem:[%s8912_s10 + $0x3c0] sm:$0xff]  ;;  %v1962_v42 = vmul.f32 %v6865_v63, %v6967_v31  ;;  %v7004_v55 = vld [vmem:[%s8912_s10 + $0x398] sm:$0xff] }
 0x39b   :  { %2954 = vmatpush2.bf16.msra.mxu0 %v2537_v26  ;;  %2714 = vmatprep.subr.bf16.mxu1 %v2031_v20  ;;  %v1959_v26 = vmul.f32 %v6831_v23, %v6972_v0  ;;  %v7009_v23 = vld [vmem:[%s8912_s10 + $0x3a0] sm:$0xff]  ;;  %v7018_v20 = vpop.f32.mrf.mxu1 }
 0x39c   :  { %3069 = vmatprep.subr.mxu0 %v4699_v61  ;;  %v1955_v61 = vmul.f32 %v6782_v16, %v7004_v55  ;;  %v7041_v16 = vld [vmem:[%s8912_s10 + $0x380] sm:$0xff] }
 0x39d   :  { %v2027_v63 = vpack.c.bf16 %v1959_v26, %v1957_v46  ;;  %v7031_v46 = vld [vmem:[%s8912_s10 + $0x390] sm:$0xff] }
 0x39e   :  { %2715 = vmatpush2.bf16.xpose.msra.mxu1 %v2030_v4  ;;  %v1960_v4 = vmul.f32 %v6841_v1, %v6977_v56  ;;  %v1958_v1 = vmul.f32 %v6815_v33, %v6999_v14 }
 0x39f   :  { %2716 = vmatprep.subr.bf16.mxu1 %v2029_v10  ;;  %v1956_v10 = vmul.f32 %v6792_v44, %v7009_v23  ;;  %v1954_v44 = vmul.f32 %v6766_v13, %v7031_v46 }
 0x3a0   :  { %v2028_v58 = vpack.c.bf16 %v1962_v42, %v1960_v4  ;;  %v1953_v42 = vmul.f32 %v6753_v25, %v7014_v43  ;;  %v7026_v4 = vpop.f32.mrf.mxu1  ;;  %v7046_v25 = vld [vmem:[%s8912_s10 + $0x368] sm:$0xff] }
 0x3a1   :  { %v2026_v26 = vpack.c.bf16 %v1958_v1, %v1956_v10  ;;  %v1949_v10 = vmul.f32 %v6683_v50, %v7046_v25  ;;  %v7073_v50 = vmul.f32 %v6808_v36, %v6459_v40  ;;  %v7092_v40 = vmul.f32 %v6855_v51, %v6541_v28  ;;  %v9368_v51 = vld [vmem:[#allocation118_spill] sm:$0xff] }
 0x3a2   :  { %v2025_v33 = vpack.c.bf16 %v1955_v61, %v1953_v42  ;;  %v1952_v61 = vmul.f32 %v6740_v24, %v7041_v16  ;;  %v7077_v24 = vmul.f32 %v6820_v2, %v6437_v54  ;;  %v7096_v54 = vmul.f32 %v6878_v59, %v6523_v19  ;;  %v9365_v2 = vld [vmem:[#allocation123_spill] sm:$0xff]  ;;  %v9369_v59 = vld [vmem:[#allocation117_spill] sm:$0xff]  ;;  %v9382_v19 = vld [vmem:[#allocation40_spill] sm:$0xff] }
 0x3a3   :  { %9355 = vst [vmem:[#allocation82_spill] sm:$0xff] %v7073_v50  ;;  %9360 = vst [vmem:[#allocation78_spill] sm:$0xff] %v7092_v40  ;;  %v9403_v40 = vld [vmem:[#allocation119_spill] sm:$0xff] }
 0x3a4   :  { %v2024_v42 = vpack.c.bf16 %v1954_v44, %v1952_v61  ;;  %9356 = vst [vmem:[#allocation76_spill] sm:$0xff] %v7077_v24  ;;  %v7081_v44 = vmul.f32 %v6837_v9, %v6465_v11  ;;  %9361 = vst [vmem:[#allocation77_spill] sm:$0xff] %v7096_v54  ;;  %v7100_v11 = vmul.f32 %v6896_v47, %v6547_v35  ;;  %v9364_v35 = vld [vmem:[#allocation51_spill] sm:$0xff]  ;;  %v9393_v24 = vld [vmem:[#allocation22_spill] sm:$0xff] }
 0x3a5   :  { %v7118_v62 = vmul.f32 %v6959_v7, %v9364_v35  ;;  %v9370_v47 = vpack.c.bf16 %v9368_v51, %v9369_v59  ;;  %v9372_v7 = vld [vmem:[#allocation34_spill] sm:$0xff]  ;;  %v9378_v35 = vld [vmem:[#allocation12_spill] sm:$0xff] }
 0x3a6   :  { %2717 = vmatpush2.bf16.xpose.msra.mxu1 %v2028_v58  ;;  %v7036_v58 = vld [vmem:[%s8912_s10 + $0x378] sm:$0xff]  ;;  %9357 = vst [vmem:[#allocation69_spill] sm:$0xff] %v7081_v44  ;;  %9362 = vst [vmem:[#allocation68_spill] sm:$0xff] %v7100_v11 }
 0x3a7   :  { %2718 = vmatprep.subr.bf16.mxu1 %v2027_v63  ;;  %v7050_v63 = vpop.f32.mrf.mxu1  ;;  %v1951_v1 = vmul.f32 %v6725_v34, %v7036_v58  ;;  %v7069_v34 = vmul.f32 %v6794_v52, %v6432_v17  ;;  %v7088_v17 = vmul.f32 %v6847_v60, %v6518_v38  ;;  %v7108_v38 = vmul.f32 %v6916_v39, %v6595_v15  ;;  %v9366_v15 = vld [vmem:[#allocation122_spill] sm:$0xff]  ;;  %v9405_v11 = vld [vmem:[#allocation121_spill] sm:$0xff] }
 0x3a8   :  { %v9367_v9 = vpack.c.bf16 %v9365_v2, %v9366_v15  ;;  %v9379_v15 = vld [vmem:[#allocation111_spill] sm:$0xff]  ;;  %v9383_v60 = vpack.c.bf16 %v9381_v30, %v9382_v19  ;;  %v9394_v30 = vld [vmem:[#allocation28_spill] sm:$0xff] }
 0x3a9   :  { %9354 = vst [vmem:[#allocation70_spill] sm:$0xff] %v7069_v34  ;;  %9359 = vst [vmem:[#allocation71_spill] sm:$0xff] %v7088_v17  ;;  %v9390_v34 = vld [vmem:[#allocation109_spill] sm:$0xff]  ;;  %v9395_v19 = vld [vmem:[#allocation16_spill] sm:$0xff] }
 0x3aa   :  { %9363 = vst [vmem:[#allocation83_spill] sm:$0xff] %v7108_v38  ;;  %v9410_v38 = vld [vmem:[#allocation5_spill] sm:$0xff] }
 0x3ae   :  { %2719 = vmatpush2.bf16.xpose.msra.mxu1 %v2026_v26  ;;  %v7058_v26 = vpop.f32.mrf.mxu1 }
 0x3af   :  { %2720 = vmatprep.subr.bf16.mxu1 %v2025_v33  ;;  %v2023_v33 = vpack.c.bf16 %v1951_v1, %v1949_v10  ;;  %v9371_v1 = vld [vmem:[#allocation116_spill] sm:$0xff]  ;;  %v9374_v10 = vld [vmem:[#allocation33_spill] sm:$0xff] }
 0x3b0   :  { %v7060_v18 = vpop.f32.mrf.mxu1  ;;  %v9373_v61 = vpack.c.bf16 %v9371_v1, %v9372_v7  ;;  %v9384_v1 = vld [vmem:[#allocation113_spill] sm:$0xff]  ;;  %v9385_v7 = vld [vmem:[#allocation14_spill] sm:$0xff] }
 0x3b2   :  { %v7062_v13 = vpop.f32.mrf.mxu1 }
 0x3b4   :  { %v7110_v28 = vpop.f32.mrf.mxu1 }
 0x3b6   :  { %2721 = vmatpush2.bf16.xpose.msra.mxu1 %v2024_v42  ;;  %v7122_v52 = vpop.f32.mrf.mxu1  ;;  %v9375_v42 = vld [vmem:[#allocation39_spill] sm:$0xff] }
 0x3b7   :  { %2722 = vmatprep.subr.bf16.mxu1 %v2023_v33  ;;  %v9376_v33 = vpack.c.bf16 %v9374_v10, %v9375_v42  ;;  %v9386_v10 = vld [vmem:[#allocation108_spill] sm:$0xff]  ;;  %v9387_v42 = vld [vmem:[#allocation11_spill] sm:$0xff] }
 0x3b8   :  { %v7130_v39 = vpop.f32.mrf.mxu1 }
 0x3be   :  { %2723 = vmatpush2.bf16.xpose.msra.mxu1 %v9353_v37  ;;  %v7132_v37 = vpop.f32.mrf.mxu1 }
 0x3bf   :  { %2724 = vmatprep.subr.bf16.mxu1 %v9358_v3  ;;  %v9377_v3 = vld [vmem:[#allocation110_spill] sm:$0xff] }
 0x3c0   :  { %v2486_v2 = vmul.f32 %v9378_v35, %v9377_v3  ;;  %v7144_v51 = vpop.f32.mrf.mxu1  ;;  %v9389_v3 = vld [vmem:[#allocation19_spill] sm:$0xff] }
 0x3c1   :  { %v2482_v35 = vmul.f32 %v9389_v3, %v9388_v53 }
 0x3c6   :  { %2725 = vmatpush2.bf16.xpose.msra.mxu1 %v9367_v9  ;;  %v9380_v9 = vld [vmem:[#allocation87_spill] sm:$0xff] }
 0x3c7   :  { %2726 = vmatprep.subr.bf16.mxu1 %v9370_v47  ;;  %v2488_v36 = vmul.f32 %v9380_v9, %v9379_v15  ;;  %v7146_v47 = vpop.f32.mrf.mxu1  ;;  %v9391_v9 = vld [vmem:[#allocation15_spill] sm:$0xff] }
 0x3c8   :  { %v2484_v15 = vmul.f32 %v9391_v9, %v9390_v34  ;;  %v9400_v34 = vld [vmem:[#allocation4_spill] sm:$0xff]  ;;  %v9402_v9 = vld [vmem:[#allocation31_spill] sm:$0xff] }
 0x3c9   :  { %v2568_v59 = vpack.c.bf16 %v2488_v36, %v2486_v2  ;;  %v7159_v36 = vpop.f32.mrf.mxu1  ;;  %v9392_v2 = vld [vmem:[#allocation27_spill] sm:$0xff] }
 0x3ca   :  { %v2481_v50 = vmul.f32 %v9393_v24, %v9392_v2  ;;  %v2566_v53 = vpack.c.bf16 %v2484_v15, %v2482_v35  ;;  %v2477_v24 = vmul.f32 %v9403_v40, %v9402_v9  ;;  %v9404_v2 = vld [vmem:[#allocation29_spill] sm:$0xff]  ;;  %v9407_v35 = vld [vmem:[#allocation43_spill] sm:$0xff]  ;;  %v9411_v40 = vld [vmem:[#allocation8_spill] sm:$0xff]  ;;  %v9416_v9 = vpack.c.bf16 %v6863_v12, %v6859_v41 }
 0x3cb   :  { %v7169_v3 = vpop.f32.mrf.mxu1  ;;  %v9406_v15 = vld [vmem:[#allocation25_spill] sm:$0xff]  ;;  %v9419_v41 = vpack.c.bf16 %v6876_v5, %v6872_v49  ;;  %v9426_v49 = vld [vmem:[#allocation102_spill] sm:$0xff] }
 0x3cc   :  { %v9420_v12 = vld [vmem:[#allocation61_spill] sm:$0xff] }
 0x3ce   :  { %2727 = vmatpush2.bf16.xpose.msra.mxu1 %v9373_v61  ;;  %v2485_v61 = vmul.f32 %v9385_v7, %v9384_v1  ;;  %v9396_v1 = vld [vmem:[#allocation35_spill] sm:$0xff]  ;;  %v9397_v7 = vld [vmem:[#allocation50_spill] sm:$0xff] }
 0x3cf   :  { %2728 = vmatprep.subr.bf16.mxu1 %v9376_v33  ;;  %v2487_v33 = vmul.f32 %v9387_v42, %v9386_v10  ;;  %v2478_v17 = vmul.f32 %v9397_v7, %v9396_v1  ;;  %v9398_v10 = vld [vmem:[#allocation38_spill] sm:$0xff]  ;;  %v9399_v42 = vld [vmem:[#allocation23_spill] sm:$0xff]  ;;  %v2470_v7 = vmul.f32 %v9407_v35, %v9406_v15 }
 0x3d0   :  { %v2480_v54 = vmul.f32 %v9399_v42, %v9398_v10  ;;  %v9408_v10 = vld [vmem:[#allocation26_spill] sm:$0xff]  ;;  %v9421_v15 = vld [vmem:[#allocation103_spill] sm:$0xff] }
 0x3d1   :  { %v2567_v44 = vpack.c.bf16 %v2487_v33, %v2485_v61  ;;  %v9409_v42 = vld [vmem:[#allocation30_spill] sm:$0xff]  ;;  %v2462_v35 = vmul.f32 %v9421_v15, %v9420_v12  ;;  %v9431_v12 = vld [vmem:[#allocation92_spill] sm:$0xff]  ;;  %v9432_v15 = vld [vmem:[#allocation101_spill] sm:$0xff] }
 0x3d2   :  { %v2564_v33 = vpack.c.bf16 %v2480_v54, %v2478_v17  ;;  %v9414_v54 = vld [vmem:[#allocation18_spill] sm:$0xff] }
 0x3d6   :  { %2729 = vmatpush2.bf16.xpose.msra.mxu1 %v9383_v60  ;;  %v2483_v60 = vmul.f32 %v9395_v19, %v9394_v30  ;;  %v2479_v30 = vmul.f32 %v9405_v11, %v9404_v2  ;;  %v2380_v19 = vpop.f32.mrf.mxu1  ;;  %v9415_v11 = vld [vmem:[#allocation115_spill] sm:$0xff]  ;;  %v7193_v2 = vld [vmem:[%s8912_s10 + $0x240] sm:$0xff] }
 0x3d7   :  { %2996 = vmatprep.subr.bf16.mxu1 %v2568_v59  ;;  %v9401_v59 = vld [vmem:[#allocation6_spill] sm:$0xff] }
 0x3d8   :  { %v2565_v61 = vpack.c.bf16 %v2483_v60, %v2481_v50  ;;  %v2563_v1 = vpack.c.bf16 %v2479_v30, %v2477_v24  ;;  %v9412_v50 = vld [vmem:[#allocation17_spill] sm:$0xff]  ;;  %v2468_v60 = vmul.f32 %v9415_v11, %v9414_v54  ;;  %v7216_v54 = vld [vmem:[%s8912_s10 + $0x220] sm:$0xff]  ;;  %v7223_v11 = vld [vmem:[%s8912_s10 + $0x230] sm:$0xff] }
 0x3d9   :  { %v2461_v5 = vmul.f32 %v7216_v54, %v9426_v49  ;;  %v9433_v49 = vld [vmem:[#allocation96_spill] sm:$0xff] }
 0x3dd   :  { %2731 = vmatmul.mubr.bf16.vlgmr.msra.gmra.mxu1 %v9400_v34  ;;  %v2472_v34 = vmul.f32 %v9409_v42, %v9408_v10  ;;  %v9423_v10 = vld [vmem:[#allocation105_spill] sm:$0xff] }
 0x3de   :  { %2740 = vmatprep.mubr.bf16.mxu1 %v9401_v59  ;;  %2997 = vmatpush1.bf16.msra.mxu1 %v2567_v44  ;;  %v2384_v59 = vpop.f32.mrf.mxu1  ;;  %v9413_v44 = vld [vmem:[#allocation107_spill] sm:$0xff] }
 0x3df   :  { %2998 = vmatprep.subr.bf16.mxu1 %v2566_v53  ;;  %v2466_v17 = vmul.f32 %v9413_v44, %v9412_v50  ;;  %v2560_v53 = vpack.c.bf16 %v2472_v34, %v2470_v7  ;;  %v9422_v7 = vld [vmem:[#allocation13_spill] sm:$0xff]  ;;  %v9424_v50 = vld [vmem:[#allocation7_spill] sm:$0xff]  ;;  %v9425_v44 = vld [vmem:[#allocation10_spill] sm:$0xff] }
 0x3e0   :  { %v2386_v24 = vpop.f32.mrf.mxu1  ;;  %v2464_v42 = vmul.f32 %v9423_v10, %v9422_v7  ;;  %v2460_v7 = vmul.f32 %v9432_v15, %v9431_v12  ;;  %v2514_v15 = vmul.f32 %v7159_v36, %v6949_v45  ;;  %v2511_v45 = vmul.f32 %v7132_v37, %v6999_v14  ;;  %v9441_v36 = vld [vmem:[#allocation79_spill] sm:$0xff] }
 0x3e1   :  { %v2558_v34 = vpack.c.bf16 %v2468_v60, %v2466_v17  ;;  %v9427_v17 = vld [vmem:[#allocation104_spill] sm:$0xff]  ;;  %v2502_v14 = vmul.f32 %v7018_v20, %v7046_v25 }
 0x3e2   :  { %2999 = vmatpush1.bf16.msra.mxu1 %v2565_v61  ;;  %v7200_v61 = vld [vmem:[%s8912_s10 + $0x250] sm:$0xff]  ;;  %v2463_v60 = vmul.f32 %v7223_v11, %v9427_v17  ;;  %v2556_v10 = vpack.c.bf16 %v2464_v42, %v2462_v35  ;;  %v2518_v42 = vmul.f32 %v2386_v24, %v6931_v29  ;;  %v2513_v29 = vmul.f32 %v7146_v47, %v6977_v56 }
 0x3e3   :  { %3000 = vmatprep.subr.bf16.mxu1 %v2564_v33  ;;  %v9418_v33 = vld [vmem:[#allocation112_spill] sm:$0xff]  ;;  %v2508_v47 = vmul.f32 %v7110_v28, %v7004_v55  ;;  %v9437_v28 = vld [vmem:[#allocation21_spill] sm:$0xff] }
 0x3e4   :  { %v2555_v17 = vpack.c.bf16 %v2463_v60, %v2461_v5  ;;  %v2516_v5 = vmul.f32 %v2380_v19, %v6926_v48  ;;  %v2509_v48 = vmul.f32 %v7122_v52, %v7009_v23  ;;  %v2504_v52 = vmul.f32 %v7050_v63, %v7036_v58  ;;  %v9445_v19 = vld [vmem:[#allocation78_spill] sm:$0xff] }
 0x3e5   :  { %2741 = vmatmul.mubr.bf16.gmra.mxu1 %v9410_v38  ;;  %v9417_v38 = vld [vmem:[#allocation106_spill] sm:$0xff]  ;;  %v2503_v37 = vmul.f32 %v7026_v4, %v9437_v28  ;;  %v9444_v4 = vld [vmem:[#allocation68_spill] sm:$0xff]  ;;  %v2600_v28 = vld [vmem:[%s8913_s1 + $0x38] sm:$0xff] }
 0x3e6   :  { %2750 = vmatprep.mubr.bf16.mxu1 %v9411_v40  ;;  %3001 = vmatpush1.bf16.msra.mxu1 %v2563_v1  ;;  %v2465_v30 = vmul.f32 %v7193_v2, %v9417_v38  ;;  %v2467_v1 = vmul.f32 %v7200_v61, %v9418_v33  ;;  %v2388_v40 = vpop.f32.mrf.mxu1  ;;  %v9429_v38 = vld [vmem:[#allocation91_spill] sm:$0xff]  ;;  %v9430_v33 = vld [vmem:[#allocation97_spill] sm:$0xff]  ;;  %v2579_v23 = vpack.c.bf16 %v2511_v45, %v2509_v48 }
 0x3e7   :  { %3002 = vmatprep.subr.bf16.mxu1 %v9416_v9  ;;  %v9428_v9 = vpack.c.bf16 %v6904_v6, %v6900_v21  ;;  %v7244_v21 = vld [vmem:[%s8912_s10 + $0x210] sm:$0xff]  ;;  %v9434_v6 = vld [vmem:[#allocation99_spill] sm:$0xff]  ;;  %v2519_v12 = vmul.f32 %v2388_v40, %v6921_v8  ;;  %v2512_v8 = vmul.f32 %v7144_v51, %v6972_v0  ;;  %v2505_v0 = vmul.f32 %v7058_v26, %v7041_v16  ;;  %v2596_v45 = vld [vmem:[%s8913_s1 + $0x18] sm:$0xff] }
 0x3e8   :  { %v9438_v26 = vld [vmem:[#allocation24_spill] sm:$0xff]  ;;  %v2576_v20 = vpack.c.bf16 %v2504_v52, %v2502_v14  ;;  %v9446_v40 = vpack.c.bf16 %v9444_v4, %v9445_v19  ;;  %v2604_v4 = vld [vmem:[%s8913_s1 + $0x58] sm:$0xff] }
 0x3e9   :  { %v9440_v51 = vld [vmem:[#allocation120_spill] sm:$0xff] }
 0x3ea   :  { %3003 = vmatpush1.bf16.msra.mxu1 %v9419_v41  ;;  %v2458_v41 = vmul.f32 %v9430_v33, %v9429_v38  ;;  %v2517_v33 = vmul.f32 %v2384_v59, %v6944_v22  ;;  %v2510_v22 = vmul.f32 %v7130_v39, %v6982_v57  ;;  %v2582_v59 = vpack.c.bf16 %v2516_v5, %v2514_v15  ;;  %v2594_v15 = vld [vmem:[%s8913_s1 + $0x8] sm:$0xff] }
 0x3eb   :  { %3004 = vmatprep.subr.bf16.mxu1 %v2560_v53  ;;  %v2557_v53 = vpack.c.bf16 %v2467_v1, %v2465_v30  ;;  %v2459_v1 = vmul.f32 %v7244_v21, %v9434_v6  ;;  %v2507_v39 = vmul.f32 %v7062_v13, %v7031_v46  ;;  %v9439_v46 = vld [vmem:[#allocation73_spill] sm:$0xff]  ;;  %v9454_v6 = vld [vmem:[#allocation70_spill] sm:$0xff] }
 0x3ec   :  { %v2554_v35 = vpack.c.bf16 %v2460_v7, %v2458_v41  ;;  %v2583_v24 = vpack.c.bf16 %v2519_v12, %v2517_v33  ;;  %v2580_v57 = vpack.c.bf16 %v2512_v8, %v2510_v22  ;;  %v2498_v13 = vmul.f32 %v9439_v46, %v9438_v26  ;;  %v9448_v41 = vld [vmem:[#allocation71_spill] sm:$0xff]  ;;  %v2595_v22 = vld [vmem:[%s8913_s1 + $0x10] sm:$0xff] }
 0x3ed   :  { %2751 = vmatmul.mubr.bf16.gmra.mxu1 %v9424_v50  ;;  %v2390_v50 = vpop.f32.mrf.mxu1  ;;  %v2577_v16 = vpack.c.bf16 %v2507_v39, %v2505_v0 }
 0x3ee   :  { %2760 = vmatprep.mubr.bf16.mxu1 %v9425_v44  ;;  %3005 = vmatpush1.bf16.msra.mxu1 %v9428_v9  ;;  %v7237_v44 = vld [vmem:[%s8912_s10 + $0x200] sm:$0xff]  ;;  %v9435_v9 = vld [vmem:[#allocation9_spill] sm:$0xff] }
 0x3ef   :  { %3006 = vmatprep.subr.bf16.mxu1 %v2558_v34  ;;  %v2457_v30 = vmul.f32 %v7237_v44, %v9433_v49  ;;  %v2520_v34 = vmul.f32 %v2390_v50, %v6939_v27  ;;  %v2515_v27 = vmul.f32 %v7169_v3, %v6967_v31  ;;  %v2506_v31 = vmul.f32 %v7060_v18, %v7014_v43  ;;  %v9436_v43 = vld [vmem:[#allocation20_spill] sm:$0xff]  ;;  %v9451_v50 = vld [vmem:[#allocation82_spill] sm:$0xff] }
 0x3f0   :  { %v2501_v55 = vmul.f32 %v6994_v32, %v9436_v43  ;;  %v2500_v3 = vmul.f32 %v9441_v36, %v9440_v51  ;;  %v9442_v32 = vld [vmem:[#allocation83_spill] sm:$0xff]  ;;  %v2601_v43 = vld [vmem:[%s8913_s1 + $0x40] sm:$0xff] }
 0x3f1   :  { %v2553_v38 = vpack.c.bf16 %v2459_v1, %v2457_v30  ;;  %v2584_v60 = vpack.c.bf16 %v2520_v34, %v2518_v42  ;;  %v2581_v56 = vpack.c.bf16 %v2515_v27, %v2513_v29  ;;  %v2578_v18 = vpack.c.bf16 %v2508_v47, %v2506_v31  ;;  %v9453_v30 = vld [vmem:[#allocation76_spill] sm:$0xff]  ;;  %v2598_v27 = vld [vmem:[%s8913_s1 + $0x28] sm:$0xff] }
 0x3f2   :  { %3007 = vmatpush1.bf16.msra.mxu1 %v2557_v53  ;;  %v2575_v25 = vpack.c.bf16 %v2503_v37, %v2501_v55  ;;  %v2574_v58 = vpack.c.bf16 %v2500_v3, %v2498_v13  ;;  %v9443_v63 = vpack.c.bf16 %v7118_v62, %v9442_v32  ;;  %v9447_v53 = vld [vmem:[#allocation77_spill] sm:$0xff]  ;;  %v9455_v1 = vpack.c.bf16 %v9453_v30, %v9454_v6  ;;  %v2606_v13 = vld [vmem:[%s8913_s1 + $0x68] sm:$0xff]  ;;  %v2603_v3 = vld [vmem:[%s8913_s1 + $0x50] sm:$0xff] }
 0x3f3   :  { %3008 = vmatprep.subr.bf16.mxu1 %v2556_v10  ;;  %v9449_v7 = vpack.c.bf16 %v9447_v53, %v9448_v41  ;;  %v9450_v10 = vld [vmem:[#allocation69_spill] sm:$0xff]  ;;  %v2605_v32 = vld [vmem:[%s8913_s1 + $0x60] sm:$0xff] }
 0x3f4   :  { %v9452_v49 = vpack.c.bf16 %v9450_v10, %v9451_v50 }
 0x3f5   :  { %2761 = vmatmul.mubr.bf16.gmra.mxu1 %v9435_v9 }
 0x3f6   :  { %3009 = vmatpush1.bf16.msra.mxu1 %v2555_v17  ;;  %v9456_v17 = vld [vmem:[#allocation111_spill] sm:$0xff] }
 0x3f7   :  { %3010 = vmatprep.subr.bf16.mxu1 %v2554_v35 }
 0x3fa   :  { %3011 = vmatpush1.bf16.msra.mxu1 %v2553_v38 }
 0x3fb   :  { %3012 = vmatprep.subr.bf16.mxu1 %v2584_v60  ;;  %v2593_v60 = vld [vmem:[%s8913_s1] sm:$0xff] }
 0x3fe   :  { %3013 = vmatpush2.bf16.msra.mxu1 %v2583_v24 }
 0x3ff   :  { %3014 = vmatprep.subr.bf16.mxu1 %v2582_v59  ;;  %v2597_v59 = vld [vmem:[%s8913_s1 + $0x20] sm:$0xff] }
 0x402   :  { %3015 = vmatpush2.bf16.msra.mxu1 %v2581_v56 }
 0x403   :  { %3016 = vmatprep.subr.bf16.mxu1 %v2580_v57  ;;  %v2602_v57 = vld [vmem:[%s8913_s1 + $0x48] sm:$0xff] }
 0x406   :  { %3017 = vmatpush2.bf16.msra.mxu1 %v2579_v23  ;;  %v2599_v23 = vld [vmem:[%s8913_s1 + $0x30] sm:$0xff] }
 0x407   :  { %3018 = vmatprep.subr.bf16.mxu1 %v2578_v18 }
 0x40a   :  { %3019 = vmatpush2.bf16.msra.mxu1 %v2577_v16 }
 0x40b   :  { %3020 = vmatprep.subr.bf16.mxu1 %v2576_v20 }
 0x40e   :  { %3021 = vmatpush2.bf16.msra.mxu1 %v2575_v25 }
 0x40f   :  { %3022 = vmatprep.subr.bf16.mxu1 %v2574_v58 }
 0x412   :  { %3023 = vmatpush2.bf16.msra.mxu1 %v9443_v63 }
 0x413   :  { %3024 = vmatprep.subr.bf16.mxu1 %v9446_v40 }
 0x416   :  { %3025 = vmatpush2.bf16.msra.mxu1 %v9449_v7  ;;  %v2610_v7 = vld [vmem:[%s8913_s1 + $0x88] sm:$0xff] }
 0x417   :  { %3026 = vmatprep.subr.bf16.mxu1 %v9452_v49  ;;  %v2607_v49 = vld [vmem:[%s8913_s1 + $0x70] sm:$0xff] }
 0x41a   :  { %3027 = vmatpush2.bf16.msra.mxu1 %v9455_v1 }
 0x41b   :  { %3182 = vmatprep.subr.mxu1 %v9456_v17  ;;  %v2659_v62 = vpop.f32.mrf.mxu0  ;;  %v2609_v17 = vld [vmem:[%s8913_s1 + $0x80] sm:$0xff] }
 0x41c   :  { %v7318_v8 = vadd.f32 %v2659_v62, %v2593_v60  ;;  %v2611_v60 = vld [vmem:[%s8913_s1 + $0x90] sm:$0xff] }
 0x41d   :  { %v2661_v35 = vpop.f32.mrf.mxu0 }
 0x41e   :  { %v7310_v29 = vadd.f32 %v2661_v35, %v2594_v15  ;;  %v2608_v35 = vld [vmem:[%s8913_s1 + $0x78] sm:$0xff] }
 0x41f   :  { %v2663_v42 = vpop.f32.mrf.mxu0 }
 0x420   :  { %v2771_v56 = vmax.f32 %v7318_v8, %v7310_v29  ;;  %v7338_v14 = vadd.f32 %v2663_v42, %v2597_v59  ;;  %v2613_v59 = vld [vmem:[%s8913_s1 + $0xa0] sm:$0xff] }
 0x421   :  { %v2665_v34 = vpop.f32.mrf.mxu0 }
 0x422   :  { %v7328_v31 = vadd.f32 %v2665_v34, %v2598_v27 }
 0x423   :  { %v2669_v9 = vpop.f32.mrf.mxu0 }
 0x424   :  { %v2776_v37 = vmax.f32 %v7338_v14, %v7328_v31  ;;  %v7362_v20 = vadd.f32 %v2669_v9, %v2601_v43 }
 0x425   :  { %v2671_v38 = vpop.f32.mrf.mxu0 }
 0x426   :  { %v7351_v16 = vadd.f32 %v2671_v38, %v2602_v57 }
 0x427   :  { %v2673_v33 = vpop.f32.mrf.mxu0 }
 0x428   :  { %v2781_v19 = vmax.f32 %v7362_v20, %v7351_v16  ;;  %v7386_v30 = vadd.f32 %v2673_v33, %v2605_v32  ;;  %v2614_v33 = vld [vmem:[%s8913_s1 + $0xa8] sm:$0xff] }
 0x429   :  { %v2675_v12 = vpop.f32.mrf.mxu0 }
 0x42a   :  { %v7375_v40 = vadd.f32 %v2675_v12, %v2606_v13  ;;  %v2617_v13 = vld [vmem:[%s8913_s1 + $0xc0] sm:$0xff] }
 0x42b   :  { %v2679_v5 = vpop.f32.mrf.mxu0 }
 0x42c   :  { %v2786_v42 = vmax.f32 %v7386_v30, %v7375_v40  ;;  %v7410_v27 = vadd.f32 %v2679_v5, %v2609_v17 }
 0x42d   :  { %v2681_v24 = vpop.f32.mrf.mxu0 }
 0x42e   :  { %v7399_v34 = vadd.f32 %v2681_v24, %v2610_v7 }
 0x42f   :  { %v2683_v0 = vpop.f32.mrf.mxu0 }
 0x431   :  { %v2685_v51 = vpop.f32.mrf.mxu0 }
 0x432   :  { %v7423_v57 = vadd.f32 %v2685_v51, %v2614_v33 }
 0x434   :  { %v2689_v10 = vpop.f32.mrf.mxu0 }
 0x435   :  { %v7458_v7 = vadd.f32 %v2689_v10, %v2617_v13 }
 0x436   :  { %v2691_v12 = vpop.f32.mrf.mxu0 }
 0x49d   :  { %v2732_v48 = vpop.f32.mrf.mxu1 }
 0x49e   :  { %v7330_v47 = vadd.f32 %v2732_v48, %v2595_v22 }
 0x49f   :  { %v2734_v39 = vpop.f32.mrf.mxu1 }
 0x4a0   :  { %v7340_v52 = vadd.f32 %v2734_v39, %v2596_v45  ;;  %v2772_v18 = vmax.f32 %v2771_v56, %v7330_v47  ;;  %v2612_v45 = vld [vmem:[%s8913_s1 + $0x98] sm:$0xff]  ;;  %v2791_v56 = vmax.f32 %v7410_v27, %v7399_v34 }
 0x4a1   :  { %v2736_v55 = vpop.f32.mrf.mxu1 }
 0x4a2   :  { %v7353_v26 = vadd.f32 %v2736_v55, %v2599_v23  ;;  %v2773_v46 = vmax.f32 %v2772_v18, %v7340_v52  ;;  %v2618_v23 = vld [vmem:[%s8913_s1 + $0xc8] sm:$0xff]  ;;  %v2693_v18 = vpop.f32.mrf.mxu0  ;;  %v2615_v55 = vld [vmem:[%s8913_s1 + $0xb0] sm:$0xff] }
 0x4a3   :  { %v2738_v36 = vpop.f32.mrf.mxu1 }
 0x4a4   :  { %v2777_v25 = vmax.f32 %v2776_v37, %v7353_v26  ;;  %v7365_v58 = vadd.f32 %v2738_v36, %v2600_v28  ;;  %2774 = vmax.xlane.f32.xlu0 %v2773_v46  ;;  %v7434_v28 = vadd.f32 %v2683_v0, %v2613_v59  ;;  %v2616_v36 = vld [vmem:[%s8913_s1 + $0xb8] sm:$0xff] }
 0x4a5   :  { %v2742_v63 = vpop.f32.mrf.mxu1 }
 0x4a6   :  { %v7377_v53 = vadd.f32 %v2742_v63, %v2603_v3  ;;  %v2778_v41 = vmax.f32 %v2777_v25, %v7365_v58  ;;  %v2796_v3 = vmax.f32 %v7434_v28, %v7423_v57  ;;  %v7447_v25 = vadd.f32 %v2691_v12, %v2618_v23  ;;  %v2622_v63 = vld [vmem:[%s8913_s1 + $0xe8] sm:$0xff]  ;;  %v2623_v12 = vld [vmem:[%s8913_s1 + $0xf0] sm:$0xff] }
 0x4a7   :  { %v2744_v50 = vpop.f32.mrf.mxu1 }
 0x4a8   :  { %v7388_v6 = vadd.f32 %v2744_v50, %v2604_v4  ;;  %2779 = vmax.xlane.f32.xlu0 %v2778_v41  ;;  %v2782_v1 = vmax.f32 %v2781_v19, %v7377_v53  ;;  %v2695_v4 = vpop.f32.mrf.mxu0  ;;  %v2619_v41 = vld [vmem:[%s8913_s1 + $0xd0] sm:$0xff] }
 0x4a9   :  { %v2746_v62 = vpop.f32.mrf.mxu1 }
 0x4aa   :  { %v7401_v9 = vadd.f32 %v2746_v62, %v2607_v49  ;;  %v2783_v38 = vmax.f32 %v2782_v1, %v7388_v6  ;;  %v2621_v1 = vld [vmem:[%s8913_s1 + $0xe0] sm:$0xff]  ;;  %v2620_v62 = vld [vmem:[%s8913_s1 + $0xd8] sm:$0xff] }
 0x4ab   :  { %v2748_v15 = vpop.f32.mrf.mxu1 }
 0x4ac   :  { %v2787_v22 = vmax.f32 %v2786_v42, %v7401_v9  ;;  %v7413_v24 = vadd.f32 %v2748_v15, %v2608_v35  ;;  %2784 = vmax.xlane.f32.xlu1 %v2783_v38  ;;  %v2801_v35 = vmax.f32 %v7458_v7, %v7447_v25  ;;  %v7471_v42 = vadd.f32 %v2695_v4, %v2622_v63 }
 0x4ad   :  { %v2752_v48 = vpop.f32.mrf.mxu1  ;;  %v7479_v15 = vadd.f32 %v2693_v18, %v2621_v1 }
 0x4ae   :  { %v7425_v5 = vadd.f32 %v2752_v48, %v2611_v60  ;;  %v2788_v39 = vmax.f32 %v2787_v22, %v7413_v24  ;;  %v2624_v48 = vld [vmem:[%s8913_s1 + $0xf8] sm:$0xff] }
 0x4af   :  { %v2754_v43 = vpop.f32.mrf.mxu1 }
 0x4b0   :  { %v2792_v37 = vmax.f32 %v2791_v56, %v7425_v5  ;;  %v7437_v46 = vadd.f32 %v2754_v43, %v2612_v45  ;;  %2789 = vmax.xlane.f32.xlu1 %v2788_v39  ;;  %v2806_v45 = vmax.f32 %v7479_v15, %v7471_v42 }
 0x4b1   :  { %v2756_v51 = vpop.f32.mrf.mxu1 }
 0x4b2   :  { %v7449_v0 = vadd.f32 %v2756_v51, %v2615_v55  ;;  %v2793_v32 = vmax.f32 %v2792_v37, %v7437_v46 }
 0x4b3   :  { %v2758_v19 = vpop.f32.mrf.mxu1 }
 0x4b4   :  { %v2797_v50 = vmax.f32 %v2796_v3, %v7449_v0  ;;  %v7461_v49 = vadd.f32 %v2758_v19, %v2616_v36  ;;  %2794 = vmax.xlane.f32.xlu0 %v2793_v32 }
 0x4b5   :  { %v2762_v17 = vpop.f32.mrf.mxu1 }
 0x4b6   :  { %v7473_v10 = vadd.f32 %v2762_v17, %v2619_v41  ;;  %v2798_v38 = vmax.f32 %v2797_v50, %v7461_v49 }
 0x4b7   :  { %v2764_v33 = vpop.f32.mrf.mxu1 }
 0x4b8   :  { %v2802_v60 = vmax.f32 %v2801_v35, %v7473_v10  ;;  %v7482_v22 = vadd.f32 %v2764_v33, %v2620_v62  ;;  %2799 = vmax.xlane.f32.xlu1 %v2798_v38 }
 0x4b9   :  { %v2766_v59 = vpop.f32.mrf.mxu1 }
 0x4ba   :  { %v7489_v56 = vadd.f32 %v2766_v59, %v2623_v12  ;;  %v2803_v39 = vmax.f32 %v2802_v60, %v7482_v22 }
 0x4bb   :  { %v2768_v23 = vpop.f32.mrf.mxu1 }
 0x4bc   :  { %v2807_v18 = vmax.f32 %v2806_v45, %v7489_v56  ;;  %v7493_v43 = vadd.f32 %v2768_v23, %v2624_v48  ;;  %2804 = vmax.xlane.f32.xlu0 %v2803_v39 }
 0x4be   :  { %v2808_v55 = vmax.f32 %v2807_v18, %v7493_v43 }
 0x4c0   :  { %2809 = vmax.xlane.f32.xlu1 %v2808_v55 }
 0x52d   :  { %v2775_v37 = vpop.xlane.xlu0 %2774 }
 0x52e   :  { %v2811_v13 = vsub.f32 %v7318_v8, %v2775_v37  ;;  %v2812_v51 = vsub.f32 %v7310_v29, %v2775_v37  ;;  %v2813_v36 = vsub.f32 %v7330_v47, %v2775_v37  ;;  %v2814_v3 = vsub.f32 %v7340_v52, %v2775_v37 }
 0x530   :  { %v2843_v32 = vmul.f32 1.442695, %v2811_v13  ;;  %v2845_v63 = vmul.f32 1.442695, %v2812_v51  ;;  %v2847_v4 = vmul.f32 1.442695, %v2813_v36 }
 0x531   :  { %v2849_v19 = vmul.f32 1.442695, %v2814_v3  ;;  %v2780_v41 = vpop.xlane.xlu0 %2779 }
 0x532   :  { %4567 = vpow2.f32 %v2843_v32  ;;  %v2815_v50 = vsub.f32 %v7338_v14, %v2780_v41  ;;  %v2816_v1 = vsub.f32 %v7328_v31, %v2780_v41  ;;  %v2817_v17 = vsub.f32 %v7353_v26, %v2780_v41 }
 0x533   :  { %4569 = vpow2.f32 %v2845_v63  ;;  %v2818_v8 = vsub.f32 %v7365_v58, %v2780_v41 }
 0x534   :  { %4571 = vpow2.f32 %v2847_v4  ;;  %v2851_v29 = vmul.f32 1.442695, %v2815_v50  ;;  %v2853_v47 = vmul.f32 1.442695, %v2816_v1  ;;  %v2855_v62 = vmul.f32 1.442695, %v2817_v17 }
 0x535   :  { %4573 = vpow2.f32 %v2849_v19  ;;  %v2857_v52 = vmul.f32 1.442695, %v2818_v8  ;;  %v2785_v35 = vpop.xlane.xlu1 %2784 }
 0x536   :  { %4575 = vpow2.f32 %v2851_v29  ;;  %v2819_v38 = vsub.f32 %v7362_v20, %v2785_v35  ;;  %v2820_v33 = vsub.f32 %v7351_v16, %v2785_v35  ;;  %v2821_v14 = vsub.f32 %v7377_v53, %v2785_v35 }
 0x537   :  { %4577 = vpow2.f32 %v2853_v47  ;;  %v2822_v31 = vsub.f32 %v7388_v6, %v2785_v35 }
 0x538   :  { %4579 = vpow2.f32 %v2855_v62  ;;  %v2859_v26 = vmul.f32 1.442695, %v2819_v38  ;;  %v2861_v58 = vmul.f32 1.442695, %v2820_v33  ;;  %v2863_v12 = vmul.f32 1.442695, %v2821_v14 }
 0x539   :  { %4581 = vpow2.f32 %v2857_v52  ;;  %v2865_v60 = vmul.f32 1.442695, %v2822_v31  ;;  %v2790_v59 = vpop.xlane.xlu1 %2789 }
 0x53a   :  { %4583 = vpow2.f32 %v2859_v26  ;;  %v2823_v48 = vsub.f32 %v7386_v30, %v2790_v59  ;;  %v2824_v45 = vsub.f32 %v7375_v40, %v2790_v59  ;;  %v2825_v20 = vsub.f32 %v7401_v9, %v2790_v59 }
 0x53b   :  { %4585 = vpow2.f32 %v2861_v58  ;;  %v2826_v16 = vsub.f32 %v7413_v24, %v2790_v59  ;;  %v4707_v58 = vld [vmem:[%s8912_s10 + $0xe8] sm:$0xff] }
 0x53c   :  { %4587 = vpow2.f32 %v2863_v12  ;;  %v2867_v53 = vmul.f32 1.442695, %v2823_v48  ;;  %v2869_v6 = vmul.f32 1.442695, %v2824_v45  ;;  %v2871_v39 = vmul.f32 1.442695, %v2825_v20 }
 0x53d   :  { %4589 = vpow2.f32 %v2865_v60  ;;  %v2873_v23 = vmul.f32 1.442695, %v2826_v16  ;;  %v2795_v18 = vpop.xlane.xlu0 %2794  ;;  %v4708_v20 = vld [vmem:[%s8912_s10 + $0x2f0] sm:$0xff] }
 0x53e   :  { %4591 = vpow2.f32 %v2867_v53  ;;  %v2827_v55 = vsub.f32 %v7410_v27, %v2795_v18  ;;  %v2828_v37 = vsub.f32 %v7399_v34, %v2795_v18  ;;  %v2830_v40 = vsub.f32 %v7437_v46, %v2795_v18  ;;  %v4709_v53 = vld [vmem:[%s8912_s10 + $0xe0] sm:$0xff] }
 0x53f   :  { %v7514_v30 = vpop.eup %4567  ;;  %4593 = vpow2.f32 %v2869_v6  ;;  %v2829_v27 = vsub.f32 %v7425_v5, %v2795_v18 }
 0x540   :  { %v7517_v9 = vpop.eup %4569  ;;  %4595 = vpow2.f32 %v2871_v39  ;;  %v2875_v24 = vmul.f32 1.442695, %v2827_v55  ;;  %v2877_v13 = vmul.f32 1.442695, %v2828_v37  ;;  %v2881_v36 = vmul.f32 1.442695, %v2830_v40 }
 0x541   :  { %v7519_v51 = vpop.eup %4571  ;;  %4597 = vpow2.f32 %v2873_v23  ;;  %v2800_v3 = vpop.xlane.xlu1 %2799  ;;  %v4713_v55 = vld [vmem:[%s8912_s10 + $0xd0] sm:$0xff] }
 0x542   :  { %v7521_v32 = vpop.eup %4573  ;;  %v2831_v34 = vsub.f32 %v7434_v28, %v2800_v3  ;;  %v2832_v63 = vsub.f32 %v7423_v57, %v2800_v3  ;;  %v2833_v46 = vsub.f32 %v7449_v0, %v2800_v3  ;;  %4599 = vpow2.f32 %v2875_v24 }
 0x543   :  { %v7527_v4 = vpop.eup %4575  ;;  %v2834_v19 = vsub.f32 %v7461_v49, %v2800_v3  ;;  %4601 = vpow2.f32 %v2877_v13  ;;  %v2879_v49 = vmul.f32 1.442695, %v2829_v27  ;;  %v4716_v3 = vld [vmem:[%s8912_s10 + $0x2d0] sm:$0xff]  ;;  %v4717_v27 = vld [vmem:[%s8912_s10 + $0xc0] sm:$0xff] }
 0x544   :  { %v7530_v41 = vpop.eup %4577  ;;  %v2883_v50 = vmul.f32 1.442695, %v2831_v34  ;;  %v2885_v1 = vmul.f32 1.442695, %v2832_v63  ;;  %v2887_v17 = vmul.f32 1.442695, %v2833_v46  ;;  %4603 = vpow2.f32 %v2881_v36 }
 0x545   :  { %v7532_v8 = vpop.eup %4579  ;;  %v2889_v5 = vmul.f32 1.442695, %v2834_v19  ;;  %v7534_v28 = vpop.xlane.xlu0 %2804  ;;  %v2908_v57 = vpack.c.bf16 %v7530_v41, %v7517_v9  ;;  %v2907_v0 = vpack.c.bf16 %v7527_v4, %v7514_v30  ;;  %v4715_v36 = vld [vmem:[%s8912_s10 + $0xc8] sm:$0xff] }
 0x546   :  { %v7540_v29 = vpop.eup %4581  ;;  %4605 = vpow2.f32 %v2883_v50  ;;  %v2836_v47 = vsub.f32 %v7447_v25, %v7534_v28  ;;  %v2838_v52 = vsub.f32 %v7482_v22, %v7534_v28  ;;  %v2909_v38 = vpack.c.bf16 %v7532_v8, %v7519_v51  ;;  %v4706_v25 = vld [vmem:[%s8912_s10 + $0xf0] sm:$0xff] }
 0x547   :  { %v7544_v62 = vpop.eup %4583  ;;  %4607 = vpow2.f32 %v2885_v1  ;;  %2955 = vmatprep.mubr.bf16.mxu0 %v2908_v57  ;;  %v2910_v35 = vpack.c.bf16 %v7540_v29, %v7521_v32  ;;  %v2837_v23 = vsub.f32 %v7473_v10, %v7534_v28  ;;  %v4714_v10 = vld [vmem:[%s8912_s10 + $0x2d8] sm:$0xff]  ;;  %v4718_v1 = vld [vmem:[%s8912_s10 + $0x2c8] sm:$0xff] }
 0x548   :  { %v7552_v33 = vpop.eup %4585  ;;  %4609 = vpow2.f32 %v2887_v17  ;;  %2956 = vmatmul.mubr.bf16.vlgmr.msra.gmra.mxu0 %v2907_v0  ;;  %v2893_v26 = vmul.f32 1.442695, %v2836_v47  ;;  %v2897_v45 = vmul.f32 1.442695, %v2838_v52  ;;  %v4720_v0 = vld [vmem:[%s8912_s10 + $0xb8] sm:$0xff] }
 0x549   :  { %v7554_v14 = vpop.eup %4587  ;;  %4611 = vpow2.f32 %v2889_v5  ;;  %3028 = vmatprep.mubr.bf16.mxu1 %v2910_v35  ;;  %3070 = vmatpush1.msra.mxu0 %v4706_v25  ;;  %v2810_v22 = vpop.xlane.xlu1 %2809  ;;  %v2895_v5 = vmul.f32 1.442695, %v2837_v23  ;;  %v4722_v35 = vld [vmem:[%s8912_s10 + $0xb0] sm:$0xff] }
 0x54a   :  { %v7559_v31 = vpop.eup %4589  ;;  %3029 = vmatmul.mubr.bf16.vlgmr.msra.gmra.mxu1 %v2909_v38  ;;  %3071 = vmatprep.subr.mxu0 %v4707_v58  ;;  %v2839_v12 = vsub.f32 %v7479_v15, %v2810_v22  ;;  %v2840_v60 = vsub.f32 %v7471_v42, %v2810_v22  ;;  %v2841_v59 = vsub.f32 %v7489_v56, %v2810_v22  ;;  %4613 = vpow2.f32 %v2879_v49  ;;  %v4710_v56 = vld [vmem:[%s8912_s10 + $0x2e8] sm:$0xff]  ;;  %v4721_v49 = vld [vmem:[%s8912_s10 + $0x2b8] sm:$0xff]  ;;  %v4723_v38 = vld [vmem:[%s8912_s10 + $0x2b0] sm:$0xff] }
 0x54b   :  { %v7567_v48 = vpop.eup %4591  ;;  %3183 = vmatpush1.msra.mxu1 %v4708_v20  ;;  %v2842_v16 = vsub.f32 %v7493_v43, %v2810_v22  ;;  %3072 = vmatpush1.msra.mxu0 %v4709_v53  ;;  %v2835_v42 = vsub.f32 %v7458_v7, %v7534_v28  ;;  %v4711_v43 = vld [vmem:[%s8912_s10 + $0xd8] sm:$0xff]  ;;  %v4712_v7 = vld [vmem:[%s8912_s10 + $0x2e0] sm:$0xff]  ;;  %4615 = vpow2.f32 %v2893_v26  ;;  %v4724_v22 = vld [vmem:[%s8912_s10 + $0xa8] sm:$0xff] }
 0x54c   :  { %v7576_v15 = vpop.eup %4593  ;;  %3184 = vmatprep.subr.mxu1 %v4710_v56  ;;  %v2901_v6 = vmul.f32 1.442695, %v2840_v60  ;;  %3073 = vmatprep.subr.mxu0 %v4711_v43  ;;  %v2899_v24 = vmul.f32 1.442695, %v2839_v12  ;;  %v2903_v13 = vmul.f32 1.442695, %v2841_v59  ;;  %4617 = vpow2.f32 %v2897_v45 }
 0x54d   :  { %v7586_v39 = vpop.eup %4595  ;;  %v2905_v18 = vmul.f32 1.442695, %v2842_v16  ;;  %3185 = vmatpush1.msra.mxu1 %v4712_v7  ;;  %3074 = vmatpush1.msra.mxu0 %v4713_v55  ;;  %v2912_v37 = vpack.c.bf16 %v7576_v15, %v7552_v33  ;;  %v2911_v63 = vpack.c.bf16 %v7567_v48, %v7544_v62  ;;  %v2891_v50 = vmul.f32 1.442695, %v2835_v42  ;;  %v4719_v28 = vld [vmem:[%s8912_s10 + $0x2c0] sm:$0xff]  ;;  %v4725_v26 = vld [vmem:[%s8912_s10 + $0x2a8] sm:$0xff] }
 0x54e   :  { %v7598_v40 = vpop.eup %4597  ;;  %3186 = vmatprep.subr.mxu1 %v4714_v10  ;;  %3075 = vmatprep.subr.mxu0 %v4715_v36  ;;  %v2913_v46 = vpack.c.bf16 %v7586_v39, %v7554_v14  ;;  %4619 = vpow2.f32 %v2901_v6  ;;  %v4726_v12 = vld [vmem:[%s8912_s10 + $0xa0] sm:$0xff]  ;;  %v4728_v59 = vld [vmem:[%s8912_s10 + $0x98] sm:$0xff]  ;;  %v4730_v42 = vld [vmem:[%s8912_s10 + $0x90] sm:$0xff] }
 0x54f   :  { %3187 = vmatpush1.msra.mxu1 %v4716_v3  ;;  %3076 = vmatpush1.msra.mxu0 %v4717_v27  ;;  %v2914_v34 = vpack.c.bf16 %v7598_v40, %v7559_v31  ;;  %v7618_v19 = vpop.eup %4599  ;;  %4621 = vpow2.f32 %v2905_v18  ;;  %v4727_v60 = vld [vmem:[%s8912_s10 + $0x2a0] sm:$0xff]  ;;  %v4729_v45 = vld [vmem:[%s8912_s10 + $0x298] sm:$0xff]  ;;  %v4731_v56 = vld [vmem:[%s8912_s10 + $0x290] sm:$0xff] }
 0x550   :  { %3188 = vmatprep.subr.mxu1 %v4718_v1  ;;  %2965 = vmatprep.mubr.bf16.mxu0 %v2912_v37  ;;  %v7623_v17 = vpop.eup %4601  ;;  %4623 = vpow2.f32 %v2899_v24  ;;  %v4732_v6 = vld [vmem:[%s8912_s10 + $0x88] sm:$0xff]  ;;  %v4734_v7 = vld [vmem:[%s8912_s10 + $0x80] sm:$0xff]  ;;  %v4737_v10 = vld [vmem:[%s8912_s10 + $0x278] sm:$0xff] }
 0x551   :  { %3189 = vmatpush1.msra.mxu1 %v4719_v28  ;;  %3038 = vmatprep.mubr.bf16.mxu1 %v2914_v34  ;;  %v7628_v57 = vpop.eup %4603  ;;  %4625 = vpow2.f32 %v2903_v13  ;;  %v4733_v43 = vld [vmem:[%s8912_s10 + $0x288] sm:$0xff]  ;;  %v4735_v55 = vld [vmem:[%s8912_s10 + $0x280] sm:$0xff]  ;;  %v4736_v13 = vld [vmem:[%s8912_s10 + $0x78] sm:$0xff] }
 0x552   :  { %3077 = vmatprep.subr.mxu0 %v4720_v0  ;;  %3190 = vmatprep.subr.mxu1 %v4721_v49  ;;  %4627 = vpow2.f32 %v2891_v50  ;;  %v4738_v27 = vld [vmem:[%s8912_s10 + $0x70] sm:$0xff]  ;;  %v4741_v50 = vld [vmem:[%s8912_s10 + $0x268] sm:$0xff]  ;;  %v4743_v28 = vld [vmem:[%s8912_s10 + $0x260] sm:$0xff] }
 0x553   :  { %v7636_v47 = vpop.eup %4605  ;;  %2966 = vmatmul.mubr.bf16.gmra.mxu0 %v2911_v63  ;;  %3039 = vmatmul.mubr.bf16.gmra.mxu1 %v2913_v46  ;;  %4629 = vpow2.f32 %v2895_v5  ;;  %v4739_v34 = vld [vmem:[%s8912_s10 + $0x270] sm:$0xff]  ;;  %v4740_v46 = vld [vmem:[%s8912_s10 + $0x68] sm:$0xff]  ;;  %v4742_v5 = vld [vmem:[%s8912_s10 + $0x60] sm:$0xff] }
 0x554   :  { %v7638_v52 = vpop.eup %4607  ;;  %3078 = vmatpush1.msra.mxu0 %v4722_v35  ;;  %3191 = vmatpush1.msra.mxu1 %v4723_v38  ;;  %v2915_v23 = vpack.c.bf16 %v7636_v47, %v7618_v19  ;;  %v4744_v49 = vld [vmem:[%s8912_s10 + $0x58] sm:$0xff] }
 0x555   :  { %v7646_v25 = vpop.eup %4609  ;;  %3079 = vmatprep.subr.mxu0 %v4724_v22  ;;  %3192 = vmatprep.subr.mxu1 %v4725_v26  ;;  %v2916_v20 = vpack.c.bf16 %v7638_v52, %v7623_v17  ;;  %v4745_v35 = vld [vmem:[%s8912_s10 + $0x258] sm:$0xff] }
 0x556   :  { %v7654_v58 = vpop.eup %4611  ;;  %3080 = vmatpush1.msra.mxu0 %v4726_v12  ;;  %3193 = vmatpush1.msra.mxu1 %v4727_v60  ;;  %v4746_v12 = vld [vmem:[%s8912_s10 + $0x50] sm:$0xff]  ;;  %v4747_v60 = vld [vmem:[%s8912_s10 + $0x48] sm:$0xff] }
 0x557   :  { %3081 = vmatprep.subr.mxu0 %v4728_v59  ;;  %3194 = vmatprep.subr.mxu1 %v4729_v45  ;;  %v2918_v16 = vpack.c.bf16 %v7654_v58, %v7628_v57  ;;  %v7672_v53 = vpop.eup %4613  ;;  %v4748_v59 = vld [vmem:[%s8912_s10 + $0x248] sm:$0xff] }
 0x558   :  { %3082 = vmatpush1.msra.mxu0 %v4730_v42  ;;  %3195 = vmatpush1.msra.mxu1 %v4731_v56  ;;  %v2917_v18 = vpack.c.bf16 %v7646_v25, %v7672_v53  ;;  %v7696_v37 = vpop.eup %4615  ;;  %v4751_v42 = vld [vmem:[%s8912_s10 + $0x238] sm:$0xff]  ;;  %v4752_v56 = vld [vmem:[%s8912_s10 + $0x30] sm:$0xff] }
 0x559   :  { %3083 = vmatprep.subr.mxu0 %v4732_v6  ;;  %3196 = vmatprep.subr.mxu1 %v4733_v43  ;;  %v7698_v24 = vpop.eup %4617  ;;  %v4754_v6 = vld [vmem:[%s8912_s10 + $0x228] sm:$0xff]  ;;  %v4755_v43 = vld [vmem:[%s8912_s10 + $0x20] sm:$0xff] }
 0x55a   :  { %3084 = vmatpush1.msra.mxu0 %v4734_v7  ;;  %3197 = vmatpush1.msra.mxu1 %v4735_v55  ;;  %v4763_v7 = vld [vmem:[%s8912_s10 + $0x3f8] sm:$0xff]  ;;  %v4764_v55 = vld [vmem:[%s8912_s10 + $0x1f0] sm:$0xff] }
 0x55b   :  { %2975 = vmatprep.mubr.bf16.mxu0 %v2916_v20  ;;  %3048 = vmatprep.mubr.bf16.mxu1 %v2918_v16  ;;  %v7706_v36 = vpop.eup %4619  ;;  %v4750_v16 = vld [vmem:[%s8912_s10 + $0x38] sm:$0xff] }
 0x55c   :  { %3085 = vmatprep.subr.mxu0 %v4736_v13  ;;  %3198 = vmatprep.subr.mxu1 %v4737_v10  ;;  %v7708_v3 = vpop.eup %4621  ;;  %v2920_v38 = vpack.c.bf16 %v7706_v36, %v7696_v37  ;;  %v4765_v13 = vld [vmem:[%s8912_s10 + $0x3f0] sm:$0xff]  ;;  %v4767_v10 = vld [vmem:[%s8912_s10 + $0x3e8] sm:$0xff] }
 0x55d   :  { %2976 = vmatmul.mubr.bf16.gmra.mxu0 %v2915_v23  ;;  %3049 = vmatmul.mubr.bf16.gmra.mxu1 %v2917_v18  ;;  %v7716_v63 = vpop.eup %4623  ;;  %v2922_v22 = vpack.c.bf16 %v7708_v3, %v7698_v24  ;;  %v4760_v23 = vld [vmem:[%s8912_s10 + $0x208] sm:$0xff]  ;;  %v4761_v18 = vld [vmem:[%s8912_s10] sm:$0xff] }
 0x55e   :  { %3086 = vmatpush1.msra.mxu0 %v4738_v27  ;;  %3199 = vmatpush1.msra.mxu1 %v4739_v34  ;;  %v7724_v1 = vpop.eup %4625  ;;  %v4768_v27 = vld [vmem:[%s8912_s10 + $0x1e0] sm:$0xff] }
 0x55f   :  { %3087 = vmatprep.subr.mxu0 %v4740_v46  ;;  %3200 = vmatprep.subr.mxu1 %v4741_v50  ;;  %v7732_v0 = vpop.eup %4627  ;;  %v4769_v34 = vld [vmem:[%s8912_s10 + $0x3e0] sm:$0xff]  ;;  %v4770_v46 = vld [vmem:[%s8912_s10 + $0x1d8] sm:$0xff] }
 0x560   :  { %3088 = vmatpush1.msra.mxu0 %v4742_v5  ;;  %3201 = vmatpush1.msra.mxu1 %v4743_v28  ;;  %v7744_v26 = vpop.eup %4629  ;;  %v2919_v45 = vpack.c.bf16 %v7716_v63, %v7732_v0  ;;  %v4771_v50 = vld [vmem:[%s8912_s10 + $0x3d8] sm:$0xff]  ;;  %v4772_v5 = vld [vmem:[%s8912_s10 + $0x1d0] sm:$0xff] }
 0x561   :  { %3089 = vmatprep.subr.mxu0 %v4744_v49  ;;  %3202 = vmatprep.subr.mxu1 %v4745_v35  ;;  %v2921_v20 = vpack.c.bf16 %v7724_v1, %v7744_v26  ;;  %v4773_v28 = vld [vmem:[%s8912_s10 + $0x3d0] sm:$0xff]  ;;  %v4774_v49 = vld [vmem:[%s8912_s10 + $0x1c8] sm:$0xff] }
 0x562   :  { %3090 = vmatpush1.msra.mxu0 %v4746_v12  ;;  %3203 = vmatpush1.msra.mxu1 %v7200_v61  ;;  %v4749_v61 = vld [vmem:[%s8912_s10 + $0x40] sm:$0xff]  ;;  %v4775_v35 = vld [vmem:[%s8912_s10 + $0x3c8] sm:$0xff]  ;;  %v4778_v12 = vld [vmem:[%s8912_s10 + $0x1b8] sm:$0xff] }
 0x563   :  { %3091 = vmatprep.subr.mxu0 %v4747_v60  ;;  %3204 = vmatprep.subr.mxu1 %v4748_v59  ;;  %v4779_v60 = vld [vmem:[%s8912_s10 + $0x3b8] sm:$0xff]  ;;  %v4780_v59 = vld [vmem:[%s8912_s10 + $0x1b0] sm:$0xff] }
 0x564   :  { %3092 = vmatpush1.msra.mxu0 %v4749_v61  ;;  %3205 = vmatpush1.msra.mxu1 %v7193_v2  ;;  %v4753_v2 = vld [vmem:[%s8912_s10 + $0x28] sm:$0xff] }
 0x565   :  { %2985 = vmatprep.mubr.bf16.mxu0 %v2920_v38  ;;  %3058 = vmatprep.mubr.bf16.mxu1 %v2922_v22  ;;  %v4776_v38 = vld [vmem:[%s8912_s10 + $0x1c0] sm:$0xff]  ;;  %v4783_v61 = vld [vmem:[%s8912_s10 + $0x3a8] sm:$0xff] }
 0x566   :  { %3093 = vmatprep.subr.mxu0 %v4750_v16  ;;  %3206 = vmatprep.subr.mxu1 %v4751_v42  ;;  %v4777_v22 = vld [vmem:[%s8912_s10 + $0x3c0] sm:$0xff] }
 0x567   :  { %2986 = vmatmul.mubr.bf16.gmra.mxu0 %v2919_v45  ;;  %3059 = vmatmul.mubr.bf16.gmra.mxu1 %v2921_v20  ;;  %v4781_v45 = vld [vmem:[%s8912_s10 + $0x3b0] sm:$0xff]  ;;  %v4782_v20 = vld [vmem:[%s8912_s10 + $0x1a8] sm:$0xff]  ;;  %v4784_v16 = vld [vmem:[%s8912_s10 + $0x1a0] sm:$0xff] }
 0x568   :  { %3094 = vmatpush1.msra.mxu0 %v4752_v56  ;;  %3207 = vmatpush1.msra.mxu1 %v7223_v11  ;;  %v4756_v11 = vld [vmem:[%s8912_s10 + $0x18] sm:$0xff]  ;;  %v4785_v42 = vld [vmem:[%s8912_s10 + $0x3a0] sm:$0xff] }
 0x569   :  { %3095 = vmatprep.subr.mxu0 %v4753_v2  ;;  %3133 = vmatprep.mubr.f32.mxu0 %v7517_v9  ;;  %v4757_v9 = vld [vmem:[%s8912_s10 + $0x218] sm:$0xff] }
 0x56a   :  { %3208 = vmatprep.subr.mxu1 %v4754_v6  ;;  %3246 = vmatprep.mubr.f32.mxu1 %v7521_v32  ;;  %v4758_v32 = vld [vmem:[%s8912_s10 + $0x10] sm:$0xff]  ;;  %v4786_v56 = vld [vmem:[%s8912_s10 + $0x198] sm:$0xff] }
 0x56b   :  { %3096 = vmatpush1.msra.mxu0 %v4755_v43  ;;  %3209 = vmatpush1.msra.mxu1 %v7216_v54  ;;  %v4759_v54 = vld [vmem:[%s8912_s10 + $0x8] sm:$0xff]  ;;  %v4787_v2 = vld [vmem:[%s8912_s10 + $0x398] sm:$0xff]  ;;  %v4788_v6 = vld [vmem:[%s8912_s10 + $0x190] sm:$0xff] }
 0x56c   :  { %3097 = vmatprep.subr.mxu0 %v4756_v11  ;;  %3210 = vmatprep.subr.mxu1 %v4757_v9  ;;  %v4789_v43 = vld [vmem:[%s8912_s10 + $0x390] sm:$0xff]  ;;  %v4790_v11 = vld [vmem:[%s8912_s10 + $0x188] sm:$0xff] }
 0x56d   :  { %3098 = vmatpush1.msra.mxu0 %v4758_v32  ;;  %3211 = vmatpush1.msra.mxu1 %v7244_v21  ;;  %v4762_v21 = vld [vmem:[%s8912_s10 + $0x1f8] sm:$0xff]  ;;  %v4791_v9 = vld [vmem:[%s8912_s10 + $0x388] sm:$0xff]  ;;  %v4792_v32 = vld [vmem:[%s8912_s10 + $0x180] sm:$0xff] }
 0x56e   :  { %3099 = vmatprep.subr.mxu0 %v4759_v54  ;;  %3212 = vmatprep.subr.mxu1 %v4760_v23  ;;  %v4793_v54 = vld [vmem:[%s8912_s10 + $0x380] sm:$0xff]  ;;  %v4794_v23 = vld [vmem:[%s8912_s10 + $0x178] sm:$0xff] }
 0x56f   :  { %3100 = vmatpush1.msra.mxu0 %v4761_v18  ;;  %3213 = vmatpush1.msra.mxu1 %v7237_v44  ;;  %v4766_v44 = vld [vmem:[%s8912_s10 + $0x1e8] sm:$0xff]  ;;  %v4795_v18 = vld [vmem:[%s8912_s10 + $0x378] sm:$0xff] }
 0x570   :  { %3101 = vmatprep.subr.mxu0 %v4762_v21  ;;  %3214 = vmatprep.subr.mxu1 %v4763_v7  ;;  %v4796_v21 = vld [vmem:[%s8912_s10 + $0x170] sm:$0xff] }
 0x571   :  { %3102 = vmatpush2.msra.mxu0 %v4764_v55  ;;  %3215 = vmatpush2.msra.mxu1 %v4765_v13  ;;  %v4797_v7 = vld [vmem:[%s8912_s10 + $0x370] sm:$0xff]  ;;  %v4798_v55 = vld [vmem:[%s8912_s10 + $0x168] sm:$0xff] }
 0x572   :  { %3103 = vmatprep.subr.mxu0 %v4766_v44  ;;  %3216 = vmatprep.subr.mxu1 %v4767_v10  ;;  %v4799_v13 = vld [vmem:[%s8912_s10 + $0x368] sm:$0xff]  ;;  %v4800_v44 = vld [vmem:[%s8912_s10 + $0x160] sm:$0xff] }
 0x573   :  { %3104 = vmatpush2.msra.mxu0 %v4768_v27  ;;  %3217 = vmatpush2.msra.mxu1 %v4769_v34  ;;  %v4801_v10 = vld [vmem:[%s8912_s10 + $0x360] sm:$0xff]  ;;  %v4802_v27 = vld [vmem:[%s8912_s10 + $0x158] sm:$0xff] }
 0x574   :  { %3105 = vmatprep.subr.mxu0 %v4770_v46  ;;  %3218 = vmatprep.subr.mxu1 %v4771_v50  ;;  %v4803_v34 = vld [vmem:[%s8912_s10 + $0x358] sm:$0xff]  ;;  %v4804_v46 = vld [vmem:[%s8912_s10 + $0x150] sm:$0xff] }
 0x575   :  { %3106 = vmatpush2.msra.mxu0 %v4772_v5  ;;  %3219 = vmatpush2.msra.mxu1 %v4773_v28  ;;  %v4805_v50 = vld [vmem:[%s8912_s10 + $0x350] sm:$0xff]  ;;  %v4806_v5 = vld [vmem:[%s8912_s10 + $0x148] sm:$0xff] }
 0x576   :  { %3107 = vmatprep.subr.mxu0 %v4774_v49  ;;  %3220 = vmatprep.subr.mxu1 %v4775_v35  ;;  %v4807_v28 = vld [vmem:[%s8912_s10 + $0x348] sm:$0xff]  ;;  %v4808_v49 = vld [vmem:[%s8912_s10 + $0x140] sm:$0xff] }
 0x577   :  { %3108 = vmatpush2.msra.mxu0 %v4776_v38  ;;  %3221 = vmatpush2.msra.mxu1 %v4777_v22  ;;  %v4809_v35 = vld [vmem:[%s8912_s10 + $0x340] sm:$0xff]  ;;  %v4810_v38 = vld [vmem:[%s8912_s10 + $0x138] sm:$0xff] }
 0x578   :  { %3109 = vmatprep.subr.mxu0 %v4778_v12  ;;  %3222 = vmatprep.subr.mxu1 %v4779_v60  ;;  %v4811_v22 = vld [vmem:[%s8912_s10 + $0x338] sm:$0xff]  ;;  %v4812_v12 = vld [vmem:[%s8912_s10 + $0x130] sm:$0xff] }
 0x579   :  { %3110 = vmatpush2.msra.mxu0 %v4780_v59  ;;  %3223 = vmatpush2.msra.mxu1 %v4781_v45  ;;  %v4813_v60 = vld [vmem:[%s8912_s10 + $0x330] sm:$0xff]  ;;  %v4814_v59 = vld [vmem:[%s8912_s10 + $0x128] sm:$0xff] }
 0x57a   :  { %3111 = vmatprep.subr.mxu0 %v4782_v20  ;;  %3224 = vmatprep.subr.mxu1 %v4783_v61  ;;  %v4815_v45 = vld [vmem:[%s8912_s10 + $0x328] sm:$0xff]  ;;  %v4816_v20 = vld [vmem:[%s8912_s10 + $0x120] sm:$0xff] }
 0x57b   :  { %3112 = vmatpush2.msra.mxu0 %v4784_v16  ;;  %3225 = vmatpush2.msra.mxu1 %v4785_v42  ;;  %v4817_v61 = vld [vmem:[%s8912_s10 + $0x320] sm:$0xff]  ;;  %v4818_v16 = vld [vmem:[%s8912_s10 + $0x118] sm:$0xff] }
 0x57c   :  { %3113 = vmatprep.subr.mxu0 %v4786_v56  ;;  %3226 = vmatprep.subr.mxu1 %v4787_v2  ;;  %v4819_v42 = vld [vmem:[%s8912_s10 + $0x318] sm:$0xff]  ;;  %v4820_v56 = vld [vmem:[%s8912_s10 + $0x110] sm:$0xff] }
 0x57d   :  { %3114 = vmatpush2.msra.mxu0 %v4788_v6  ;;  %3227 = vmatpush2.msra.mxu1 %v4789_v43  ;;  %v4821_v2 = vld [vmem:[%s8912_s10 + $0x310] sm:$0xff]  ;;  %v4822_v6 = vld [vmem:[%s8912_s10 + $0x108] sm:$0xff] }
 0x57e   :  { %3115 = vmatprep.subr.mxu0 %v4790_v11  ;;  %3228 = vmatprep.subr.mxu1 %v4791_v9  ;;  %v4823_v43 = vld [vmem:[%s8912_s10 + $0x308] sm:$0xff]  ;;  %v4824_v11 = vld [vmem:[%s8912_s10 + $0x100] sm:$0xff] }
 0x57f   :  { %3116 = vmatpush2.msra.mxu0 %v4792_v32  ;;  %3229 = vmatpush2.msra.mxu1 %v4793_v54  ;;  %v4825_v9 = vld [vmem:[%s8912_s10 + $0x300] sm:$0xff] }
 0x580   :  { %3117 = vmatprep.subr.mxu0 %v4794_v23  ;;  %3230 = vmatprep.subr.mxu1 %v4795_v18  ;;  %v4566_v32 = vld [vmem:[%s8914_s11 + $0x84] ss:$8 sps:$4 sm:$0xff]   ;;  %v4564_v54 = vld [vmem:[%s8914_s11 + $0x80] ss:$8 sps:$4 sm:$0xff]   ;;  %v3643_v23 = vld [vmem:[%s8915_s13 + $0xf8] sm:$0xff] }
 0x581   :  { %3118 = vmatpush2.msra.mxu0 %v4796_v21  ;;  %3231 = vmatpush2.msra.mxu1 %v4797_v7  ;;  %v8130_v18 = vld [vmem:[%s8915_s13 + $0xf0] sm:$0xff]  ;;  %v8135_v21 = vld [vmem:[%s8915_s13 + $0xe8] sm:$0xff]  ;;  %v8140_v7 = vld [vmem:[%s8915_s13 + $0xe0] sm:$0xff] }
 0x582   :  { %3119 = vmatprep.subr.mxu0 %v4798_v55  ;;  %3232 = vmatprep.subr.mxu1 %v4799_v13  ;;  %v8146_v55 = vld [vmem:[%s8915_s13 + $0xd8] sm:$0xff]  ;;  %v8152_v13 = vld [vmem:[%s8915_s13 + $0xd0] sm:$0xff] }
 0x583   :  { %3120 = vmatpush2.msra.mxu0 %v4800_v44  ;;  %3233 = vmatpush2.msra.mxu1 %v4801_v10  ;;  %v8158_v44 = vld [vmem:[%s8915_s13 + $0xc8] sm:$0xff]  ;;  %v8164_v10 = vld [vmem:[%s8915_s13 + $0xc0] sm:$0xff] }
 0x584   :  { %3121 = vmatprep.subr.mxu0 %v4802_v27  ;;  %3234 = vmatprep.subr.mxu1 %v4803_v34  ;;  %v8170_v27 = vld [vmem:[%s8915_s13 + $0xb8] sm:$0xff]  ;;  %v8176_v34 = vld [vmem:[%s8915_s13 + $0xb0] sm:$0xff] }
 0x585   :  { %3122 = vmatpush2.msra.mxu0 %v4804_v46  ;;  %3235 = vmatpush2.msra.mxu1 %v4805_v50  ;;  %v8182_v46 = vld [vmem:[%s8915_s13 + $0xa8] sm:$0xff]  ;;  %v8188_v50 = vld [vmem:[%s8915_s13 + $0xa0] sm:$0xff] }
 0x586   :  { %3123 = vmatprep.subr.mxu0 %v4806_v5  ;;  %3236 = vmatprep.subr.mxu1 %v4807_v28  ;;  %v8194_v5 = vld [vmem:[%s8915_s13 + $0x98] sm:$0xff]  ;;  %v8200_v28 = vld [vmem:[%s8915_s13 + $0x90] sm:$0xff] }
 0x587   :  { %3124 = vmatpush2.msra.mxu0 %v4808_v49  ;;  %3237 = vmatpush2.msra.mxu1 %v4809_v35  ;;  %v8206_v49 = vld [vmem:[%s8915_s13 + $0x88] sm:$0xff] }
 0x588   :  { %3125 = vmatprep.subr.mxu0 %v4810_v38  ;;  %3238 = vmatprep.subr.mxu1 %v4811_v22  ;;  %v8216_v22 = vld [vmem:[%s8915_s13 + $0x80] sm:$0xff] }
 0x589   :  { %3126 = vmatpush2.msra.mxu0 %v4812_v12  ;;  %3239 = vmatpush2.msra.mxu1 %v4813_v60  ;;  %v8222_v12 = vld [vmem:[%s8915_s13 + $0x78] sm:$0xff]  ;;  %v8228_v60 = vld [vmem:[%s8915_s13 + $0x70] sm:$0xff] }
 0x58a   :  { %3127 = vmatprep.subr.mxu0 %v4814_v59  ;;  %3240 = vmatprep.subr.mxu1 %v4815_v45  ;;  %9457 = vst [vmem:[#allocation67_spill] sm:$0xff] %v8228_v60  ;;  %v8234_v59 = vld [vmem:[%s8915_s13 + $0x68] sm:$0xff] }
 0x58b   :  { %3128 = vmatpush2.msra.mxu0 %v4816_v20  ;;  %3241 = vmatpush2.msra.mxu1 %v4817_v61  ;;  %9458 = vst [vmem:[#allocation80_spill] sm:$0xff] %v8234_v59  ;;  %v8244_v61 = vld [vmem:[%s8915_s13 + $0x60] sm:$0xff] }
 0x58c   :  { %3129 = vmatprep.subr.mxu0 %v4818_v16  ;;  %3242 = vmatprep.subr.mxu1 %v4819_v42  ;;  %9459 = vst [vmem:[#allocation72_spill] sm:$0xff] %v8244_v61  ;;  %v8250_v16 = vld [vmem:[%s8915_s13 + $0x58] sm:$0xff]  ;;  %v8256_v42 = vld [vmem:[%s8915_s13 + $0x50] sm:$0xff] }
 0x58d   :  { %3130 = vmatpush2.msra.mxu0 %v4820_v56  ;;  %3243 = vmatpush2.msra.mxu1 %v4821_v2  ;;  %9460 = vst [vmem:[#allocation86_spill] sm:$0xff] %v8250_v16  ;;  %9461 = vst [vmem:[#allocation60_spill] sm:$0xff] %v8256_v42  ;;  %v8262_v56 = vld [vmem:[%s8915_s13 + $0x48] sm:$0xff] }
 0x58e   :  { %3131 = vmatprep.subr.mxu0 %v4822_v6  ;;  %3244 = vmatprep.subr.mxu1 %v4823_v43  ;;  %9462 = vst [vmem:[#allocation81_spill] sm:$0xff] %v8262_v56  ;;  %v8272_v43 = vld [vmem:[%s8915_s13 + $0x40] sm:$0xff] }
 0x58f   :  { %3132 = vmatpush2.msra.mxu0 %v4824_v11  ;;  %3245 = vmatpush2.msra.mxu1 %v4825_v9  ;;  %9463 = vst [vmem:[#allocation66_spill] sm:$0xff] %v8272_v43  ;;  %v8278_v11 = vld [vmem:[%s8915_s13 + $0x38] sm:$0xff]  ;;  %v8284_v9 = vld [vmem:[%s8915_s13 + $0x30] sm:$0xff] }
 0x590   :  { %3134 = vmatmul.mubr.f32.vlgmr.msra.gmra.mxu0 %v7514_v30  ;;  %3247 = vmatmul.mubr.f32.vlgmr.msra.gmra.mxu1 %v7519_v51  ;;  %v4519_v30 = vld [vmem:[%s8914_s11 + $0x70] ss:$8 sps:$4 sm:$0xff]   ;;  %v4521_v51 = vld [vmem:[%s8914_s11 + $0x74] ss:$8 sps:$4 sm:$0xff]   ;;  %9464 = vst [vmem:[#allocation85_spill] sm:$0xff] %v8278_v11  ;;  %9465 = vst [vmem:[#allocation84_spill] sm:$0xff] %v8284_v9 }
 0x591   :  { %3139 = vmatprep.mubr.f32.mxu0 %v7530_v41  ;;  %3252 = vmatprep.mubr.f32.mxu1 %v7540_v29  ;;  %v4524_v41 = vld [vmem:[%s8914_s11 + $0x64] ss:$8 sps:$4 sm:$0xff]   ;;  %v4525_v29 = vld [vmem:[%s8914_s11 + $0x50] ss:$8 sps:$4 sm:$0xff]  }
 0x592   :  { %3539 = vmatprep.subr.bf16.mxu0 %v4521_v51  ;;  %3676 = vmatprep.subr.mxu1 %v3643_v23 }
 0x593   :  { %3540 = vmatpush1.bf16.msra.mxu0 %v4519_v30  ;;  %3677 = vmatpush1.msra.mxu1 %v8130_v18  ;;  %v8290_v30 = vld [vmem:[%s8915_s13 + $0x28] sm:$0xff] }
 0x594   :  { %3140 = vmatmul.mubr.f32.gmra.mxu0 %v7527_v4  ;;  %3253 = vmatmul.mubr.f32.gmra.mxu1 %v7532_v8  ;;  %v4522_v4 = vld [vmem:[%s8914_s11 + $0x60] ss:$8 sps:$4 sm:$0xff]   ;;  %v4527_v8 = vld [vmem:[%s8914_s11 + $0x54] ss:$8 sps:$4 sm:$0xff]   ;;  %9466 = vst [vmem:[#allocation41_spill] sm:$0xff] %v8290_v30 }
 0x595   :  { %3145 = vmatprep.mubr.f32.mxu0 %v7552_v33  ;;  %3258 = vmatprep.mubr.f32.mxu1 %v7559_v31  ;;  %v4528_v33 = vld [vmem:[%s8914_s11 + $0x40] ss:$8 sps:$4 sm:$0xff]   ;;  %v4531_v31 = vld [vmem:[%s8914_s11 + $0x30] ss:$8 sps:$4 sm:$0xff]  }
 0x596   :  { %3541 = vmatprep.subr.bf16.mxu0 %v4524_v41  ;;  %3678 = vmatprep.subr.mxu1 %v8135_v21  ;;  %v8300_v41 = vld [vmem:[%s8915_s13 + $0x20] sm:$0xff] }
 0x597   :  { %3542 = vmatpush1.bf16.msra.mxu0 %v4522_v4  ;;  %3679 = vmatpush1.msra.mxu1 %v8140_v7  ;;  %9467 = vst [vmem:[#allocation58_spill] sm:$0xff] %v8300_v41 }
 0x598   :  { %3146 = vmatmul.mubr.f32.gmra.mxu0 %v7544_v62  ;;  %3259 = vmatmul.mubr.f32.gmra.mxu1 %v7554_v14  ;;  %v4530_v62 = vld [vmem:[%s8914_s11 + $0x44] ss:$8 sps:$4 sm:$0xff]   ;;  %v4533_v14 = vld [vmem:[%s8914_s11 + $0x34] ss:$8 sps:$4 sm:$0xff]  }
 0x599   :  { %3151 = vmatprep.mubr.f32.mxu0 %v7576_v15  ;;  %3264 = vmatprep.mubr.f32.mxu1 %v7598_v40  ;;  %v4534_v15 = vld [vmem:[%s8914_s11 + $0x20] ss:$8 sps:$4 sm:$0xff]   ;;  %v4537_v40 = vld [vmem:[%s8914_s11 + $0x10] ss:$8 sps:$4 sm:$0xff]  }
 0x59a   :  { %3543 = vmatprep.subr.bf16.mxu0 %v4527_v8  ;;  %3680 = vmatprep.subr.mxu1 %v8146_v55  ;;  %v8306_v8 = vld [vmem:[%s8915_s13 + $0x18] sm:$0xff] }
 0x59b   :  { %3544 = vmatpush1.bf16.msra.mxu0 %v4525_v29  ;;  %3681 = vmatpush1.msra.mxu1 %v8152_v13  ;;  %9468 = vst [vmem:[#allocation42_spill] sm:$0xff] %v8306_v8  ;;  %v8312_v29 = vld [vmem:[%s8915_s13 + $0x10] sm:$0xff] }
 0x59c   :  { %3152 = vmatmul.mubr.f32.gmra.mxu0 %v7567_v48  ;;  %3265 = vmatmul.mubr.f32.gmra.mxu1 %v7586_v39  ;;  %v4536_v48 = vld [vmem:[%s8914_s11 + $0x24] ss:$8 sps:$4 sm:$0xff]   ;;  %v4539_v39 = vld [vmem:[%s8914_s11 + $0x14] ss:$8 sps:$4 sm:$0xff]   ;;  %9469 = vst [vmem:[#allocation62_spill] sm:$0xff] %v8312_v29 }
 0x59d   :  { %3157 = vmatprep.mubr.f32.mxu0 %v7623_v17  ;;  %3270 = vmatprep.mubr.f32.mxu1 %v7628_v57  ;;  %v4540_v17 = vld [vmem:[%s8914_s11] ss:$8 sps:$4 sm:$0xff]   ;;  %v4545_v57 = vld [vmem:[%s8914_s11 + $0xf4] ss:$8 sps:$4 sm:$0xff]  }
 0x59e   :  { %3545 = vmatprep.subr.bf16.mxu0 %v4530_v62  ;;  %3682 = vmatprep.subr.mxu1 %v8158_v44  ;;  %v8318_v62 = vld [vmem:[%s8915_s13 + $0x8] sm:$0xff] }
 0x59f   :  { %3546 = vmatpush1.bf16.msra.mxu0 %v4528_v33  ;;  %3683 = vmatpush1.msra.mxu1 %v8164_v10  ;;  %9470 = vst [vmem:[#allocation93_spill] sm:$0xff] %v8318_v62 }
 0x5a0   :  { %3158 = vmatmul.mubr.f32.gmra.mxu0 %v7618_v19  ;;  %3271 = vmatmul.mubr.f32.gmra.mxu1 %v7672_v53  ;;  %v4542_v19 = vld [vmem:[%s8914_s11 + $0x4] ss:$8 sps:$4 sm:$0xff]   ;;  %v4549_v53 = vld [vmem:[%s8914_s11 + $0xd0] ss:$8 sps:$4 sm:$0xff]  }
 0x5a1   :  { %3163 = vmatprep.mubr.f32.mxu0 %v7638_v52  ;;  %3276 = vmatprep.mubr.f32.mxu1 %v7654_v58  ;;  %v4548_v52 = vld [vmem:[%s8914_s11 + $0xe4] ss:$8 sps:$4 sm:$0xff]   ;;  %v4551_v58 = vld [vmem:[%s8914_s11 + $0xd4] ss:$8 sps:$4 sm:$0xff]  }
 0x5a2   :  { %3547 = vmatprep.subr.bf16.mxu0 %v4533_v14  ;;  %3684 = vmatprep.subr.mxu1 %v8170_v27 }
 0x5a3   :  { %3548 = vmatpush1.bf16.msra.mxu0 %v4531_v31  ;;  %3685 = vmatpush1.msra.mxu1 %v8176_v34  ;;  %v8328_v31 = vld [vmem:[%s8915_s13] sm:$0xff] }
 0x5a4   :  { %3164 = vmatmul.mubr.f32.gmra.mxu0 %v7636_v47  ;;  %3277 = vmatmul.mubr.f32.gmra.mxu1 %v7646_v25  ;;  %v4543_v47 = vld [vmem:[%s8914_s11 + $0xf0] ss:$8 sps:$4 sm:$0xff]   ;;  %v4546_v25 = vld [vmem:[%s8914_s11 + $0xe0] ss:$8 sps:$4 sm:$0xff]   ;;  %9471 = vst [vmem:[#allocation55_spill] sm:$0xff] %v8328_v31 }
 0x5a5   :  { %3169 = vmatprep.mubr.f32.mxu0 %v7696_v37  ;;  %3282 = vmatprep.mubr.f32.mxu1 %v7698_v24  ;;  %v4554_v37 = vld [vmem:[%s8914_s11 + $0xc4] ss:$8 sps:$4 sm:$0xff]   ;;  %v4552_v24 = vld [vmem:[%s8914_s11 + $0xc0] ss:$8 sps:$4 sm:$0xff]  }
 0x5a6   :  { %3549 = vmatprep.subr.bf16.mxu0 %v4536_v48  ;;  %3686 = vmatprep.subr.mxu1 %v8182_v46  ;;  %v8334_v48 = vld [vmem:[%s8915_s13 + $0x1f8] sm:$0xff] }
 0x5a7   :  { %3550 = vmatpush1.bf16.msra.mxu0 %v4534_v15  ;;  %3687 = vmatpush1.msra.mxu1 %v8188_v50  ;;  %9472 = vst [vmem:[#allocation90_spill] sm:$0xff] %v8334_v48  ;;  %v8340_v15 = vld [vmem:[%s8915_s13 + $0x1f0] sm:$0xff] }
 0x5a8   :  { %3170 = vmatmul.mubr.f32.gmra.mxu0 %v7732_v0  ;;  %3283 = vmatmul.mubr.f32.gmra.mxu1 %v7744_v26  ;;  %v4563_v0 = vld [vmem:[%s8914_s11 + $0x94] ss:$8 sps:$4 sm:$0xff]   ;;  %v4561_v26 = vld [vmem:[%s8914_s11 + $0x90] ss:$8 sps:$4 sm:$0xff]   ;;  %9473 = vst [vmem:[#allocation57_spill] sm:$0xff] %v8340_v15 }
 0x5a9   :  { %3175 = vmatprep.mubr.f32.mxu0 %v7706_v36  ;;  %3288 = vmatprep.mubr.f32.mxu1 %v7708_v3  ;;  %v4557_v36 = vld [vmem:[%s8914_s11 + $0xb4] ss:$8 sps:$4 sm:$0xff]   ;;  %v4555_v3 = vld [vmem:[%s8914_s11 + $0xb0] ss:$8 sps:$4 sm:$0xff]  }
 0x5aa   :  { %3551 = vmatprep.subr.bf16.mxu0 %v4539_v39  ;;  %3688 = vmatprep.subr.mxu1 %v8194_v5  ;;  %v8346_v39 = vld [vmem:[%s8915_s13 + $0x1e8] sm:$0xff] }
 0x5ab   :  { %3552 = vmatpush1.bf16.msra.mxu0 %v4537_v40  ;;  %3689 = vmatpush1.msra.mxu1 %v8200_v28  ;;  %9474 = vst [vmem:[#allocation65_spill] sm:$0xff] %v8346_v39 }
 0x5ac   :  { %3176 = vmatmul.mubr.f32.gmra.mxu0 %v7716_v63  ;;  %3289 = vmatmul.mubr.f32.gmra.mxu1 %v7724_v1  ;;  %v4560_v63 = vld [vmem:[%s8914_s11 + $0xa4] ss:$8 sps:$4 sm:$0xff]   ;;  %v4558_v1 = vld [vmem:[%s8914_s11 + $0xa0] ss:$8 sps:$4 sm:$0xff]  }
 0x5ad   :  { %3553 = vmatprep.subr.bf16.mxu0 %v4542_v19  ;;  %3690 = vmatprep.subr.mxu1 %v8206_v49 }
 0x5ae   :  { %3691 = vmatpush1.msra.mxu1 %v8216_v22 }
 0x5af   :  { %3554 = vmatpush1.bf16.msra.mxu0 %v4540_v17  ;;  %3692 = vmatprep.subr.mxu1 %v8222_v12  ;;  %v8356_v17 = vld [vmem:[%s8915_s13 + $0x1e0] sm:$0xff] }
 0x5b0   :  { %3555 = vmatprep.subr.bf16.mxu0 %v4545_v57  ;;  %3693 = vmatpush1.msra.mxu1 %v8228_v60  ;;  %9475 = vst [vmem:[#allocation36_spill] sm:$0xff] %v8356_v17  ;;  %v8362_v57 = vld [vmem:[%s8915_s13 + $0x1d8] sm:$0xff] }
 0x5b1   :  { %3694 = vmatprep.subr.mxu1 %v8234_v59  ;;  %9476 = vst [vmem:[#allocation54_spill] sm:$0xff] %v8362_v57 }
 0x5b2   :  { %3695 = vmatpush1.msra.mxu1 %v8244_v61 }
 0x5b3   :  { %3556 = vmatpush2.bf16.msra.mxu0 %v4543_v47  ;;  %3696 = vmatprep.subr.mxu1 %v8250_v16  ;;  %v8368_v47 = vld [vmem:[%s8915_s13 + $0x1d0] sm:$0xff] }
 0x5b4   :  { %3557 = vmatprep.subr.bf16.mxu0 %v4548_v52  ;;  %3697 = vmatpush1.msra.mxu1 %v8256_v42  ;;  %9477 = vst [vmem:[#allocation37_spill] sm:$0xff] %v8368_v47  ;;  %v8374_v52 = vld [vmem:[%s8915_s13 + $0x1c8] sm:$0xff] }
 0x5b5   :  { %3698 = vmatprep.subr.mxu1 %v8262_v56  ;;  %9478 = vst [vmem:[#allocation56_spill] sm:$0xff] %v8374_v52 }
 0x5b6   :  { %3699 = vmatpush1.msra.mxu1 %v8272_v43 }
 0x5b7   :  { %3558 = vmatpush2.bf16.msra.mxu0 %v4546_v25  ;;  %3700 = vmatprep.subr.mxu1 %v8278_v11 }
 0x5b8   :  { %3559 = vmatprep.subr.bf16.mxu0 %v4551_v58  ;;  %3701 = vmatpush1.msra.mxu1 %v8284_v9 }
 0x5b9   :  { %3702 = vmatprep.subr.mxu1 %v8290_v30 }
 0x5ba   :  { %3703 = vmatpush1.msra.mxu1 %v8300_v41 }
 0x5bb   :  { %3560 = vmatpush2.bf16.msra.mxu0 %v4549_v53  ;;  %3704 = vmatprep.subr.mxu1 %v8306_v8  ;;  %v8384_v53 = vld [vmem:[%s8915_s13 + $0x1c0] sm:$0xff] }
 0x5bc   :  { %3561 = vmatprep.subr.bf16.mxu0 %v4554_v37  ;;  %3705 = vmatpush1.msra.mxu1 %v8312_v29  ;;  %9479 = vst [vmem:[#allocation59_spill] sm:$0xff] %v8384_v53  ;;  %v8390_v37 = vld [vmem:[%s8915_s13 + $0x1b8] sm:$0xff] }
 0x5bd   :  { %3706 = vmatprep.subr.mxu1 %v8318_v62  ;;  %9480 = vst [vmem:[#allocation95_spill] sm:$0xff] %v8390_v37 }
 0x5be   :  { %3707 = vmatpush1.msra.mxu1 %v8328_v31 }
 0x5bf   :  { %3562 = vmatpush2.bf16.msra.mxu0 %v4552_v24  ;;  %3708 = vmatprep.subr.mxu1 %v8334_v48  ;;  %v8396_v24 = vld [vmem:[%s8915_s13 + $0x1b0] sm:$0xff] }
 0x5c0   :  { %3563 = vmatprep.subr.bf16.mxu0 %v4557_v36  ;;  %3709 = vmatpush2.msra.mxu1 %v8340_v15  ;;  %9481 = vst [vmem:[#allocation49_spill] sm:$0xff] %v8396_v24  ;;  %v8402_v36 = vld [vmem:[%s8915_s13 + $0x1a8] sm:$0xff] }
 0x5c1   :  { %3710 = vmatprep.subr.mxu1 %v8346_v39  ;;  %9482 = vst [vmem:[#allocation94_spill] sm:$0xff] %v8402_v36 }
 0x5c2   :  { %3711 = vmatpush2.msra.mxu1 %v8356_v17 }
 0x5c3   :  { %3564 = vmatpush2.bf16.msra.mxu0 %v4555_v3  ;;  %3712 = vmatprep.subr.mxu1 %v8362_v57 }
 0x5c4   :  { %3565 = vmatprep.subr.bf16.mxu0 %v4560_v63  ;;  %3713 = vmatpush2.msra.mxu1 %v8368_v47  ;;  %v8508_v47 = vld [vmem:[%s8915_s13 + $0x130] sm:$0xff] }
 0x5c5   :  { %3714 = vmatprep.subr.mxu1 %v8374_v52  ;;  %9497 = vst [vmem:[#allocation63_spill] sm:$0xff] %v8508_v47 }
 0x5c6   :  { %3715 = vmatpush2.msra.mxu1 %v8384_v53  ;;  %v8480_v53 = vld [vmem:[%s8915_s13 + $0x150] sm:$0xff] }
 0x5c7   :  { %3566 = vmatpush2.bf16.msra.mxu0 %v4558_v1  ;;  %3716 = vmatprep.subr.mxu1 %v8390_v37  ;;  %v8412_v1 = vld [vmem:[%s8915_s13 + $0x1a0] sm:$0xff]  ;;  %9493 = vst [vmem:[#allocation89_spill] sm:$0xff] %v8480_v53 }
 0x5c8   :  { %3567 = vmatprep.subr.bf16.mxu0 %v4563_v0  ;;  %9483 = vst [vmem:[#allocation53_spill] sm:$0xff] %v8412_v1  ;;  %3717 = vmatpush2.msra.mxu1 %v8396_v24  ;;  %v8418_v0 = vld [vmem:[%s8915_s13 + $0x198] sm:$0xff]  ;;  %v8452_v24 = vld [vmem:[%s8915_s13 + $0x170] sm:$0xff] }
 0x5c9   :  { %9484 = vst [vmem:[#allocation75_spill] sm:$0xff] %v8418_v0  ;;  %3718 = vmatprep.subr.mxu1 %v8402_v36  ;;  %v8440_v36 = vld [vmem:[%s8915_s13 + $0x180] sm:$0xff]  ;;  %9489 = vst [vmem:[#allocation45_spill] sm:$0xff] %v8452_v24 }
 0x5ca   :  { %3719 = vmatpush2.msra.mxu1 %v8412_v1  ;;  %9487 = vst [vmem:[#allocation52_spill] sm:$0xff] %v8440_v36  ;;  %v8446_v1 = vld [vmem:[%s8915_s13 + $0x178] sm:$0xff] }
 0x5cb   :  { %3568 = vmatpush2.bf16.msra.mxu0 %v4561_v26  ;;  %v8424_v26 = vld [vmem:[%s8915_s13 + $0x190] sm:$0xff]  ;;  %3720 = vmatprep.subr.mxu1 %v8418_v0  ;;  %9488 = vst [vmem:[#allocation100_spill] sm:$0xff] %v8446_v1  ;;  %v8458_v0 = vld [vmem:[%s8915_s13 + $0x168] sm:$0xff] }
 0x5cc   :  { %3569 = vmatprep.subr.bf16.mxu0 %v4566_v32  ;;  %9485 = vst [vmem:[#allocation74_spill] sm:$0xff] %v8424_v26  ;;  %v8430_v32 = vld [vmem:[%s8915_s13 + $0x188] sm:$0xff]  ;;  %3721 = vmatpush2.msra.mxu1 %v8424_v26  ;;  %9490 = vst [vmem:[#allocation98_spill] sm:$0xff] %v8458_v0 }
 0x5cd   :  { %9486 = vst [vmem:[#allocation48_spill] sm:$0xff] %v8430_v32  ;;  %3722 = vmatprep.subr.mxu1 %v8430_v32  ;;  %v8468_v32 = vld [vmem:[%s8915_s13 + $0x160] sm:$0xff] }
 0x5ce   :  { %3723 = vmatpush2.msra.mxu1 %v8440_v36  ;;  %9491 = vst [vmem:[#allocation47_spill] sm:$0xff] %v8468_v32  ;;  %v8474_v36 = vld [vmem:[%s8915_s13 + $0x158] sm:$0xff] }
 0x5cf   :  { %3570 = vmatpush2.bf16.msra.mxu0 %v4564_v54  ;;  %3724 = vmatprep.subr.mxu1 %v8446_v1  ;;  %9492 = vst [vmem:[#allocation88_spill] sm:$0xff] %v8474_v36  ;;  %v8486_v1 = vld [vmem:[%s8915_s13 + $0x148] sm:$0xff] }
 0x5d0   :  { %3837 = vmatprep.subr.mxu0 %v3643_v23  ;;  %3725 = vmatpush2.msra.mxu1 %v8452_v24  ;;  %9494 = vst [vmem:[#allocation44_spill] sm:$0xff] %v8486_v1 }
 0x5d1   :  { %3726 = vmatprep.subr.mxu1 %v8458_v0  ;;  %v8496_v0 = vld [vmem:[%s8915_s13 + $0x140] sm:$0xff] }
 0x5d2   :  { %3727 = vmatpush2.msra.mxu1 %v8468_v32  ;;  %9495 = vst [vmem:[#allocation46_spill] sm:$0xff] %v8496_v0  ;;  %v8502_v32 = vld [vmem:[%s8915_s13 + $0x138] sm:$0xff] }
 0x5d3   :  { %3728 = vmatprep.subr.mxu1 %v8474_v36  ;;  %9496 = vst [vmem:[#allocation64_spill] sm:$0xff] %v8502_v32 }
 0x5d4   :  { %3729 = vmatpush2.msra.mxu1 %v8480_v53 }
 0x5d5   :  { %3730 = vmatprep.subr.mxu1 %v8486_v1 }
 0x5d6   :  { %3731 = vmatpush2.msra.mxu1 %v8496_v0 }
 0x5d7   :  { %3732 = vmatprep.subr.mxu1 %v8502_v32 }
 0x5d8   :  { %3733 = vmatpush2.msra.mxu1 %v8508_v47 }
 0x608   :  { %v8208_v35 = vpop.f32.mrf.mxu0 }
 0x60a   :  { %v8210_v38 = vpop.f32.mrf.mxu1  ;;  %v8236_v45 = vpop.f32.mrf.mxu0 }
 0x60c   :  { %v8238_v20 = vpop.f32.mrf.mxu1  ;;  %v8264_v2 = vpop.f32.mrf.mxu0 }
 0x60e   :  { %v8266_v6 = vpop.f32.mrf.mxu1  ;;  %v8292_v51 = vpop.f32.mrf.mxu0 }
 0x610   :  { %v8294_v4 = vpop.f32.mrf.mxu1 }
 0x613   :  { %v8320_v33 = vpop.f32.mrf.mxu0  ;;  %v8322_v14 = vpop.f32.mrf.mxu1 }
 0x615   :  { %v8348_v40 = vpop.f32.mrf.mxu0  ;;  %v8350_v19 = vpop.f32.mrf.mxu1 }
 0x617   :  { %v8376_v25 = vpop.f32.mrf.mxu0  ;;  %v8378_v58 = vpop.f32.mrf.mxu1 }
 0x619   :  { %v8404_v3 = vpop.f32.mrf.mxu0  ;;  %v8406_v63 = vpop.f32.mrf.mxu1 }
 0x61d   :  { %v8432_v54 = vpop.f32.mrf.mxu0  ;;  %v8434_v23 = vpop.f32.mrf.mxu1 }
 0x61f   :  { %v8460_v26 = vpop.f32.mrf.mxu0  ;;  %v8462_v37 = vpop.f32.mrf.mxu1 }
 0x621   :  { %v8488_v24 = vpop.f32.mrf.mxu0  ;;  %v8490_v52 = vpop.f32.mrf.mxu1 }
 0x623   :  { %v8511_v36 = vpop.f32.mrf.mxu0  ;;  %v8513_v57 = vpop.f32.mrf.mxu1 }
 0x627   :  { %v8517_v53 = vpop.f32.mrf.mxu0  ;;  %v8519_v17 = vpop.f32.mrf.mxu1 }
 0x628   :  { %9498 = vst [vmem:[#allocation51_spill] sm:$0xff] %v8517_v53  ;;  %9499 = vst [vmem:[#allocation123_spill] sm:$0xff] %v8519_v17 }
 0x629   :  { %v8521_v1 = vpop.f32.mrf.mxu0  ;;  %v8523_v39 = vpop.f32.mrf.mxu1 }
 0x62b   :  { %v8525_v15 = vpop.f32.mrf.mxu0  ;;  %v8527_v48 = vpop.f32.mrf.mxu1 }
 0x62d   :  { %v8529_v0 = vpop.f32.mrf.mxu0  ;;  %v8531_v31 = vpop.f32.mrf.mxu1 }
 0x62e   :  { %9500 = vst [vmem:[#allocation122_spill] sm:$0xff] %v8529_v0  ;;  %9501 = vst [vmem:[#allocation118_spill] sm:$0xff] %v8531_v31 }
 0x650   :  { %v3135_v62 = vpop.f32.mrf.mxu0  ;;  %v3248_v32 = vpop.f32.mrf.mxu1 }
 0x651   :  { %v3249_v41 = vadd.f32 %v3248_v32, %v3135_v62 }
 0x652   :  { %v3137_v29 = vpop.f32.mrf.mxu0  ;;  %v3250_v47 = vpop.f32.mrf.mxu1 }
 0x653   :  { %v3251_v8 = vadd.f32 %v3250_v47, %v3137_v29 }
 0x654   :  { %v3141_v30 = vpop.f32.mrf.mxu0  ;;  %v3254_v9 = vpop.f32.mrf.mxu1 }
 0x655   :  { %v3255_v11 = vadd.f32 %v3254_v9, %v3141_v30  ;;  %4631 = vrcp.f32 %v3251_v8 }
 0x656   :  { %v3143_v43 = vpop.f32.mrf.mxu0  ;;  %v3256_v56 = vpop.f32.mrf.mxu1 }
 0x657   :  { %4633 = vrcp.f32 %v3255_v11  ;;  %v3257_v42 = vadd.f32 %v3256_v56, %v3143_v43 }
 0x658   :  { %4635 = vrcp.f32 %v3249_v41  ;;  %v3147_v16 = vpop.f32.mrf.mxu0  ;;  %v3260_v61 = vpop.f32.mrf.mxu1 }
 0x659   :  { %4637 = vrcp.f32 %v3257_v42  ;;  %v3261_v60 = vadd.f32 %v3260_v61, %v3147_v16 }
 0x65a   :  { %v3149_v59 = vpop.f32.mrf.mxu0  ;;  %v3262_v17 = vpop.f32.mrf.mxu1 }
 0x65b   :  { %v3263_v53 = vadd.f32 %v3262_v17, %v3149_v59  ;;  %v3035_v59 = vadd.f32 %v8266_v6, %v8264_v2 }
 0x65c   :  { %v3153_v31 = vpop.f32.mrf.mxu0  ;;  %v3266_v0 = vpop.f32.mrf.mxu1 }
 0x65d   :  { %v3267_v29 = vadd.f32 %v3266_v0, %v3153_v31  ;;  %4639 = vrcp.f32 %v3263_v53  ;;  %v3033_v53 = vadd.f32 %v8238_v20, %v8236_v45 }
 0x65e   :  { %v3155_v62 = vpop.f32.mrf.mxu0  ;;  %v3268_v47 = vpop.f32.mrf.mxu1 }
 0x65f   :  { %4641 = vrcp.f32 %v3267_v29  ;;  %v3269_v9 = vadd.f32 %v3268_v47, %v3155_v62  ;;  %v3031_v29 = vadd.f32 %v8210_v38, %v8208_v35  ;;  %v3045_v38 = vadd.f32 %v8378_v58, %v8376_v25 }
 0x660   :  { %4643 = vrcp.f32 %v3261_v60  ;;  %v3159_v30 = vpop.f32.mrf.mxu0  ;;  %v3272_v11 = vpop.f32.mrf.mxu1  ;;  %v3037_v60 = vadd.f32 %v8294_v4, %v8292_v51 }
 0x661   :  { %4645 = vrcp.f32 %v3269_v9  ;;  %v3273_v61 = vadd.f32 %v3272_v11, %v3159_v30 }
 0x662   :  { %v3161_v56 = vpop.f32.mrf.mxu0  ;;  %v3274_v43 = vpop.f32.mrf.mxu1 }
 0x663   :  { %v4632_v41 = vpop.eup %4631  ;;  %v3275_v42 = vadd.f32 %v3274_v43, %v3161_v56 }
 0x664   :  { %v4634_v8 = vpop.eup %4633  ;;  %v3165_v16 = vpop.f32.mrf.mxu0  ;;  %v3312_v6 = vmul.f32 %v4632_v41, %v3033_v53 }
 0x665   :  { %v3278_v31 = vpop.f32.mrf.mxu1  ;;  %v4636_v17 = vpop.eup %4635  ;;  %v3313_v62 = vmul.f32 %v4634_v8, %v3035_v59  ;;  %4647 = vrcp.f32 %v3275_v42 }
 0x666   :  { %v3279_v0 = vadd.f32 %v3278_v31, %v3165_v16  ;;  %v4638_v32 = vpop.eup %4637  ;;  %v3167_v47 = vpop.f32.mrf.mxu0  ;;  %v3311_v11 = vmul.f32 %v4636_v17, %v3031_v29  ;;  %v3047_v17 = vadd.f32 %v8406_v63, %v8404_v3  ;;  %v3055_v3 = vadd.f32 %v8490_v52, %v8488_v24 }
 0x667   :  { %v3280_v9 = vpop.f32.mrf.mxu1  ;;  %v3314_v30 = vmul.f32 %v4638_v32, %v3037_v60 }
 0x668   :  { %4649 = vrcp.f32 %v3279_v0  ;;  %v3281_v2 = vadd.f32 %v3280_v9, %v3167_v47  ;;  %v3171_v56 = vpop.f32.mrf.mxu0  ;;  %v3327_v51 = vpack.c.bf16 %v3313_v62, %v3311_v11  ;;  %v3041_v0 = vadd.f32 %v8322_v14, %v8320_v33  ;;  %v9505_v47 = vld [vmem:[#allocation51_spill] sm:$0xff]  ;;  %v9509_v11 = vld [vmem:[#allocation86_spill] sm:$0xff] }
 0x669   :  { %4651 = vrcp.f32 %v3273_v61  ;;  %v3284_v45 = vpop.f32.mrf.mxu1  ;;  %v3328_v20 = vpack.c.bf16 %v3314_v30, %v3312_v6  ;;  %v3043_v61 = vadd.f32 %v8350_v19, %v8348_v40  ;;  %v9506_v9 = vld [vmem:[#allocation123_spill] sm:$0xff]  ;;  %v9507_v6 = vld [vmem:[#allocation80_spill] sm:$0xff] }
 0x66a   :  { %4653 = vrcp.f32 %v3281_v2  ;;  %v3173_v4 = vpop.f32.mrf.mxu0  ;;  %v4640_v16 = vpop.eup %4639  ;;  %v3285_v42 = vadd.f32 %v3284_v45, %v3171_v56  ;;  %v9508_v30 = vld [vmem:[#allocation72_spill] sm:$0xff]  ;;  %v9511_v45 = vld [vmem:[#allocation81_spill] sm:$0xff] }
 0x66b   :  { %v3286_v43 = vpop.f32.mrf.mxu1  ;;  %3571 = vmatprep.mubr.bf16.mxu0 %v3328_v20  ;;  %v3316_v62 = vmul.f32 %v4640_v16, %v3043_v61  ;;  %v9512_v20 = vld [vmem:[#allocation66_spill] sm:$0xff]  ;;  %v9524_v61 = vld [vmem:[#allocation36_spill] sm:$0xff] }
 0x66c   :  { %v3287_v31 = vadd.f32 %v3286_v43, %v3173_v4  ;;  %v4642_v35 = vpop.eup %4641  ;;  %v3177_v8 = vpop.f32.mrf.mxu0  ;;  %3572 = vmatmul.mubr.bf16.vlgmr.msra.gmra.mxu0 %v3327_v51  ;;  %v9513_v51 = vld [vmem:[#allocation85_spill] sm:$0xff]  ;;  %v9514_v4 = vld [vmem:[#allocation84_spill] sm:$0xff]  ;;  %v9516_v16 = vld [vmem:[#allocation58_spill] sm:$0xff] }
 0x66d   :  { %v3290_v41 = vpop.f32.mrf.mxu1  ;;  %v4644_v59 = vpop.eup %4643  ;;  %3838 = vmatpush1.msra.mxu0 %v8130_v18  ;;  %v3317_v32 = vmul.f32 %v4642_v35, %v3045_v38  ;;  %v9515_v43 = vld [vmem:[#allocation41_spill] sm:$0xff]  ;;  %v9518_v35 = vld [vmem:[#allocation62_spill] sm:$0xff] }
 0x66e   :  { %v3291_v53 = vadd.f32 %v3290_v41, %v3177_v8  ;;  %v4646_v60 = vpop.eup %4645  ;;  %4655 = vrcp.f32 %v3287_v31  ;;  %v3179_v25 = vpop.f32.mrf.mxu0  ;;  %3839 = vmatprep.subr.mxu0 %v8135_v21  ;;  %v3315_v19 = vmul.f32 %v4644_v59, %v3041_v0  ;;  %v9517_v31 = vld [vmem:[#allocation42_spill] sm:$0xff]  ;;  %v9519_v38 = vld [vmem:[#allocation93_spill] sm:$0xff]  ;;  %v9528_v0 = vld [vmem:[#allocation59_spill] sm:$0xff] }
 0x66f   :  { %v3292_v58 = vpop.f32.mrf.mxu1  ;;  %v3318_v40 = vmul.f32 %v4646_v60, %v3047_v17  ;;  %3840 = vmatpush1.msra.mxu0 %v8140_v7  ;;  %v9521_v8 = vld [vmem:[#allocation90_spill] sm:$0xff]  ;;  %v9522_v41 = vld [vmem:[#allocation57_spill] sm:$0xff]  ;;  %v9527_v60 = vld [vmem:[#allocation56_spill] sm:$0xff] }
 0x670   :  { %4657 = vrcp.f32 %v3291_v53  ;;  %v3293_v29 = vadd.f32 %v3292_v58, %v3179_v25  ;;  %3841 = vmatprep.subr.mxu0 %v8146_v55  ;;  %v3329_v33 = vpack.c.bf16 %v3317_v32, %v3315_v19  ;;  %v3053_v55 = vadd.f32 %v8462_v37, %v8460_v26  ;;  %v9502_v26 = vld [vmem:[#allocation122_spill] sm:$0xff]  ;;  %v9523_v59 = vld [vmem:[#allocation65_spill] sm:$0xff]  ;;  %v9529_v25 = vld [vmem:[#allocation95_spill] sm:$0xff] }
 0x671   :  { %4659 = vrcp.f32 %v3285_v42  ;;  %v3330_v18 = vpack.c.bf16 %v3318_v40, %v3316_v62  ;;  %3842 = vmatpush1.msra.mxu0 %v8152_v13  ;;  %v3057_v13 = vadd.f32 %v8513_v57, %v8511_v36  ;;  %v9520_v42 = vld [vmem:[#allocation55_spill] sm:$0xff]  ;;  %v9525_v17 = vld [vmem:[#allocation54_spill] sm:$0xff]  ;;  %v9526_v53 = vld [vmem:[#allocation37_spill] sm:$0xff] }
 0x672   :  { %4661 = vrcp.f32 %v3293_v29  ;;  %3843 = vmatprep.subr.mxu0 %v8158_v44  ;;  %v4648_v14 = vpop.eup %4647  ;;  %v9530_v58 = vld [vmem:[#allocation49_spill] sm:$0xff]  ;;  %v9531_v32 = vld [vmem:[#allocation94_spill] sm:$0xff]  ;;  %v9533_v62 = vld [vmem:[#allocation75_spill] sm:$0xff] }
 0x673   :  { %3581 = vmatprep.mubr.bf16.mxu0 %v3330_v18  ;;  %3844 = vmatpush1.msra.mxu0 %v8164_v10  ;;  %v3051_v10 = vadd.f32 %v8434_v23, %v8432_v54  ;;  %v3320_v52 = vmul.f32 %v4648_v14, %v3053_v55  ;;  %v9504_v23 = vld [vmem:[#allocation67_spill] sm:$0xff]  ;;  %v9532_v29 = vld [vmem:[#allocation53_spill] sm:$0xff]  ;;  %v9534_v40 = vld [vmem:[#allocation74_spill] sm:$0xff] }
 0x674   :  { %3582 = vmatmul.mubr.bf16.gmra.mxu0 %v3329_v33  ;;  %3845 = vmatprep.subr.mxu0 %v8170_v27  ;;  %v9535_v19 = vld [vmem:[#allocation48_spill] sm:$0xff]  ;;  %v9538_v14 = vld [vmem:[#allocation45_spill] sm:$0xff] }
 0x675   :  { %v4650_v21 = vpop.eup %4649  ;;  %3846 = vmatpush1.msra.mxu0 %v8176_v34  ;;  %v9536_v18 = vld [vmem:[#allocation52_spill] sm:$0xff]  ;;  %v9542_v55 = vld [vmem:[#allocation89_spill] sm:$0xff] }
 0x676   :  { %v4652_v7 = vpop.eup %4651  ;;  %v3321_v63 = vmul.f32 %v4650_v21, %v3055_v3  ;;  %3847 = vmatprep.subr.mxu0 %v8182_v46  ;;  %v3065_v46 = vadd.f32 %v8527_v48, %v8525_v15  ;;  %v9537_v33 = vld [vmem:[#allocation100_spill] sm:$0xff]  ;;  %v9539_v21 = vld [vmem:[#allocation98_spill] sm:$0xff]  ;;  %v9540_v3 = vld [vmem:[#allocation47_spill] sm:$0xff] }
 0x677   :  { %v4654_v44 = vpop.eup %4653  ;;  %3848 = vmatpush1.msra.mxu0 %v8188_v50  ;;  %v3319_v27 = vmul.f32 %v4652_v7, %v3051_v10  ;;  %v9541_v7 = vld [vmem:[#allocation88_spill] sm:$0xff] }
 0x678   :  { %v3322_v24 = vmul.f32 %v4654_v44, %v3057_v13  ;;  %3849 = vmatprep.subr.mxu0 %v8194_v5  ;;  %v3063_v5 = vadd.f32 %v8523_v39, %v8521_v1  ;;  %v9510_v1 = vld [vmem:[#allocation60_spill] sm:$0xff]  ;;  %v9544_v44 = vld [vmem:[#allocation46_spill] sm:$0xff] }
 0x679   :  { %3850 = vmatpush1.msra.mxu0 %v8200_v28  ;;  %v3331_v57 = vpack.c.bf16 %v3321_v63, %v3319_v27  ;;  %v9503_v28 = vld [vmem:[#allocation118_spill] sm:$0xff]  ;;  %v9543_v13 = vld [vmem:[#allocation44_spill] sm:$0xff]  ;;  %v9546_v63 = vld [vmem:[#allocation63_spill] sm:$0xff] }
 0x67a   :  { %v3332_v37 = vpack.c.bf16 %v3322_v24, %v3320_v52  ;;  %3851 = vmatprep.subr.mxu0 %v8206_v49  ;;  %v3067_v54 = vadd.f32 %v9503_v28, %v9502_v26  ;;  %v9545_v10 = vld [vmem:[#allocation64_spill] sm:$0xff]  ;;  %v3649_v52 = vld [vmem:[%s8915_s13 + $0x128] sm:$0xff]  ;;  %v3648_v24 = vld [vmem:[%s8915_s13 + $0x120] sm:$0xff] }
 0x67b   :  { %v4656_v34 = vpop.eup %4655  ;;  %3852 = vmatpush1.msra.mxu0 %v8216_v22  ;;  %v3061_v22 = vadd.f32 %v9506_v9, %v9505_v47  ;;  %3734 = vmatprep.subr.mxu1 %v3649_v52  ;;  %v3647_v27 = vld [vmem:[%s8915_s13 + $0x118] sm:$0xff] }
 0x67c   :  { %3591 = vmatprep.mubr.bf16.mxu0 %v3332_v37  ;;  %3853 = vmatprep.subr.mxu0 %v8222_v12  ;;  %v3324_v48 = vmul.f32 %v4656_v34, %v3063_v5  ;;  %v3646_v37 = vld [vmem:[%s8915_s13 + $0x110] sm:$0xff]  ;;  %v3644_v34 = vld [vmem:[%s8915_s13 + $0x100] sm:$0xff] }
 0x67d   :  { %v4658_v36 = vpop.eup %4657  ;;  %3592 = vmatmul.mubr.bf16.gmra.mxu0 %v3331_v57  ;;  %3735 = vmatpush2.msra.mxu1 %v3648_v24  ;;  %v3645_v57 = vld [vmem:[%s8915_s13 + $0x108] sm:$0xff]  ;;  %v9548_v5 = vld [vmem:[#allocation2_spill] sm:$0xff] }
 0x67e   :  { %v4660_v50 = vpop.eup %4659  ;;  %3854 = vmatpush1.msra.mxu0 %v9504_v23  ;;  %v3325_v2 = vmul.f32 %v4658_v36, %v3065_v46  ;;  %3736 = vmatprep.subr.mxu1 %v3647_v27  ;;  %v3367_v36 = vld [vmem:[%s8916_s12] sm:$0x3]  ;;  %v9547_v46 = vld [vmem:[#allocation3_spill] sm:$0xff] }
 0x67f   :  { %v4662_v49 = vpop.eup %4661  ;;  %3855 = vmatprep.subr.mxu0 %v9507_v6  ;;  %v3323_v12 = vmul.f32 %v4660_v50, %v3061_v22  ;;  %3737 = vmatpush2.msra.mxu1 %v3646_v37  ;;  %v3376_v50 = vrot.slane %v3367_v36, %v9547_v46  ;;  %v3372_v26 = vrot.slane %v3367_v36, %v9548_v5 }
 0x680   :  { %v3326_v15 = vmul.f32 %v4662_v49, %v3067_v54  ;;  %3856 = vmatpush1.msra.mxu0 %v9508_v30  ;;  %3738 = vmatprep.subr.mxu1 %v3645_v57 }
 0x681   :  { %3857 = vmatprep.subr.mxu0 %v9509_v11  ;;  %v3333_v56 = vpack.c.bf16 %v3325_v2, %v3323_v12  ;;  %3739 = vmatpush2.msra.mxu1 %v3644_v34 }
 0x682   :  { %v3334_v39 = vpack.c.bf16 %v3326_v15, %v3324_v48  ;;  %3858 = vmatpush1.msra.mxu0 %v9510_v1 }
 0x683   :  { %3859 = vmatprep.subr.mxu0 %v9511_v45 }
 0x684   :  { %3601 = vmatprep.mubr.bf16.mxu0 %v3334_v39  ;;  %3860 = vmatpush1.msra.mxu0 %v9512_v20 }
 0x685   :  { %3602 = vmatmul.mubr.bf16.gmra.mxu0 %v3333_v56  ;;  %3861 = vmatprep.subr.mxu0 %v9513_v51 }
 0x686   :  { %3862 = vmatpush1.msra.mxu0 %v9514_v4 }
 0x687   :  { %3863 = vmatprep.subr.mxu0 %v9515_v43 }
 0x688   :  { %3864 = vmatpush1.msra.mxu0 %v9516_v16 }
 0x689   :  { %3865 = vmatprep.subr.mxu0 %v9517_v31 }
 0x68a   :  { %3866 = vmatpush1.msra.mxu0 %v9518_v35 }
 0x68b   :  { %3867 = vmatprep.subr.mxu0 %v9519_v38 }
 0x68c   :  { %3868 = vmatpush1.msra.mxu0 %v9520_v42 }
 0x68d   :  { %3869 = vmatprep.subr.mxu0 %v9521_v8 }
 0x68e   :  { %3870 = vmatpush2.msra.mxu0 %v9522_v41 }
 0x68f   :  { %3871 = vmatprep.subr.mxu0 %v9523_v59 }
 0x690   :  { %3872 = vmatpush2.msra.mxu0 %v9524_v61 }
 0x691   :  { %3873 = vmatprep.subr.mxu0 %v9525_v17 }
 0x692   :  { %3874 = vmatpush2.msra.mxu0 %v9526_v53 }
 0x693   :  { %3875 = vmatprep.subr.mxu0 %v9527_v60 }
 0x694   :  { %3876 = vmatpush2.msra.mxu0 %v9528_v0 }
 0x695   :  { %3877 = vmatprep.subr.mxu0 %v9529_v25 }
 0x696   :  { %3878 = vmatpush2.msra.mxu0 %v9530_v58 }
 0x697   :  { %3879 = vmatprep.subr.mxu0 %v9531_v32 }
 0x698   :  { %3880 = vmatpush2.msra.mxu0 %v9532_v29 }
 0x699   :  { %3881 = vmatprep.subr.mxu0 %v9533_v62 }
 0x69a   :  { %3882 = vmatpush2.msra.mxu0 %v9534_v40 }
 0x69b   :  { %3883 = vmatprep.subr.mxu0 %v9535_v19 }
 0x69c   :  { %3884 = vmatpush2.msra.mxu0 %v9536_v18 }
 0x69d   :  { %3885 = vmatprep.subr.mxu0 %v9537_v33 }
 0x69e   :  { %3886 = vmatpush2.msra.mxu0 %v9538_v14 }
 0x69f   :  { %3887 = vmatprep.subr.mxu0 %v9539_v21 }
 0x6a0   :  { %3888 = vmatpush2.msra.mxu0 %v9540_v3 }
 0x6a1   :  { %3889 = vmatprep.subr.mxu0 %v9541_v7 }
 0x6a2   :  { %3890 = vmatpush2.msra.mxu0 %v9542_v55 }
 0x6a3   :  { %3891 = vmatprep.subr.mxu0 %v9543_v13 }
 0x6a4   :  { %3892 = vmatpush2.msra.mxu0 %v9544_v44 }
 0x6a5   :  { %3893 = vmatprep.subr.mxu0 %v9545_v10 }
 0x6a6   :  { %3894 = vmatpush2.msra.mxu0 %v9546_v63 }
 0x6a7   :  { %3895 = vmatprep.subr.mxu0 %v3649_v52 }
 0x6a8   :  { %3896 = vmatpush2.msra.mxu0 %v3648_v24 }
 0x6a9   :  { %3897 = vmatprep.subr.mxu0 %v3647_v27 }
 0x6aa   :  { %3898 = vmatpush2.msra.mxu0 %v3646_v37 }
 0x6ab   :  { %3899 = vmatprep.subr.mxu0 %v3645_v57 }
 0x6ac   :  { %3900 = vmatpush2.msra.mxu0 %v3644_v34 }
 0x72c   :  { %v3573_v28 = vpop.f32.mrf.mxu0 }
 0x72d   :  { %v3574_v49 = vadd.f32 %v3573_v28, %v3372_v26 }
 0x72e   :  { %v3575_v54 = vpop.f32.mrf.mxu0 }
 0x72f   :  { %v3576_v23 = vadd.f32 %v3575_v54, %v3376_v50 }
 0x730   :  { %v3577_v47 = vpop.f32.mrf.mxu0 }
 0x731   :  { %3740 = vmatprep.mubr.f32.mxu1 %v3576_v23  ;;  %v3578_v2 = vadd.f32 %v3577_v47, %v3372_v26 }
 0x732   :  { %v3579_v9 = vpop.f32.mrf.mxu0  ;;  %3741 = vmatmul.mubr.f32.vlgmr.msra.gmra.mxu1 %v3574_v49 }
 0x733   :  { %v3580_v22 = vadd.f32 %v3579_v9, %v3376_v50 }
 0x734   :  { %v3583_v6 = vpop.f32.mrf.mxu0 }
 0x735   :  { %3746 = vmatprep.mubr.f32.mxu1 %v3580_v22  ;;  %v3584_v30 = vadd.f32 %v3583_v6, %v3372_v26 }
 0x736   :  { %v3585_v48 = vpop.f32.mrf.mxu0  ;;  %3747 = vmatmul.mubr.f32.gmra.mxu1 %v3578_v2 }
 0x737   :  { %v3586_v15 = vadd.f32 %v3585_v48, %v3376_v50 }
 0x738   :  { %v3587_v12 = vpop.f32.mrf.mxu0 }
 0x739   :  { %3752 = vmatprep.mubr.f32.mxu1 %v3586_v15  ;;  %v3588_v1 = vadd.f32 %v3587_v12, %v3372_v26 }
 0x73a   :  { %v3589_v11 = vpop.f32.mrf.mxu0  ;;  %3753 = vmatmul.mubr.f32.gmra.mxu1 %v3584_v30 }
 0x73b   :  { %v3590_v39 = vadd.f32 %v3589_v11, %v3376_v50 }
 0x73d   :  { %v3593_v56 = vpop.f32.mrf.mxu0  ;;  %3758 = vmatprep.mubr.f32.mxu1 %v3590_v39 }
 0x73e   :  { %3759 = vmatmul.mubr.f32.gmra.mxu1 %v3588_v1  ;;  %v8647_v51 = vadd.f32 %v3593_v56, %v3372_v26 }
 0x73f   :  { %v3595_v45 = vpop.f32.mrf.mxu0 }
 0x740   :  { %v8645_v20 = vadd.f32 %v3595_v45, %v3376_v50 }
 0x741   :  { %v3597_v4 = vpop.f32.mrf.mxu0 }
 0x742   :  { %3764 = vmatprep.mubr.f32.mxu1 %v8645_v20  ;;  %v8653_v31 = vadd.f32 %v3597_v4, %v3372_v26 }
 0x743   :  { %v3599_v43 = vpop.f32.mrf.mxu0  ;;  %3765 = vmatmul.mubr.f32.gmra.mxu1 %v8647_v51 }
 0x744   :  { %v8651_v16 = vadd.f32 %v3599_v43, %v3376_v50 }
 0x745   :  { %v3603_v35 = vpop.f32.mrf.mxu0 }
 0x746   :  { %3770 = vmatprep.mubr.f32.mxu1 %v8651_v16  ;;  %v8659_v8 = vadd.f32 %v3603_v35, %v3372_v26 }
 0x747   :  { %v3605_v38 = vpop.f32.mrf.mxu0  ;;  %3771 = vmatmul.mubr.f32.gmra.mxu1 %v8653_v31 }
 0x748   :  { %v8657_v42 = vadd.f32 %v3605_v38, %v3376_v50 }
 0x749   :  { %v3607_v41 = vpop.f32.mrf.mxu0 }
 0x74a   :  { %3776 = vmatprep.mubr.f32.mxu1 %v8657_v42  ;;  %v8665_v17 = vadd.f32 %v3607_v41, %v3372_v26 }
 0x74b   :  { %v3609_v59 = vpop.f32.mrf.mxu0  ;;  %3777 = vmatmul.mubr.f32.gmra.mxu1 %v8659_v8 }
 0x74c   :  { %v8663_v61 = vadd.f32 %v3609_v59, %v3376_v50 }
 0x74e   :  { %3782 = vmatprep.mubr.f32.mxu1 %v8663_v61 }
 0x74f   :  { %3783 = vmatmul.mubr.f32.gmra.mxu1 %v8665_v17 }
 0x7f2   :  { %v3742_v53 = vpop.f32.mrf.mxu1 }
 0x7f3   :  { %v3789_v60 = vmul.f32 0.03125, %v3742_v53 }
 0x7f4   :  { %v3744_v0 = vpop.f32.mrf.mxu1 }
 0x7f5   :  { %v3790_v25 = vmul.f32 0.03125, %v3744_v0  ;;  %v8669_v58 = vsub.f32 %v3574_v49, %v3789_v60 }
 0x7f6   :  { %v3748_v32 = vpop.f32.mrf.mxu1 }
 0x7f7   :  { %v8671_v29 = vsub.f32 %v3576_v23, %v3790_v25  ;;  %v3791_v62 = vmul.f32 0.03125, %v3748_v32  ;;  %v3821_v33 = vmul.f32 %v8669_v58, %v8669_v58 }
 0x7f8   :  { %v3750_v40 = vpop.f32.mrf.mxu1 }
 0x7f9   :  { %v3792_v19 = vmul.f32 0.03125, %v3750_v40  ;;  %v3822_v18 = vmul.f32 %v8671_v29, %v8671_v29  ;;  %v8677_v14 = vsub.f32 %v3578_v2, %v3791_v62 }
 0x7fa   :  { %v3754_v21 = vpop.f32.mrf.mxu1 }
 0x7fb   :  { %v8679_v3 = vsub.f32 %v3580_v22, %v3792_v19  ;;  %v3793_v7 = vmul.f32 0.03125, %v3754_v21  ;;  %3901 = vmatprep.mubr.f32.mxu0 %v3822_v18  ;;  %v3823_v10 = vmul.f32 %v8677_v14, %v8677_v14 }
 0x7fc   :  { %v3756_v55 = vpop.f32.mrf.mxu1  ;;  %3902 = vmatmul.mubr.f32.vlgmr.msra.gmra.mxu0 %v3821_v33 }
 0x7fd   :  { %v3794_v13 = vmul.f32 0.03125, %v3756_v55  ;;  %v3824_v44 = vmul.f32 %v8679_v3, %v8679_v3  ;;  %v8685_v63 = vsub.f32 %v3584_v30, %v3793_v7 }
 0x7fe   :  { %v3760_v52 = vpop.f32.mrf.mxu1 }
 0x7ff   :  { %v8687_v24 = vsub.f32 %v3586_v15, %v3794_v13  ;;  %v3795_v27 = vmul.f32 0.03125, %v3760_v52  ;;  %3907 = vmatprep.mubr.f32.mxu0 %v3824_v44  ;;  %v3825_v36 = vmul.f32 %v8685_v63, %v8685_v63 }
 0x800   :  { %v3762_v37 = vpop.f32.mrf.mxu1  ;;  %3908 = vmatmul.mubr.f32.gmra.mxu0 %v3823_v10 }
 0x801   :  { %v3796_v57 = vmul.f32 0.03125, %v3762_v37  ;;  %v3826_v34 = vmul.f32 %v8687_v24, %v8687_v24  ;;  %v8693_v50 = vsub.f32 %v3588_v1, %v3795_v27 }
 0x803   :  { %v3766_v26 = vpop.f32.mrf.mxu1  ;;  %v8695_v28 = vsub.f32 %v3590_v39, %v3796_v57  ;;  %3913 = vmatprep.mubr.f32.mxu0 %v3826_v34  ;;  %v3827_v9 = vmul.f32 %v8693_v50, %v8693_v50 }
 0x804   :  { %v3797_v54 = vmul.f32 0.03125, %v3766_v26  ;;  %3914 = vmatmul.mubr.f32.gmra.mxu0 %v3825_v36  ;;  %v4014_v26 = vld [vmem:[%s8917_s14] sm:$0x3] }
 0x805   :  { %v3768_v23 = vpop.f32.mrf.mxu1  ;;  %v3828_v47 = vmul.f32 %v8695_v28, %v8695_v28 }
 0x806   :  { %v3798_v49 = vmul.f32 0.03125, %v3768_v23  ;;  %v8702_v22 = vsub.f32 %v8647_v51, %v3797_v54  ;;  %v4042_v23 = vld [vmem:[%s8918_s15] sm:$0x3] }
 0x807   :  { %v3772_v2 = vpop.f32.mrf.mxu1  ;;  %3919 = vmatprep.mubr.f32.mxu0 %v3828_v47 }
 0x808   :  { %v8705_v6 = vsub.f32 %v8645_v20, %v3798_v49  ;;  %v3799_v48 = vmul.f32 0.03125, %v3772_v2  ;;  %3920 = vmatmul.mubr.f32.gmra.mxu0 %v3827_v9  ;;  %v3829_v11 = vmul.f32 %v8702_v22, %v8702_v22  ;;  %v8748_v2 = vrot.slane %v4014_v26, %v9548_v5 }
 0x809   :  { %v3774_v15 = vpop.f32.mrf.mxu1 }
 0x80a   :  { %v3800_v30 = vmul.f32 0.03125, %v3774_v15  ;;  %v3830_v12 = vmul.f32 %v8705_v6, %v8705_v6  ;;  %v8712_v39 = vsub.f32 %v8653_v31, %v3799_v48 }
 0x80b   :  { %v3778_v1 = vpop.f32.mrf.mxu1 }
 0x80c   :  { %v8715_v56 = vsub.f32 %v8651_v16, %v3800_v30  ;;  %v3801_v45 = vmul.f32 0.03125, %v3778_v1  ;;  %3925 = vmatprep.mubr.f32.mxu0 %v3830_v12  ;;  %v3831_v43 = vmul.f32 %v8712_v39, %v8712_v39  ;;  %v8751_v12 = vrot.slane %v4042_v23, %v9548_v5 }
 0x80d   :  { %v3780_v20 = vpop.f32.mrf.mxu1  ;;  %3926 = vmatmul.mubr.f32.gmra.mxu0 %v3829_v11  ;;  %v8754_v11 = vrot.slane %v4014_v26, %v9547_v46 }
 0x80e   :  { %v3802_v51 = vmul.f32 0.03125, %v3780_v20  ;;  %v3832_v4 = vmul.f32 %v8715_v56, %v8715_v56  ;;  %v8722_v35 = vsub.f32 %v8659_v8, %v3801_v45 }
 0x80f   :  { %v3784_v31 = vpop.f32.mrf.mxu1 }
 0x810   :  { %v8725_v38 = vsub.f32 %v8657_v42, %v3802_v51  ;;  %v3803_v16 = vmul.f32 0.03125, %v3784_v31  ;;  %3931 = vmatprep.mubr.f32.mxu0 %v3832_v4  ;;  %v3833_v60 = vmul.f32 %v8722_v35, %v8722_v35 }
 0x811   :  { %v3786_v41 = vpop.f32.mrf.mxu1  ;;  %3932 = vmatmul.mubr.f32.gmra.mxu0 %v3831_v43  ;;  %v8758_v43 = vrot.slane %v4042_v23, %v9547_v46 }
 0x812   :  { %v3804_v59 = vmul.f32 0.03125, %v3786_v41  ;;  %v3834_v53 = vmul.f32 %v8725_v38, %v8725_v38  ;;  %v8732_v0 = vsub.f32 %v8665_v17, %v3803_v16 }
 0x814   :  { %v8735_v8 = vsub.f32 %v8663_v61, %v3804_v59  ;;  %3937 = vmatprep.mubr.f32.mxu0 %v3834_v53  ;;  %v3835_v25 = vmul.f32 %v8732_v0, %v8732_v0 }
 0x815   :  { %3938 = vmatmul.mubr.f32.gmra.mxu0 %v3833_v60 }
 0x816   :  { %v3836_v42 = vmul.f32 %v8735_v8, %v8735_v8 }
 0x818   :  { %3943 = vmatprep.mubr.f32.mxu0 %v3836_v42 }
 0x819   :  { %3944 = vmatmul.mubr.f32.gmra.mxu0 %v3835_v25 }
 0x8bc   :  { %v3903_v32 = vpop.f32.mrf.mxu0 }
 0x8bd   :  { %v3950_v62 = vmul.f32 0.03125, %v3903_v32 }
 0x8be   :  { %v3905_v40 = vpop.f32.mrf.mxu0 }
 0x8bf   :  { %v3966_v19 = vadd.f32 1e-05, %v3950_v62  ;;  %v3951_v18 = vmul.f32 0.03125, %v3905_v40 }
 0x8c0   :  { %v3909_v17 = vpop.f32.mrf.mxu0 }
 0x8c1   :  { %4663 = vrsqrt.f32 %v3966_v19  ;;  %v3967_v33 = vadd.f32 1e-05, %v3951_v18  ;;  %v3952_v61 = vmul.f32 0.03125, %v3909_v17 }
 0x8c2   :  { %v3911_v21 = vpop.f32.mrf.mxu0 }
 0x8c3   :  { %4665 = vrsqrt.f32 %v3967_v33  ;;  %v3968_v7 = vadd.f32 1e-05, %v3952_v61  ;;  %v3953_v55 = vmul.f32 0.03125, %v3911_v21 }
 0x8c4   :  { %v3915_v13 = vpop.f32.mrf.mxu0 }
 0x8c5   :  { %4667 = vrsqrt.f32 %v3968_v7  ;;  %v3969_v44 = vadd.f32 1e-05, %v3953_v55  ;;  %v3954_v10 = vmul.f32 0.03125, %v3915_v13  ;;  %v4827_v55 = vld [vmem:[%s9074_s23 + $0x8] sm:$0xff] }
 0x8c6   :  { %v3917_v52 = vpop.f32.mrf.mxu0 }
 0x8c7   :  { %4669 = vrsqrt.f32 %v3969_v44  ;;  %v3970_v27 = vadd.f32 1e-05, %v3954_v10  ;;  %v3955_v37 = vmul.f32 0.03125, %v3917_v52 }
 0x8c8   :  { %v3921_v57 = vpop.f32.mrf.mxu0 }
 0x8c9   :  { %4671 = vrsqrt.f32 %v3970_v27  ;;  %v3971_v34 = vadd.f32 1e-05, %v3955_v37  ;;  %v3956_v36 = vmul.f32 0.03125, %v3921_v57 }
 0x8ca   :  { %v3923_v54 = vpop.f32.mrf.mxu0 }
 0x8cb   :  { %4673 = vrsqrt.f32 %v3971_v34  ;;  %v3972_v49 = vadd.f32 1e-05, %v3956_v36  ;;  %v3957_v47 = vmul.f32 0.03125, %v3923_v54  ;;  %v4828_v34 = vld [vmem:[%s9074_s23 + $0x10] sm:$0xff] }
 0x8cd   :  { %v3927_v9 = vpop.f32.mrf.mxu0  ;;  %4675 = vrsqrt.f32 %v3972_v49  ;;  %v3973_v48 = vadd.f32 1e-05, %v3957_v47 }
 0x8ce   :  { %v3958_v15 = vmul.f32 0.03125, %v3927_v9  ;;  %v4664_v30 = vpop.eup %4663 }
 0x8cf   :  { %v3929_v1 = vpop.f32.mrf.mxu0  ;;  %v3998_v45 = vmul.f32 %v4664_v30, %v8669_v58  ;;  %4677 = vrsqrt.f32 %v3973_v48  ;;  %v4829_v48 = vld [vmem:[%s9074_s23 + $0x18] sm:$0xff] }
 0x8d0   :  { %v3974_v20 = vadd.f32 1e-05, %v3958_v15  ;;  %v3959_v51 = vmul.f32 0.03125, %v3929_v1  ;;  %v4666_v4 = vpop.eup %4665 }
 0x8d1   :  { %v3933_v31 = vpop.f32.mrf.mxu0  ;;  %v4026_v16 = vmul.f32 %v8748_v2, %v3998_v45  ;;  %v3999_v41 = vmul.f32 %v4666_v4, %v8671_v29  ;;  %v4826_v29 = vld [vmem:[%s9074_s23] sm:$0xff] }
 0x8d2   :  { %4679 = vrsqrt.f32 %v3974_v20  ;;  %v3975_v5 = vadd.f32 1e-05, %v3959_v51  ;;  %v4668_v59 = vpop.eup %4667  ;;  %v3960_v53 = vmul.f32 0.03125, %v3933_v31  ;;  %v4830_v4 = vld [vmem:[%s9074_s23 + $0x20] sm:$0xff] }
 0x8d3   :  { %v3935_v60 = vpop.f32.mrf.mxu0  ;;  %v4054_v42 = vadd.f32 %v8751_v12, %v4026_v16  ;;  %v4027_v58 = vmul.f32 %v8754_v11, %v3999_v41  ;;  %v4000_v25 = vmul.f32 %v4668_v59, %v8677_v14 }
 0x8d4   :  { %4681 = vrsqrt.f32 %v3975_v5  ;;  %v4670_v32 = vpop.eup %4669  ;;  %v3976_v46 = vadd.f32 1e-05, %v3960_v53  ;;  %v3961_v62 = vmul.f32 0.03125, %v3935_v60  ;;  %v4831_v53 = vld [vmem:[%s9074_s23 + $0x28] sm:$0xff] }
 0x8d5   :  { %v3939_v40 = vpop.f32.mrf.mxu0  ;;  %v4070_v19 = vadd.f32 %v4826_v29, %v4054_v42  ;;  %v4055_v18 = vadd.f32 %v8758_v43, %v4027_v58  ;;  %v4028_v17 = vmul.f32 %v8748_v2, %v4000_v25  ;;  %v4001_v33 = vmul.f32 %v4670_v32, %v8679_v3 }
 0x8d6   :  { %v4672_v61 = vpop.eup %4671  ;;  %4683 = vrsqrt.f32 %v3976_v46  ;;  %v3977_v21 = vadd.f32 1e-05, %v3961_v62  ;;  %v3962_v14 = vmul.f32 0.03125, %v3939_v40 }
 0x8d7   :  { %v3941_v7 = vpop.f32.mrf.mxu0  ;;  %4086 = vst [vmem:[%s8919_s16] sm:$0xff] %v4070_v19  ;;  %v4071_v13 = vadd.f32 %v4827_v55, %v4055_v18  ;;  %v4056_v44 = vadd.f32 %v8751_v12, %v4028_v17  ;;  %v4029_v10 = vmul.f32 %v8754_v11, %v4001_v33  ;;  %v4002_v3 = vmul.f32 %v4672_v61, %v8685_v63 }
 0x8d8   :  { %v4674_v52 = vpop.eup %4673  ;;  %4685 = vrsqrt.f32 %v3977_v21  ;;  %v3978_v27 = vadd.f32 1e-05, %v3962_v14  ;;  %v3963_v37 = vmul.f32 0.03125, %v3941_v7 }
 0x8d9   :  { %v3945_v57 = vpop.f32.mrf.mxu0  ;;  %4087 = vst [vmem:[%s8919_s16 + $0x8] sm:$0xff] %v4071_v13  ;;  %v4072_v36 = vadd.f32 %v4828_v34, %v4056_v44  ;;  %v4057_v26 = vadd.f32 %v8758_v43, %v4029_v10  ;;  %v4030_v54 = vmul.f32 %v8748_v2, %v4002_v3  ;;  %v4003_v63 = vmul.f32 %v4674_v52, %v8687_v24 }
 0x8da   :  { %v4676_v23 = vpop.eup %4675  ;;  %4687 = vrsqrt.f32 %v3978_v27  ;;  %v3979_v49 = vadd.f32 1e-05, %v3963_v37  ;;  %v3964_v47 = vmul.f32 0.03125, %v3945_v57 }
 0x8db   :  { %v3947_v9 = vpop.f32.mrf.mxu0  ;;  %4088 = vst [vmem:[%s8919_s16 + $0x10] sm:$0xff] %v4072_v36  ;;  %v4073_v15 = vadd.f32 %v4829_v48, %v4057_v26  ;;  %v4058_v30 = vadd.f32 %v8751_v12, %v4030_v54  ;;  %v4031_v1 = vmul.f32 %v8754_v11, %v4003_v63  ;;  %v4004_v24 = vmul.f32 %v4676_v23, %v8693_v50 }
 0x8dc   :  { %v4678_v45 = vpop.eup %4677  ;;  %4689 = vrsqrt.f32 %v3979_v49  ;;  %v3980_v20 = vadd.f32 1e-05, %v3964_v47  ;;  %v3965_v51 = vmul.f32 0.03125, %v3947_v9 }
 0x8dd   :  { %4089 = vst [vmem:[%s8919_s16 + $0x18] sm:$0xff] %v4073_v15  ;;  %v4074_v31 = vadd.f32 %v4830_v4, %v4058_v30  ;;  %v4059_v16 = vadd.f32 %v8758_v43, %v4031_v1  ;;  %v4032_v41 = vmul.f32 %v8748_v2, %v4004_v24  ;;  %v4005_v5 = vmul.f32 %v4678_v45, %v8695_v28  ;;  %v4832_v28 = vld [vmem:[%s9074_s23 + $0x30] sm:$0xff] }
 0x8de   :  { %4691 = vrsqrt.f32 %v3980_v20  ;;  %v3981_v59 = vadd.f32 1e-05, %v3965_v51 }
 0x8df   :  { %v4680_v50 = vpop.eup %4679  ;;  %4090 = vst [vmem:[%s8919_s16 + $0x20] sm:$0xff] %v4074_v31  ;;  %v4075_v60 = vadd.f32 %v4831_v53, %v4059_v16  ;;  %v4060_v42 = vadd.f32 %v8751_v12, %v4032_v41  ;;  %v4033_v58 = vmul.f32 %v8754_v11, %v4005_v5 }
 0x8e0   :  { %v4006_v25 = vmul.f32 %v4680_v50, %v8702_v22  ;;  %4693 = vrsqrt.f32 %v3981_v59  ;;  %v4833_v22 = vld [vmem:[%s9074_s23 + $0x38] sm:$0xff] }
 0x8e1   :  { %v4682_v32 = vpop.eup %4681  ;;  %4091 = vst [vmem:[%s8919_s16 + $0x28] sm:$0xff] %v4075_v60  ;;  %v4076_v46 = vadd.f32 %v4832_v28, %v4060_v42  ;;  %v4061_v62 = vadd.f32 %v8758_v43, %v4033_v58 }
 0x8e2   :  { %v4034_v40 = vmul.f32 %v8748_v2, %v4006_v25  ;;  %v4007_v29 = vmul.f32 %v4682_v32, %v8705_v6  ;;  %v4834_v6 = vld [vmem:[%s9074_s23 + $0x40] sm:$0xff] }
 0x8e3   :  { %v4684_v19 = vpop.eup %4683  ;;  %4092 = vst [vmem:[%s8919_s16 + $0x30] sm:$0xff] %v4076_v46  ;;  %v4077_v18 = vadd.f32 %v4833_v22, %v4061_v62 }
 0x8e4   :  { %v4062_v17 = vadd.f32 %v8751_v12, %v4034_v40  ;;  %v4035_v33 = vmul.f32 %v8754_v11, %v4007_v29  ;;  %v4008_v61 = vmul.f32 %v4684_v19, %v8712_v39  ;;  %v4835_v39 = vld [vmem:[%s9074_s23 + $0x48] sm:$0xff] }
 0x8e5   :  { %v4686_v21 = vpop.eup %4685  ;;  %4093 = vst [vmem:[%s8919_s16 + $0x38] sm:$0xff] %v4077_v18 }
 0x8e6   :  { %v4078_v14 = vadd.f32 %v4834_v6, %v4062_v17  ;;  %v4063_v7 = vadd.f32 %v8758_v43, %v4035_v33  ;;  %v4036_v55 = vmul.f32 %v8748_v2, %v4008_v61  ;;  %v4009_v13 = vmul.f32 %v4686_v21, %v8715_v56  ;;  %v4836_v56 = vld [vmem:[%s9074_s23 + $0x50] sm:$0xff] }
 0x8e7   :  { %v4688_v44 = vpop.eup %4687 }
 0x8e8   :  { %4094 = vst [vmem:[%s8919_s16 + $0x40] sm:$0xff] %v4078_v14  ;;  %v4079_v10 = vadd.f32 %v4835_v39, %v4063_v7  ;;  %v4064_v3 = vadd.f32 %v8751_v12, %v4036_v55  ;;  %v4037_v52 = vmul.f32 %v8754_v11, %v4009_v13  ;;  %v4010_v27 = vmul.f32 %v4688_v44, %v8722_v35  ;;  %v4837_v35 = vld [vmem:[%s9074_s23 + $0x58] sm:$0xff] }
 0x8e9   :  { %v4690_v37 = vpop.eup %4689 }
 0x8ea   :  { %4095 = vst [vmem:[%s8919_s16 + $0x48] sm:$0xff] %v4079_v10  ;;  %v4080_v57 = vadd.f32 %v4836_v56, %v4064_v3  ;;  %v4065_v34 = vadd.f32 %v8758_v43, %v4037_v52  ;;  %v4038_v36 = vmul.f32 %v8748_v2, %v4010_v27  ;;  %v4011_v26 = vmul.f32 %v4690_v37, %v8725_v38  ;;  %v4838_v38 = vld [vmem:[%s9074_s23 + $0x60] sm:$0xff] }
 0x8eb   :  { %v4692_v54 = vpop.eup %4691 }
 0x8ec   :  { %4096 = vst [vmem:[%s8919_s16 + $0x50] sm:$0xff] %v4080_v57  ;;  %v4081_v63 = vadd.f32 %v4837_v35, %v4065_v34  ;;  %v4066_v23 = vadd.f32 %v8751_v12, %v4038_v36  ;;  %v4039_v49 = vmul.f32 %v8754_v11, %v4011_v26  ;;  %v4012_v47 = vmul.f32 %v4692_v54, %v8732_v0  ;;  %v4839_v0 = vld [vmem:[%s9074_s23 + $0x68] sm:$0xff] }
 0x8ed   :  { %v4694_v9 = vpop.eup %4693 }
 0x8ee   :  { %4097 = vst [vmem:[%s8919_s16 + $0x58] sm:$0xff] %v4081_v63  ;;  %v4082_v48 = vadd.f32 %v4838_v38, %v4066_v23  ;;  %v4067_v15 = vadd.f32 %v8758_v43, %v4039_v49  ;;  %v4040_v30 = vmul.f32 %v8748_v2, %v4012_v47  ;;  %v4013_v1 = vmul.f32 %v4694_v9, %v8735_v8  ;;  %v4840_v8 = vld [vmem:[%s9074_s23 + $0x70] sm:$0xff] }
 0x8f0   :  { %4098 = vst [vmem:[%s8919_s16 + $0x60] sm:$0xff] %v4082_v48  ;;  %v4083_v24 = vadd.f32 %v4839_v0, %v4067_v15  ;;  %v4068_v45 = vadd.f32 %v8751_v12, %v4040_v30  ;;  %v4041_v20 = vmul.f32 %v8754_v11, %v4013_v1  ;;  %v4841_v12 = vld [vmem:[%s9074_s23 + $0x78] sm:$0xff] }
 0x8f2   :  { %4099 = vst [vmem:[%s8919_s16 + $0x68] sm:$0xff] %v4083_v24  ;;  %v4084_v2 = vadd.f32 %v4840_v8, %v4068_v45  ;;  %v4069_v51 = vadd.f32 %v8758_v43, %v4041_v20 }
 0x8f4   :  { %4100 = vst [vmem:[%s8919_s16 + $0x70] sm:$0xff] %v4084_v2  ;;  %v4085_v11 = vadd.f32 %v4841_v12, %v4069_v51 }
 0x8f6   :  { %4101 = vst [vmem:[%s8919_s16 + $0x78] sm:$0xff] %v4085_v11 }

</bundles_post_ra>
